<compile_context>
chip_gen: v7x
topology: tpu7x:2x2x1
jax: 0.10.0
libtpu: 0.0.40
codegen_flags: <defaults>
</compile_context>

<pallas_src>
import functools
import math

import jax
import jax.numpy as jnp
from jax.experimental import pallas as pl
from jax.experimental.pallas import tpu as pltpu

EXPANSION = 4          # Bottleneck expansion
M_CAP = 512            # activation-row tile cap for 1x1-conv matmuls
N_FULL_CAP = 2048      # keep full N resident when N <= this (weights are small)
K_CAP = 1024           # single-K fast path when K <= this
CONV_COUT_CAP = 512    # cout tile cap for the 3x3 conv kernel
VMEM_LIMIT = 48 * 1024 * 1024


def _round_up(x, m):
    return ((x + m - 1) // m) * m


def _largest_tile(d, candidates):
    for c in candidates:
        if d % c == 0:
            return c
    return d


# ----------------------------------------------------------------------------
# Pallas kernels
# ----------------------------------------------------------------------------
def _matmul_kernel(a_ref, b_ref, bias_ref, *rest, relu, has_res, multi_k):
    """Tiled matmul + fused bias (+residual) (+ReLU) epilogue.

    Single-K fast path writes the output directly (no accumulator scratch).
    """
    if multi_k:
        if has_res:
            res_ref, o_ref, acc_ref = rest
        else:
            o_ref, acc_ref = rest

        @pl.when(pl.program_id(2) == 0)
        def _():
            acc_ref[...] = jnp.zeros_like(acc_ref)

        acc_ref[...] += jnp.dot(a_ref[...], b_ref[...],
                                preferred_element_type=jnp.float32)

        @pl.when(pl.program_id(2) == pl.num_programs(2) - 1)
        def _():
            y = acc_ref[...] + bias_ref[...]
            if has_res:
                y = y + res_ref[...].astype(jnp.float32)
            if relu:
                y = jnp.maximum(y, 0.0)
            o_ref[...] = y.astype(o_ref.dtype)
    else:
        if has_res:
            res_ref, o_ref = rest
        else:
            (o_ref,) = rest
        y = jnp.dot(a_ref[...], b_ref[...],
                    preferred_element_type=jnp.float32) + bias_ref[...]
        if has_res:
            y = y + res_ref[...].astype(jnp.float32)
        if relu:
            y = jnp.maximum(y, 0.0)
        o_ref[...] = y.astype(o_ref.dtype)


def _conv3x3_kernel(*refs, num_planes, taps, oh, ow, relu):
    """3x3 conv as 3 row-tap matmuls with K = 3*Cin (column taps pre-stacked).

    refs = plane_refs (1 for stride 1, 2 row-parity planes for stride 2),
           w_ref (3, 3*Cin, Cout_t), bias_ref (1, Cout_t), o_ref.
    taps  = tuple of (plane_index, row_offset) for di = 0, 1, 2 (static).
    """
    plane_refs = refs[:num_planes]
    w_ref = refs[num_planes]
    b_ref = refs[num_planes + 1]
    o_ref = refs[num_planes + 2]

    acc = None
    for t, (pidx, roff) in enumerate(taps):          # static 3-tap unroll
        a = plane_refs[pidx][pl.ds(roff, oh), :, :]  # leading-axis offset only
        a = a.reshape(oh * ow, a.shape[-1])
        d = jnp.dot(a, w_ref[t], preferred_element_type=jnp.float32)
        acc = d if acc is None else acc + d

    y = acc + b_ref[...]
    if relu:
        y = jnp.maximum(y, 0.0)
    o_ref[...] = y.astype(o_ref.dtype)               # single store of the tile


# ----------------------------------------------------------------------------
# Wrappers
# ----------------------------------------------------------------------------
def fused_matmul(a, b, bias, residual=None, relu=False, out_dtype=jnp.bfloat16):
    """(M,K)@(K,N) + bias [+ residual] [+ ReLU]. bf16 MXU inputs, f32 epilogue.

    N is expected to be a multiple of 128 (guaranteed by parameter prep) so the
    output stores are lane-dense. residual (if given) is kept in bf16 and only
    upcast inside the epilogue.
    """
    a = a.astype(jnp.bfloat16)
    b = b.astype(jnp.bfloat16)
    M, K = a.shape
    Kb, N = b.shape
    assert Kb == K and N % 128 == 0
    has_res = residual is not None

    # N: keep full N resident (activation read from HBM exactly once).
    tn = N if N <= N_FULL_CAP else _largest_tile(N, (1024, 512, 256, 128))
    # M
    if M <= M_CAP:
        tm, Mp = M, M
    else:
        tm = M_CAP
        Mp = _round_up(M, tm)
    # K
    if K <= K_CAP:
        tk, Kp = K, K
    else:
        tk = 512
        Kp = _round_up(K, tk)
    nk = Kp // tk
    multi_k = nk > 1

    if Mp != M or Kp != K:
        a = jnp.pad(a, ((0, Mp - M), (0, Kp - K)))
    if Kp != K:
        b = jnp.pad(b, ((0, Kp - K), (0, 0)))
    bias2 = bias.astype(jnp.float32).reshape(1, N)

    inputs = [a, b, bias2]
    in_specs = [
        pl.BlockSpec((tm, tk), lambda i, j, k: (i, k)),
        pl.BlockSpec((tk, tn), lambda i, j, k: (k, j)),
        pl.BlockSpec((1, tn), lambda i, j, k: (0, j)),
    ]
    if has_res:
        r = residual.astype(jnp.bfloat16)
        if Mp != M:
            r = jnp.pad(r, ((0, Mp - M), (0, 0)))
        inputs.append(r)
        in_specs.append(pl.BlockSpec((tm, tn), lambda i, j, k: (i, j)))

    scratch = [pltpu.VMEM((tm, tn), jnp.float32)] if multi_k else []

    out = pl.pallas_call(
        functools.partial(_matmul_kernel, relu=relu, has_res=has_res,
                          multi_k=multi_k),
        out_shape=jax.ShapeDtypeStruct((Mp, N), out_dtype),
        grid_spec=pltpu.PrefetchScalarGridSpec(
            num_scalar_prefetch=0,
            grid=(Mp // tm, N // tn, nk),
            in_specs=in_specs,
            out_specs=pl.BlockSpec((tm, tn), lambda i, j, k: (i, j)),
            scratch_shapes=scratch,
        ),
        compiler_params=pltpu.CompilerParams(
            dimension_semantics=("parallel", "parallel", "arbitrary"),
            vmem_limit_bytes=VMEM_LIMIT),
    )(*inputs)
    if Mp != M:
        out = out[:M]
    return out


def conv3x3_bn_relu(x_nhwc, w3k, bias, stride, relu=True):
    """3x3/pad-1 conv with folded BN (+ReLU).

    x_nhwc: (N, H, W, Cin) activation (Cin may already include zero padding).
    w3k:    (3, 3*Cin, Cout_p) weights (row tap, stacked column taps x Cin).
    bias:   (Cout_p,) f32. Cout_p is a multiple of 128.
    """
    assert stride in (1, 2)
    n, h, w, cin = x_nhwc.shape
    k3 = 3 * cin
    cout_p = w3k.shape[2]
    assert w3k.shape == (3, k3, cout_p) and bias.shape == (cout_p,)
    oh = (h - 1) // stride + 1
    ow = (w - 1) // stride + 1

    x_bf = x_nhwc.astype(jnp.bfloat16)
    xp = jnp.pad(x_bf, ((0, 0), (1, 1), (1, 1), (0, 0)))

    if stride == 1:
        # Stack the 3 column taps on the channel (lane) axis -> one plane.
        xcat = jnp.concatenate([xp[:, :, d:d + ow, :] for d in range(3)], axis=-1)
        planes = [xcat]                               # (n, h+2, ow, 3*cin)
        taps = ((0, 0), (0, 1), (0, 2))               # di -> (plane, row offset)
    else:
        # 2 row-parity planes, each with the 3 column taps stacked on channels.
        planes = []
        for rp, nrows in ((0, oh + 1), (1, oh)):
            xr = xp[:, rp::2, :, :][:, :nrows, :, :]
            xc = jnp.concatenate(
                [xr[:, :, cv::2, :][:, :, :ow, :] for cv in range(3)], axis=-1)
            planes.append(xc)                         # (n, nrows, ow, 3*cin)
        taps = ((0, 0), (1, 0), (0, 1))               # di=0,1,2

    cout_t = cout_p if cout_p <= CONV_COUT_CAP else _largest_tile(
        cout_p, (512, 256, 128))

    w3k = w3k.astype(jnp.bfloat16)
    bias2 = bias.astype(jnp.float32).reshape(1, cout_p)

    num_planes = len(planes)
    in_specs = []
    for p_ in planes:
        ph = p_.shape[1]
        in_specs.append(
            pl.BlockSpec((None, ph, ow, k3), lambda b_, j_: (b_, 0, 0, 0)))
    in_specs += [
        pl.BlockSpec((3, k3, cout_t), lambda b_, j_: (0, 0, j_)),
        pl.BlockSpec((1, cout_t), lambda b_, j_: (0, j_)),
    ]

    out = pl.pallas_call(
        functools.partial(_conv3x3_kernel, num_planes=num_planes, taps=taps,
                          oh=oh, ow=ow, relu=relu),
        out_shape=jax.ShapeDtypeStruct((n, oh * ow, cout_p), jnp.bfloat16),
        grid_spec=pltpu.PrefetchScalarGridSpec(
            num_scalar_prefetch=0,
            grid=(n, cout_p // cout_t),
            in_specs=in_specs,
            out_specs=pl.BlockSpec((None, oh * ow, cout_t),
                                   lambda b_, j_: (b_, 0, j_)),
            scratch_shapes=[],
        ),
        compiler_params=pltpu.CompilerParams(
            dimension_semantics=("parallel", "parallel"),
            vmem_limit_bytes=VMEM_LIMIT),
    )(*planes, w3k, bias2)

    return out.reshape(n, oh, ow, cout_p)


# ----------------------------------------------------------------------------
# Parameters: raw (PyTorch-style) init + BN folding + 128-lane padding
# ----------------------------------------------------------------------------
def init_bottleneck_raw(key, in_planes, planes, stride):
    ks = jax.random.split(key, 8)

    def conv_w(k, cout, cin, ksz):
        return jax.random.normal(k, (cout, cin, ksz, ksz), jnp.float32) / math.sqrt(cin * ksz * ksz)

    def bn(k, c):
        k1, k2, k3, k4 = jax.random.split(k, 4)
        return {"gamma": jax.random.uniform(k1, (c,), jnp.float32, 0.5, 1.5),
                "beta": 0.1 * jax.random.normal(k2, (c,), jnp.float32),
                "mean": 0.1 * jax.random.normal(k3, (c,), jnp.float32),
                "var": jax.random.uniform(k4, (c,), jnp.float32, 0.5, 1.5)}

    raw = {"stride": stride,
           "conv1_w": conv_w(ks[0], planes, in_planes, 1), "bn1": bn(ks[1], planes),
           "conv2_w": conv_w(ks[2], planes, planes, 3),    "bn2": bn(ks[3], planes),
           "conv3_w": conv_w(ks[4], EXPANSION * planes, planes, 1),
           "bn3": bn(ks[5], EXPANSION * planes)}
    if stride != 1 or in_planes != EXPANSION * planes:
        raw["ds_w"] = conv_w(ks[6], EXPANSION * planes, in_planes, 1)
        raw["ds_bn"] = bn(ks[7], EXPANSION * planes)
    return raw


def _fold_bn(w_oihw, bn, eps=1e-5):
    scale = bn["gamma"] / jnp.sqrt(bn["var"] + eps)
    shift = bn["beta"] - bn["mean"] * scale
    return w_oihw * scale[:, None, None, None], shift


def prepare_bottleneck(raw):
    """Fold BN into conv weights/bias and pad all output channels to 128 lanes."""
    planes = raw["conv1_w"].shape[0]
    cout = EXPANSION * planes
    c1p = _round_up(planes, 128)       # conv1 / conv2 channel width (padded)
    c3p = _round_up(cout, 128)         # conv3 / shortcut channel width (padded)
    p = {"stride": raw["stride"], "cout": cout}

    w1, b1 = _fold_bn(raw["conv1_w"], raw["bn1"])               # (planes, cin, 1, 1)
    w1 = jnp.transpose(w1[:, :, 0, 0], (1, 0))                  # (cin, planes)
    p["w1"] = jnp.pad(w1, ((0, 0), (0, c1p - planes))).astype(jnp.bfloat16)
    p["b1"] = jnp.pad(b1, (0, c1p - planes)).astype(jnp.float32)

    w2, b2 = _fold_bn(raw["conv2_w"], raw["bn2"])               # (planes, planes, 3, 3)
    w2 = jnp.transpose(w2, (2, 3, 1, 0))                        # (3, 3, cin, cout)
    w2 = jnp.pad(w2, ((0, 0), (0, 0), (0, c1p - planes), (0, c1p - planes)))
    p["w2"] = w2.reshape(3, 3 * c1p, c1p).astype(jnp.bfloat16)  # (3, 3*cin_p, cout_p)
    p["b2"] = jnp.pad(b2, (0, c1p - planes)).astype(jnp.float32)

    w3, b3 = _fold_bn(raw["conv3_w"], raw["bn3"])               # (cout, planes, 1, 1)
    w3 = jnp.transpose(w3[:, :, 0, 0], (1, 0))                  # (planes, cout)
    w3 = jnp.pad(w3, ((0, c1p - planes), (0, c3p - cout)))
    p["w3"] = w3.astype(jnp.bfloat16)
    p["b3"] = jnp.pad(b3, (0, c3p - cout)).astype(jnp.float32)

    if "ds_w" in raw:
        ws, bs = _fold_bn(raw["ds_w"], raw["ds_bn"])
        ws = jnp.transpose(ws[:, :, 0, 0], (1, 0))              # (cin, cout)
        p["ws"] = jnp.pad(ws, ((0, 0), (0, c3p - cout))).astype(jnp.bfloat16)
        p["bs"] = jnp.pad(bs, (0, c3p - cout)).astype(jnp.float32)
    return p


# ----------------------------------------------------------------------------
# Forward (NHWC internally; activations flow in bf16 with 128-padded channels)
# ----------------------------------------------------------------------------
def bottleneck_forward(x_nhwc, p):
    n, h, w, cin = x_nhwc.shape
    stride = p["stride"]
    x = x_nhwc.astype(jnp.bfloat16)

    # conv1 (1x1) + folded BN1 + ReLU (fused epilogue); output channels padded.
    y1 = fused_matmul(x.reshape(n * h * w, cin), p["w1"], p["b1"], relu=True)
    y1 = y1.reshape(n, h, w, -1)

    # conv2 (3x3, stride) + folded BN2 + ReLU (single Pallas conv kernel).
    y2 = conv3x3_bn_relu(y1, p["w2"], p["b2"], stride, relu=True)
    _, oh, ow, c2p = y2.shape

    # shortcut (stays bf16; upcast only in the conv3 epilogue)
    c3p = p["w3"].shape[1]
    if "ws" in p:
        xs = x if stride == 1 else x[:, ::stride, ::stride, :]
        sc = fused_matmul(xs.reshape(n * oh * ow, cin), p["ws"], p["bs"],
                          relu=False)
    else:
        sc = x.reshape(n * oh * ow, cin)
        if cin < c3p:
            sc = jnp.pad(sc, ((0, 0), (0, c3p - cin)))

    # conv3 (1x1) + folded BN3 + residual add + ReLU (all fused in the epilogue).
    y3 = fused_matmul(y2.reshape(n * oh * ow, c2p), p["w3"], p["b3"],
                      residual=sc, relu=True)
    y3 = y3.reshape(n, oh, ow, -1)
    return y3[..., :p["cout"]]


# ----------------------------------------------------------------------------
# Pure-JAX f32 reference (for a loose numerical check)
# ----------------------------------------------------------------------------
def bottleneck_ref(x, raw):
    def conv(x_, w_, stride, pad):
        return jax.lax.conv_general_dilated(
            x_, jnp.transpose(w_, (2, 3, 1, 0)), (stride, stride),
            ((pad, pad), (pad, pad)),
            dimension_numbers=("NHWC", "HWIO", "NHWC"),
            precision=jax.lax.Precision.HIGHEST)

    def bnf(x_, bn):
        s = bn["gamma"] / jnp.sqrt(bn["var"] + 1e-5)
        return x_ * s + (bn["beta"] - bn["mean"] * s)

    out = jax.nn.relu(bnf(conv(x, raw["conv1_w"], 1, 0), raw["bn1"]))
    out = jax.nn.relu(bnf(conv(out, raw["conv2_w"], raw["stride"], 1), raw["bn2"]))
    out = bnf(conv(out, raw["conv3_w"], 1, 0), raw["bn3"])
    sc = bnf(conv(x, raw["ds_w"], raw["stride"], 0), raw["ds_bn"]) if "ds_w" in raw else x
    return jax.nn.relu(out + sc)


# ----------------------------------------------------------------------------
if __name__ == "__main__":
    key = jax.random.PRNGKey(0)
    kx, kb1, kb2 = jax.random.split(key, 3)

    N, C, H, W = 2, 64, 16, 16
    x_nchw = jax.random.normal(kx, (N, C, H, W), jnp.float32)        # NCHW like PyTorch

    raw1 = init_bottleneck_raw(kb1, in_planes=64, planes=16, stride=1)  # identity shortcut
    raw2 = init_bottleneck_raw(kb2, in_planes=64, planes=16, stride=2)  # 1x1/s2 downsample
    p1, p2 = prepare_bottleneck(raw1), prepare_bottleneck(raw2)

    x_nhwc = jnp.transpose(x_nchw, (0, 2, 3, 1))

    @jax.jit
    def run(x):
        y = bottleneck_forward(x, p1)
        return bottleneck_forward(y, p2)

    out_nhwc = jax.block_until_ready(run(x_nhwc))
    out_nchw = jnp.transpose(out_nhwc, (0, 3, 1, 2))

    ref_nhwc = bottleneck_ref(bottleneck_ref(x_nhwc, raw1), raw2)

    assert out_nchw.shape == (2, 64, 8, 8), out_nchw.shape
    assert bool(jnp.all(jnp.isfinite(out_nchw))), "non-finite values in output"
    err = float(jnp.max(jnp.abs(out_nhwc.astype(jnp.float32) - ref_nhwc))) / (
        float(jnp.max(jnp.abs(ref_nhwc))) + 1e-6)
    assert err < 0.1, f"mismatch vs f32 reference: normalized max err {err:.4f}"
    print("KERNEL_OK")
</pallas_src>

<mosaic_0001>
module attributes {stable_mosaic.version = 11 : i64} {
  func.func @_matmul_kernel(%arg0: i32, %arg1: i32, %arg2: i32, %arg3: memref<512x64xbf16, #tpu.memory_space<vmem>>, %arg4: memref<64x128xbf16, #tpu.memory_space<vmem>>, %arg5: memref<1x128xf32, #tpu.memory_space<vmem>>, %arg6: memref<512x128xbf16, #tpu.memory_space<vmem>>) attributes {dimension_semantics = [#tpu.dimension_semantics<parallel>, #tpu.dimension_semantics<parallel>, #tpu.dimension_semantics<arbitrary>], iteration_bounds = array<i64: 1, 1, 1>, scalar_prefetch = 0 : i64, scratch_operands = 0 : i64, tpu.core_type = #tpu.core_type<tc>, window_params = [{transform_indices = @transform_0, window_bounds = array<i64: 512, 64>}, {transform_indices = @transform_1, window_bounds = array<i64: 64, 128>}, {transform_indices = @transform_2, window_bounds = array<i64: 1, 128>}, {transform_indices = @transform_3, window_bounds = array<i64: 512, 128>}]} {
    %c0 = arith.constant 0 : index
    %c0_0 = arith.constant 0 : index
    %0 = vector.load %arg3[%c0, %c0_0] : memref<512x64xbf16, #tpu.memory_space<vmem>>, vector<512x64xbf16>
    %c0_1 = arith.constant 0 : index
    %c0_2 = arith.constant 0 : index
    %1 = vector.load %arg4[%c0_1, %c0_2] : memref<64x128xbf16, #tpu.memory_space<vmem>>, vector<64x128xbf16>
    %cst = arith.constant dense<0.000000e+00> : vector<512x128xf32>
    %2 = tpu.matmul %0, %1, %cst {dimension_numbers = #tpu.dot_dimension_numbers<[1], [0], [0], [1], [0, 0, 1, 1], [], []>} : vector<512x64xbf16>, vector<64x128xbf16>, vector<512x128xf32> -> vector<512x128xf32>
    %c0_3 = arith.constant 0 : index
    %c0_4 = arith.constant 0 : index
    %3 = vector.load %arg5[%c0_3, %c0_4] : memref<1x128xf32, #tpu.memory_space<vmem>>, vector<1x128xf32>
    %4 = vector.broadcast %3 : vector<1x128xf32> to vector<512x128xf32>
    %5 = arith.addf %2, %4 : vector<512x128xf32>
    %cst_5 = arith.constant 0.000000e+00 : f32
    %6 = vector.broadcast %cst_5 : f32 to vector<512x128xf32>
    %7 = arith.maximumf %5, %6 : vector<512x128xf32>
    %8 = arith.truncf %7 : vector<512x128xf32> to vector<512x128xbf16>
    %c0_6 = arith.constant 0 : index
    %c0_7 = arith.constant 0 : index
    %9 = vector.load %arg6[%c0_6, %c0_7] : memref<512x128xbf16, #tpu.memory_space<vmem>>, vector<512x128xbf16>
    tpu.vector_store %arg6[%c0_6, %c0_7], %8 {strides = array<i32>} : memref<512x128xbf16, #tpu.memory_space<vmem>>, vector<512x128xbf16>,
    return
  }
  func.func @transform_0(%arg0: i32, %arg1: i32, %arg2: i32) -> (i32, i32) {
    %c0_i32 = arith.constant 0 : i32
    return %arg0, %arg2 : i32, i32
  }
  func.func @transform_1(%arg0: i32, %arg1: i32, %arg2: i32) -> (i32, i32) {
    %c0_i32 = arith.constant 0 : i32
    return %arg2, %arg1 : i32, i32
  }
  func.func @transform_2(%arg0: i32, %arg1: i32, %arg2: i32) -> (i32, i32) {
    %c0_i32 = arith.constant 0 : i32
    %c0_i32_0 = arith.constant 0 : i32
    return %c0_i32, %arg1 : i32, i32
  }
  func.func @transform_3(%arg0: i32, %arg1: i32, %arg2: i32) -> (i32, i32) {
    %c0_i32 = arith.constant 0 : i32
    return %arg0, %arg1 : i32, i32
  }
}

module attributes {stable_mosaic.version = 11 : i64} {
  func.func @_matmul_kernel(%arg0: i32, %arg1: i32, %arg2: i32, %arg3: memref<512x128xbf16, #tpu.memory_space<vmem>>, %arg4: memref<128x128xbf16, #tpu.memory_space<vmem>>, %arg5: memref<1x128xf32, #tpu.memory_space<vmem>>, %arg6: memref<512x128xbf16, #tpu.memory_space<vmem>>, %arg7: memref<512x128xbf16, #tpu.memory_space<vmem>>) attributes {dimension_semantics = [#tpu.dimension_semantics<parallel>, #tpu.dimension_semantics<parallel>, #tpu.dimension_semantics<arbitrary>], iteration_bounds = array<i64: 1, 1, 1>, scalar_prefetch = 0 : i64, scratch_operands = 0 : i64, tpu.core_type = #tpu.core_type<tc>, window_params = [{transform_indices = @transform_0, window_bounds = array<i64: 512, 128>}, {transform_indices = @transform_1, window_bounds = array<i64: 128, 128>}, {transform_indices = @transform_2, window_bounds = array<i64: 1, 128>}, {transform_indices = @transform_3, window_bounds = array<i64: 512, 128>}, {transform_indices = @transform_4, window_bounds = array<i64: 512, 128>}]} {
    %c0 = arith.constant 0 : index
    %c0_0 = arith.constant 0 : index
    %0 = vector.load %arg3[%c0, %c0_0] : memref<512x128xbf16, #tpu.memory_space<vmem>>, vector<512x128xbf16>
    %c0_1 = arith.constant 0 : index
    %c0_2 = arith.constant 0 : index
    %1 = vector.load %arg4[%c0_1, %c0_2] : memref<128x128xbf16, #tpu.memory_space<vmem>>, vector<128x128xbf16>
    %cst = arith.constant dense<0.000000e+00> : vector<512x128xf32>
    %2 = tpu.matmul %0, %1, %cst {dimension_numbers = #tpu.dot_dimension_numbers<[1], [0], [0], [1], [0, 0, 1, 1], [], []>} : vector<512x128xbf16>, vector<128x128xbf16>, vector<512x128xf32> -> vector<512x128xf32>
    %c0_3 = arith.constant 0 : index
    %c0_4 = arith.constant 0 : index
    %3 = vector.load %arg5[%c0_3, %c0_4] : memref<1x128xf32, #tpu.memory_space<vmem>>, vector<1x128xf32>
    %4 = vector.broadcast %3 : vector<1x128xf32> to vector<512x128xf32>
    %5 = arith.addf %2, %4 : vector<512x128xf32>
    %c0_5 = arith.constant 0 : index
    %c0_6 = arith.constant 0 : index
    %6 = vector.load %arg6[%c0_5, %c0_6] : memref<512x128xbf16, #tpu.memory_space<vmem>>, vector<512x128xbf16>
    %7 = arith.extf %6 : vector<512x128xbf16> to vector<512x128xf32>
    %8 = arith.addf %5, %7 : vector<512x128xf32>
    %cst_7 = arith.constant 0.000000e+00 : f32
    %9 = vector.broadcast %cst_7 : f32 to vector<512x128xf32>
    %10 = arith.maximumf %8, %9 : vector<512x128xf32>
    %11 = arith.truncf %10 : vector<512x128xf32> to vector<512x128xbf16>
    %c0_8 = arith.constant 0 : index
    %c0_9 = arith.constant 0 : index
    %12 = vector.load %arg7[%c0_8, %c0_9] : memref<512x128xbf16, #tpu.memory_space<vmem>>, vector<512x128xbf16>
    tpu.vector_store %arg7[%c0_8, %c0_9], %11 {strides = array<i32>} : memref<512x128xbf16, #tpu.memory_space<vmem>>, vector<512x128xbf16>,
    return
  }
  func.func @transform_0(%arg0: i32, %arg1: i32, %arg2: i32) -> (i32, i32) {
    %c0_i32 = arith.constant 0 : i32
    return %arg0, %arg2 : i32, i32
  }
  func.func @transform_1(%arg0: i32, %arg1: i32, %arg2: i32) -> (i32, i32) {
    %c0_i32 = arith.constant 0 : i32
    return %arg2, %arg1 : i32, i32
  }
  func.func @transform_2(%arg0: i32, %arg1: i32, %arg2: i32) -> (i32, i32) {
    %c0_i32 = arith.constant 0 : i32
    %c0_i32_0 = arith.constant 0 : i32
    return %c0_i32, %arg1 : i32, i32
  }
  func.func @transform_3(%arg0: i32, %arg1: i32, %arg2: i32) -> (i32, i32) {
    %c0_i32 = arith.constant 0 : i32
    return %arg0, %arg1 : i32, i32
  }
  func.func @transform_4(%arg0: i32, %arg1: i32, %arg2: i32) -> (i32, i32) {
    %c0_i32 = arith.constant 0 : i32
    return %arg0, %arg1 : i32, i32
  }
}

module attributes {stable_mosaic.version = 11 : i64} {
  func.func @_conv3x3_kernel(%arg0: i32, %arg1: i32, %arg2: memref<1x18x16x384xbf16, #tpu.memory_space<vmem>>, %arg3: memref<3x384x128xbf16, #tpu.memory_space<vmem>>, %arg4: memref<1x128xf32, #tpu.memory_space<vmem>>, %arg5: memref<1x256x128xbf16, #tpu.memory_space<vmem>>) attributes {dimension_semantics = [#tpu.dimension_semantics<parallel>, #tpu.dimension_semantics<parallel>], iteration_bounds = array<i64: 2, 1>, scalar_prefetch = 0 : i64, scratch_operands = 0 : i64, tpu.core_type = #tpu.core_type<tc>, window_params = [{transform_indices = @transform_0, window_bounds = array<i64: 1, 18, 16, 384>}, {transform_indices = @transform_1, window_bounds = array<i64: 3, 384, 128>}, {transform_indices = @transform_2, window_bounds = array<i64: 1, 128>}, {transform_indices = @transform_3, window_bounds = array<i64: 1, 256, 128>}]} {
    %c0 = arith.constant 0 : index
    %c0_0 = arith.constant 0 : index
    %c0_1 = arith.constant 0 : index
    %c0_2 = arith.constant 0 : index
    %0 = vector.load %arg2[%c0, %c0_0, %c0_1, %c0_2] : memref<1x18x16x384xbf16, #tpu.memory_space<vmem>>, vector<1x16x16x384xbf16>
    %1 = vector.shape_cast %0 : vector<1x16x16x384xbf16> to vector<16x16x384xbf16>
    %2 = vector.shape_cast %1 : vector<16x16x384xbf16> to vector<256x384xbf16>
    %c0_3 = arith.constant 0 : index
    %c0_4 = arith.constant 0 : index
    %c0_5 = arith.constant 0 : index
    %3 = vector.load %arg3[%c0_3, %c0_4, %c0_5] : memref<3x384x128xbf16, #tpu.memory_space<vmem>>, vector<1x384x128xbf16>
    %4 = vector.shape_cast %3 : vector<1x384x128xbf16> to vector<384x128xbf16>
    %cst = arith.constant dense<0.000000e+00> : vector<256x128xf32>
    %5 = tpu.matmul %2, %4, %cst {dimension_numbers = #tpu.dot_dimension_numbers<[1], [0], [0], [1], [0, 0, 1, 1], [], []>} : vector<256x384xbf16>, vector<384x128xbf16>, vector<256x128xf32> -> vector<256x128xf32>
    %c0_6 = arith.constant 0 : index
    %c1 = arith.constant 1 : index
    %c0_7 = arith.constant 0 : index
    %c0_8 = arith.constant 0 : index
    %6 = vector.load %arg2[%c0_6, %c1, %c0_7, %c0_8] : memref<1x18x16x384xbf16, #tpu.memory_space<vmem>>, vector<1x16x16x384xbf16>
    %7 = vector.shape_cast %6 : vector<1x16x16x384xbf16> to vector<16x16x384xbf16>
    %8 = vector.shape_cast %7 : vector<16x16x384xbf16> to vector<256x384xbf16>
    %c1_9 = arith.constant 1 : index
    %c0_10 = arith.constant 0 : index
    %c0_11 = arith.constant 0 : index
    %9 = vector.load %arg3[%c1_9, %c0_10, %c0_11] : memref<3x384x128xbf16, #tpu.memory_space<vmem>>, vector<1x384x128xbf16>
    %10 = vector.shape_cast %9 : vector<1x384x128xbf16> to vector<384x128xbf16>
    %cst_12 = arith.constant dense<0.000000e+00> : vector<256x128xf32>
    %11 = tpu.matmul %8, %10, %cst_12 {dimension_numbers = #tpu.dot_dimension_numbers<[1], [0], [0], [1], [0, 0, 1, 1], [], []>} : vector<256x384xbf16>, vector<384x128xbf16>, vector<256x128xf32> -> vector<256x128xf32>
    %12 = arith.addf %5, %11 : vector<256x128xf32>
    %c0_13 = arith.constant 0 : index
    %c2 = arith.constant 2 : index
    %c0_14 = arith.constant 0 : index
    %c0_15 = arith.constant 0 : index
    %13 = vector.load %arg2[%c0_13, %c2, %c0_14, %c0_15] : memref<1x18x16x384xbf16, #tpu.memory_space<vmem>>, vector<1x16x16x384xbf16>
    %14 = vector.shape_cast %13 : vector<1x16x16x384xbf16> to vector<16x16x384xbf16>
    %15 = vector.shape_cast %14 : vector<16x16x384xbf16> to vector<256x384xbf16>
    %c2_16 = arith.constant 2 : index
    %c0_17 = arith.constant 0 : index
    %c0_18 = arith.constant 0 : index
    %16 = vector.load %arg3[%c2_16, %c0_17, %c0_18] : memref<3x384x128xbf16, #tpu.memory_space<vmem>>, vector<1x384x128xbf16>
    %17 = vector.shape_cast %16 : vector<1x384x128xbf16> to vector<384x128xbf16>
    %cst_19 = arith.constant dense<0.000000e+00> : vector<256x128xf32>
    %18 = tpu.matmul %15, %17, %cst_19 {dimension_numbers = #tpu.dot_dimension_numbers<[1], [0], [0], [1], [0, 0, 1, 1], [], []>} : vector<256x384xbf16>, vector<384x128xbf16>, vector<256x128xf32> -> vector<256x128xf32>
    %19 = arith.addf %12, %18 : vector<256x128xf32>
    %c0_20 = arith.constant 0 : index
    %c0_21 = arith.constant 0 : index
    %20 = vector.load %arg4[%c0_20, %c0_21] : memref<1x128xf32, #tpu.memory_space<vmem>>, vector<1x128xf32>
    %21 = vector.broadcast %20 : vector<1x128xf32> to vector<256x128xf32>
    %22 = arith.addf %19, %21 : vector<256x128xf32>
    %cst_22 = arith.constant 0.000000e+00 : f32
    %23 = vector.broadcast %cst_22 : f32 to vector<256x128xf32>
    %24 = arith.maximumf %22, %23 : vector<256x128xf32>
    %25 = arith.truncf %24 : vector<256x128xf32> to vector<256x128xbf16>
    %c0_23 = arith.constant 0 : index
    %c0_24 = arith.constant 0 : index
    %c0_25 = arith.constant 0 : index
    %26 = vector.load %arg5[%c0_23, %c0_24, %c0_25] : memref<1x256x128xbf16, #tpu.memory_space<vmem>>, vector<1x256x128xbf16>
    %27 = vector.shape_cast %26 : vector<1x256x128xbf16> to vector<256x128xbf16>
    %28 = vector.shape_cast %25 : vector<256x128xbf16> to vector<1x256x128xbf16>
    tpu.vector_store %arg5[%c0_23, %c0_24, %c0_25], %28 {strides = array<i32>} : memref<1x256x128xbf16, #tpu.memory_space<vmem>>, vector<1x256x128xbf16>,
    return
  }
  func.func @transform_0(%arg0: i32, %arg1: i32) -> (i32, i32, i32, i32) {
    %c0_i32 = arith.constant 0 : i32
    %c0_i32_0 = arith.constant 0 : i32
    %c0_i32_1 = arith.constant 0 : i32
    %c0_i32_2 = arith.constant 0 : i32
    return %arg0, %c0_i32, %c0_i32_0, %c0_i32_1 : i32, i32, i32, i32
  }
  func.func @transform_1(%arg0: i32, %arg1: i32) -> (i32, i32, i32) {
    %c0_i32 = arith.constant 0 : i32
    %c0_i32_0 = arith.constant 0 : i32
    %c0_i32_1 = arith.constant 0 : i32
    return %c0_i32, %c0_i32_0, %arg1 : i32, i32, i32
  }
  func.func @transform_2(%arg0: i32, %arg1: i32) -> (i32, i32) {
    %c0_i32 = arith.constant 0 : i32
    %c0_i32_0 = arith.constant 0 : i32
    return %c0_i32, %arg1 : i32, i32
  }
  func.func @transform_3(%arg0: i32, %arg1: i32) -> (i32, i32, i32) {
    %c0_i32 = arith.constant 0 : i32
    %c0_i32_0 = arith.constant 0 : i32
    return %arg0, %c0_i32, %arg1 : i32, i32, i32
  }
}

module attributes {stable_mosaic.version = 11 : i64} {
  func.func @_matmul_kernel(%arg0: i32, %arg1: i32, %arg2: i32, %arg3: memref<128x64xbf16, #tpu.memory_space<vmem>>, %arg4: memref<64x128xbf16, #tpu.memory_space<vmem>>, %arg5: memref<1x128xf32, #tpu.memory_space<vmem>>, %arg6: memref<128x128xbf16, #tpu.memory_space<vmem>>) attributes {dimension_semantics = [#tpu.dimension_semantics<parallel>, #tpu.dimension_semantics<parallel>, #tpu.dimension_semantics<arbitrary>], iteration_bounds = array<i64: 1, 1, 1>, scalar_prefetch = 0 : i64, scratch_operands = 0 : i64, tpu.core_type = #tpu.core_type<tc>, window_params = [{transform_indices = @transform_0, window_bounds = array<i64: 128, 64>}, {transform_indices = @transform_1, window_bounds = array<i64: 64, 128>}, {transform_indices = @transform_2, window_bounds = array<i64: 1, 128>}, {transform_indices = @transform_3, window_bounds = array<i64: 128, 128>}]} {
    %c0 = arith.constant 0 : index
    %c0_0 = arith.constant 0 : index
    %0 = vector.load %arg3[%c0, %c0_0] : memref<128x64xbf16, #tpu.memory_space<vmem>>, vector<128x64xbf16>
    %c0_1 = arith.constant 0 : index
    %c0_2 = arith.constant 0 : index
    %1 = vector.load %arg4[%c0_1, %c0_2] : memref<64x128xbf16, #tpu.memory_space<vmem>>, vector<64x128xbf16>
    %cst = arith.constant dense<0.000000e+00> : vector<128x128xf32>
    %2 = tpu.matmul %0, %1, %cst {dimension_numbers = #tpu.dot_dimension_numbers<[1], [0], [0], [1], [0, 0, 1, 1], [], []>} : vector<128x64xbf16>, vector<64x128xbf16>, vector<128x128xf32> -> vector<128x128xf32>
    %c0_3 = arith.constant 0 : index
    %c0_4 = arith.constant 0 : index
    %3 = vector.load %arg5[%c0_3, %c0_4] : memref<1x128xf32, #tpu.memory_space<vmem>>, vector<1x128xf32>
    %4 = vector.broadcast %3 : vector<1x128xf32> to vector<128x128xf32>
    %5 = arith.addf %2, %4 : vector<128x128xf32>
    %6 = arith.truncf %5 : vector<128x128xf32> to vector<128x128xbf16>
    %c0_5 = arith.constant 0 : index
    %c0_6 = arith.constant 0 : index
    %7 = vector.load %arg6[%c0_5, %c0_6] : memref<128x128xbf16, #tpu.memory_space<vmem>>, vector<128x128xbf16>
    tpu.vector_store %arg6[%c0_5, %c0_6], %6 {strides = array<i32>} : memref<128x128xbf16, #tpu.memory_space<vmem>>, vector<128x128xbf16>,
    return
  }
  func.func @transform_0(%arg0: i32, %arg1: i32, %arg2: i32) -> (i32, i32) {
    %c0_i32 = arith.constant 0 : i32
    return %arg0, %arg2 : i32, i32
  }
  func.func @transform_1(%arg0: i32, %arg1: i32, %arg2: i32) -> (i32, i32) {
    %c0_i32 = arith.constant 0 : i32
    return %arg2, %arg1 : i32, i32
  }
  func.func @transform_2(%arg0: i32, %arg1: i32, %arg2: i32) -> (i32, i32) {
    %c0_i32 = arith.constant 0 : i32
    %c0_i32_0 = arith.constant 0 : i32
    return %c0_i32, %arg1 : i32, i32
  }
  func.func @transform_3(%arg0: i32, %arg1: i32, %arg2: i32) -> (i32, i32) {
    %c0_i32 = arith.constant 0 : i32
    return %arg0, %arg1 : i32, i32
  }
}

module attributes {stable_mosaic.version = 11 : i64} {
  func.func @_conv3x3_kernel(%arg0: i32, %arg1: i32, %arg2: memref<1x9x8x384xbf16, #tpu.memory_space<vmem>>, %arg3: memref<1x8x8x384xbf16, #tpu.memory_space<vmem>>, %arg4: memref<3x384x128xbf16, #tpu.memory_space<vmem>>, %arg5: memref<1x128xf32, #tpu.memory_space<vmem>>, %arg6: memref<1x64x128xbf16, #tpu.memory_space<vmem>>) attributes {dimension_semantics = [#tpu.dimension_semantics<parallel>, #tpu.dimension_semantics<parallel>], iteration_bounds = array<i64: 2, 1>, scalar_prefetch = 0 : i64, scratch_operands = 0 : i64, tpu.core_type = #tpu.core_type<tc>, window_params = [{transform_indices = @transform_0, window_bounds = array<i64: 1, 9, 8, 384>}, {transform_indices = @transform_1, window_bounds = array<i64: 1, 8, 8, 384>}, {transform_indices = @transform_2, window_bounds = array<i64: 3, 384, 128>}, {transform_indices = @transform_3, window_bounds = array<i64: 1, 128>}, {transform_indices = @transform_4, window_bounds = array<i64: 1, 64, 128>}]} {
    %c0 = arith.constant 0 : index
    %c0_0 = arith.constant 0 : index
    %c0_1 = arith.constant 0 : index
    %c0_2 = arith.constant 0 : index
    %0 = vector.load %arg2[%c0, %c0_0, %c0_1, %c0_2] : memref<1x9x8x384xbf16, #tpu.memory_space<vmem>>, vector<1x8x8x384xbf16>
    %1 = vector.shape_cast %0 : vector<1x8x8x384xbf16> to vector<8x8x384xbf16>
    %2 = vector.shape_cast %1 : vector<8x8x384xbf16> to vector<64x384xbf16>
    %c0_3 = arith.constant 0 : index
    %c0_4 = arith.constant 0 : index
    %c0_5 = arith.constant 0 : index
    %3 = vector.load %arg4[%c0_3, %c0_4, %c0_5] : memref<3x384x128xbf16, #tpu.memory_space<vmem>>, vector<1x384x128xbf16>
    %4 = vector.shape_cast %3 : vector<1x384x128xbf16> to vector<384x128xbf16>
    %cst = arith.constant dense<0.000000e+00> : vector<64x128xf32>
    %5 = tpu.matmul %2, %4, %cst {dimension_numbers = #tpu.dot_dimension_numbers<[1], [0], [0], [1], [0, 0, 1, 1], [], []>} : vector<64x384xbf16>, vector<384x128xbf16>, vector<64x128xf32> -> vector<64x128xf32>
    %c0_6 = arith.constant 0 : index
    %c0_7 = arith.constant 0 : index
    %c0_8 = arith.constant 0 : index
    %c0_9 = arith.constant 0 : index
    %6 = vector.load %arg3[%c0_6, %c0_7, %c0_8, %c0_9] : memref<1x8x8x384xbf16, #tpu.memory_space<vmem>>, vector<1x8x8x384xbf16>
    %7 = vector.shape_cast %6 : vector<1x8x8x384xbf16> to vector<8x8x384xbf16>
    %8 = vector.shape_cast %7 : vector<8x8x384xbf16> to vector<64x384xbf16>
    %c1 = arith.constant 1 : index
    %c0_10 = arith.constant 0 : index
    %c0_11 = arith.constant 0 : index
    %9 = vector.load %arg4[%c1, %c0_10, %c0_11] : memref<3x384x128xbf16, #tpu.memory_space<vmem>>, vector<1x384x128xbf16>
    %10 = vector.shape_cast %9 : vector<1x384x128xbf16> to vector<384x128xbf16>
    %cst_12 = arith.constant dense<0.000000e+00> : vector<64x128xf32>
    %11 = tpu.matmul %8, %10, %cst_12 {dimension_numbers = #tpu.dot_dimension_numbers<[1], [0], [0], [1], [0, 0, 1, 1], [], []>} : vector<64x384xbf16>, vector<384x128xbf16>, vector<64x128xf32> -> vector<64x128xf32>
    %12 = arith.addf %5, %11 : vector<64x128xf32>
    %c0_13 = arith.constant 0 : index
    %c1_14 = arith.constant 1 : index
    %c0_15 = arith.constant 0 : index
    %c0_16 = arith.constant 0 : index
    %13 = vector.load %arg2[%c0_13, %c1_14, %c0_15, %c0_16] : memref<1x9x8x384xbf16, #tpu.memory_space<vmem>>, vector<1x8x8x384xbf16>
    %14 = vector.shape_cast %13 : vector<1x8x8x384xbf16> to vector<8x8x384xbf16>
    %15 = vector.shape_cast %14 : vector<8x8x384xbf16> to vector<64x384xbf16>
    %c2 = arith.constant 2 : index
    %c0_17 = arith.constant 0 : index
    %c0_18 = arith.constant 0 : index
    %16 = vector.load %arg4[%c2, %c0_17, %c0_18] : memref<3x384x128xbf16, #tpu.memory_space<vmem>>, vector<1x384x128xbf16>
    %17 = vector.shape_cast %16 : vector<1x384x128xbf16> to vector<384x128xbf16>
    %cst_19 = arith.constant dense<0.000000e+00> : vector<64x128xf32>
    %18 = tpu.matmul %15, %17, %cst_19 {dimension_numbers = #tpu.dot_dimension_numbers<[1], [0], [0], [1], [0, 0, 1, 1], [], []>} : vector<64x384xbf16>, vector<384x128xbf16>, vector<64x128xf32> -> vector<64x128xf32>
    %19 = arith.addf %12, %18 : vector<64x128xf32>
    %c0_20 = arith.constant 0 : index
    %c0_21 = arith.constant 0 : index
    %20 = vector.load %arg5[%c0_20, %c0_21] : memref<1x128xf32, #tpu.memory_space<vmem>>, vector<1x128xf32>
    %21 = vector.broadcast %20 : vector<1x128xf32> to vector<64x128xf32>
    %22 = arith.addf %19, %21 : vector<64x128xf32>
    %cst_22 = arith.constant 0.000000e+00 : f32
    %23 = vector.broadcast %cst_22 : f32 to vector<64x128xf32>
    %24 = arith.maximumf %22, %23 : vector<64x128xf32>
    %25 = arith.truncf %24 : vector<64x128xf32> to vector<64x128xbf16>
    %c0_23 = arith.constant 0 : index
    %c0_24 = arith.constant 0 : index
    %c0_25 = arith.constant 0 : index
    %26 = vector.load %arg6[%c0_23, %c0_24, %c0_25] : memref<1x64x128xbf16, #tpu.memory_space<vmem>>, vector<1x64x128xbf16>
    %27 = vector.shape_cast %26 : vector<1x64x128xbf16> to vector<64x128xbf16>
    %28 = vector.shape_cast %25 : vector<64x128xbf16> to vector<1x64x128xbf16>
    tpu.vector_store %arg6[%c0_23, %c0_24, %c0_25], %28 {strides = array<i32>} : memref<1x64x128xbf16, #tpu.memory_space<vmem>>, vector<1x64x128xbf16>,
    return
  }
  func.func @transform_0(%arg0: i32, %arg1: i32) -> (i32, i32, i32, i32) {
    %c0_i32 = arith.constant 0 : i32
    %c0_i32_0 = arith.constant 0 : i32
    %c0_i32_1 = arith.constant 0 : i32
    %c0_i32_2 = arith.constant 0 : i32
    return %arg0, %c0_i32, %c0_i32_0, %c0_i32_1 : i32, i32, i32, i32
  }
  func.func @transform_1(%arg0: i32, %arg1: i32) -> (i32, i32, i32, i32) {
    %c0_i32 = arith.constant 0 : i32
    %c0_i32_0 = arith.constant 0 : i32
    %c0_i32_1 = arith.constant 0 : i32
    %c0_i32_2 = arith.constant 0 : i32
    return %arg0, %c0_i32, %c0_i32_0, %c0_i32_1 : i32, i32, i32, i32
  }
  func.func @transform_2(%arg0: i32, %arg1: i32) -> (i32, i32, i32) {
    %c0_i32 = arith.constant 0 : i32
    %c0_i32_0 = arith.constant 0 : i32
    %c0_i32_1 = arith.constant 0 : i32
    return %c0_i32, %c0_i32_0, %arg1 : i32, i32, i32
  }
  func.func @transform_3(%arg0: i32, %arg1: i32) -> (i32, i32) {
    %c0_i32 = arith.constant 0 : i32
    %c0_i32_0 = arith.constant 0 : i32
    return %c0_i32, %arg1 : i32, i32
  }
  func.func @transform_4(%arg0: i32, %arg1: i32) -> (i32, i32, i32) {
    %c0_i32 = arith.constant 0 : i32
    %c0_i32_0 = arith.constant 0 : i32
    return %arg0, %c0_i32, %arg1 : i32, i32, i32
  }
}

module attributes {stable_mosaic.version = 11 : i64} {
  func.func @_matmul_kernel(%arg0: i32, %arg1: i32, %arg2: i32, %arg3: memref<128x128xbf16, #tpu.memory_space<vmem>>, %arg4: memref<128x128xbf16, #tpu.memory_space<vmem>>, %arg5: memref<1x128xf32, #tpu.memory_space<vmem>>, %arg6: memref<128x128xbf16, #tpu.memory_space<vmem>>, %arg7: memref<128x128xbf16, #tpu.memory_space<vmem>>) attributes {dimension_semantics = [#tpu.dimension_semantics<parallel>, #tpu.dimension_semantics<parallel>, #tpu.dimension_semantics<arbitrary>], iteration_bounds = array<i64: 1, 1, 1>, scalar_prefetch = 0 : i64, scratch_operands = 0 : i64, tpu.core_type = #tpu.core_type<tc>, window_params = [{transform_indices = @transform_0, window_bounds = array<i64: 128, 128>}, {transform_indices = @transform_1, window_bounds = array<i64: 128, 128>}, {transform_indices = @transform_2, window_bounds = array<i64: 1, 128>}, {transform_indices = @transform_3, window_bounds = array<i64: 128, 128>}, {transform_indices = @transform_4, window_bounds = array<i64: 128, 128>}]} {
    %c0 = arith.constant 0 : index
    %c0_0 = arith.constant 0 : index
    %0 = vector.load %arg3[%c0, %c0_0] : memref<128x128xbf16, #tpu.memory_space<vmem>>, vector<128x128xbf16>
    %c0_1 = arith.constant 0 : index
    %c0_2 = arith.constant 0 : index
    %1 = vector.load %arg4[%c0_1, %c0_2] : memref<128x128xbf16, #tpu.memory_space<vmem>>, vector<128x128xbf16>
    %cst = arith.constant dense<0.000000e+00> : vector<128x128xf32>
    %2 = tpu.matmul %0, %1, %cst {dimension_numbers = #tpu.dot_dimension_numbers<[1], [0], [0], [1], [0, 0, 1, 1], [], []>} : vector<128x128xbf16>, vector<128x128xbf16>, vector<128x128xf32> -> vector<128x128xf32>
    %c0_3 = arith.constant 0 : index
    %c0_4 = arith.constant 0 : index
    %3 = vector.load %arg5[%c0_3, %c0_4] : memref<1x128xf32, #tpu.memory_space<vmem>>, vector<1x128xf32>
    %4 = vector.broadcast %3 : vector<1x128xf32> to vector<128x128xf32>
    %5 = arith.addf %2, %4 : vector<128x128xf32>
    %c0_5 = arith.constant 0 : index
    %c0_6 = arith.constant 0 : index
    %6 = vector.load %arg6[%c0_5, %c0_6] : memref<128x128xbf16, #tpu.memory_space<vmem>>, vector<128x128xbf16>
    %7 = arith.extf %6 : vector<128x128xbf16> to vector<128x128xf32>
    %8 = arith.addf %5, %7 : vector<128x128xf32>
    %cst_7 = arith.constant 0.000000e+00 : f32
    %9 = vector.broadcast %cst_7 : f32 to vector<128x128xf32>
    %10 = arith.maximumf %8, %9 : vector<128x128xf32>
    %11 = arith.truncf %10 : vector<128x128xf32> to vector<128x128xbf16>
    %c0_8 = arith.constant 0 : index
    %c0_9 = arith.constant 0 : index
    %12 = vector.load %arg7[%c0_8, %c0_9] : memref<128x128xbf16, #tpu.memory_space<vmem>>, vector<128x128xbf16>
    tpu.vector_store %arg7[%c0_8, %c0_9], %11 {strides = array<i32>} : memref<128x128xbf16, #tpu.memory_space<vmem>>, vector<128x128xbf16>,
    return
  }
  func.func @transform_0(%arg0: i32, %arg1: i32, %arg2: i32) -> (i32, i32) {
    %c0_i32 = arith.constant 0 : i32
    return %arg0, %arg2 : i32, i32
  }
  func.func @transform_1(%arg0: i32, %arg1: i32, %arg2: i32) -> (i32, i32) {
    %c0_i32 = arith.constant 0 : i32
    return %arg2, %arg1 : i32, i32
  }
  func.func @transform_2(%arg0: i32, %arg1: i32, %arg2: i32) -> (i32, i32) {
    %c0_i32 = arith.constant 0 : i32
    %c0_i32_0 = arith.constant 0 : i32
    return %c0_i32, %arg1 : i32, i32
  }
  func.func @transform_3(%arg0: i32, %arg1: i32, %arg2: i32) -> (i32, i32) {
    %c0_i32 = arith.constant 0 : i32
    return %arg0, %arg1 : i32, i32
  }
  func.func @transform_4(%arg0: i32, %arg1: i32, %arg2: i32) -> (i32, i32) {
    %c0_i32 = arith.constant 0 : i32
    return %arg0, %arg1 : i32, i32
  }
}

</mosaic_0001>

<bundles_post_ra>
// kernel: run.7
= control target key start
LH: loop header
LB: loop body
LE: loop exit
PB: predicated region body
PF: predicated region fallthrough
CT: control target
= control target key end

     0   :  { %vm278_vm0 = vcmask 523264   ;;  %s1917_s1 = inlined_call_operand.vmem [shape: bf16[64,128], index: 1, kind: input, shape index: {}]   ;;  %s1918_s0 = inlined_call_operand.vmem [shape: bf16[512,64], index: 0, kind: input, shape index: {}]   ;;  %s1919_s2 = inlined_call_operand.vmem [shape: f32[1,128], index: 2, kind: input, shape index: {}]   ;;  %s1920_s3 = inlined_call_operand.vmem [shape: bf16[512,128], index: 3, kind: output, shape index: {}]  }
   0x1   :  { %v1556_v0 = vld [vmem:[%s1917_s1] sm:$0xff]   ;;  %v1557_v1 = vld [vmem:[%s1917_s1 + $0x8] sm:$0xff]   ;;  %v1558_v2 = vld [vmem:[%s1917_s1 + $0x10] sm:$0xff]  }
   0x2   :  { %1476 = vmatprep.subr.bf16.mxu0 %v1556_v0  ;;  %1548 = vmatprep.subr.bf16.mxu1 %v1556_v0  ;;  %v1560_v3 = vld [vmem:[%s1918_s0] sm:$0xff]   ;;  %v1559_v5 = vld [vmem:[%s1917_s1 + $0x18] sm:$0xff]   ;;  %v1562_v6 = vld [vmem:[%s1918_s0 + $0x8] sm:$0xff]  }
   0x3   :  { %1477 = vmatpush3.bf16.msra.mxu0 %v1556_v0  ;;  %1552 = vmatpush3.bf16.msra.mxu1 %v1556_v0  ;;  %v1561_v4 = vld [vmem:[%s1918_s0 + $0x80] sm:$0xff]   ;;  %v1563_v7 = vld [vmem:[%s1918_s0 + $0x88] sm:$0xff]   ;;  %v1564_v8 = vld [vmem:[%s1918_s0 + $0x10] sm:$0xff]  }
   0x4   :  { %1478 = vmatprep.subr.bf16.mxu0 %v1557_v1  ;;  %1549 = vmatprep.subr.bf16.mxu1 %v1557_v1  ;;  %v1565_v9 = vld [vmem:[%s1918_s0 + $0x90] sm:$0xff]   ;;  %v1566_v10 = vld [vmem:[%s1918_s0 + $0x18] sm:$0xff]   ;;  %v1568_v12 = vld [vmem:[%s1918_s0 + $0x20] sm:$0xff]  }
   0x5   :  { %1484 = vmatprep.mubr.msk.bf16.mxu0 %vm278_vm0, %v1560_v3  ;;  %1516 = vmatprep.mubr.msk.bf16.mxu1 %vm278_vm0, %v1561_v4  ;;  %v1567_v11 = vld [vmem:[%s1918_s0 + $0x98] sm:$0xff]   ;;  %v1569_v13 = vld [vmem:[%s1918_s0 + $0xa0] sm:$0xff]   ;;  %v1570_v14 = vld [vmem:[%s1918_s0 + $0x28] sm:$0xff]  }
   0x6   :  { %v1571_v15 = vld [vmem:[%s1918_s0 + $0xa8] sm:$0xff]   ;;  %v1572_v16 = vld [vmem:[%s1918_s0 + $0x30] sm:$0xff]   ;;  %v1574_v18 = vld [vmem:[%s1918_s0 + $0x38] sm:$0xff]  }
   0x7   :  { %1479 = vmatpush3.bf16.msra.mxu0 %v1557_v1  ;;  %1553 = vmatpush3.bf16.msra.mxu1 %v1557_v1  ;;  %v1573_v17 = vld [vmem:[%s1918_s0 + $0xb0] sm:$0xff]   ;;  %v1575_v19 = vld [vmem:[%s1918_s0 + $0xb8] sm:$0xff]   ;;  %v1576_v20 = vld [vmem:[%s1918_s0 + $0x40] sm:$0xff]  }
   0x8   :  { %1480 = vmatprep.subr.bf16.mxu0 %v1558_v2  ;;  %1550 = vmatprep.subr.bf16.mxu1 %v1558_v2  ;;  %v1577_v21 = vld [vmem:[%s1918_s0 + $0xc0] sm:$0xff]   ;;  %v1578_v22 = vld [vmem:[%s1918_s0 + $0x48] sm:$0xff]   ;;  %v1580_v24 = vld [vmem:[%s1918_s0 + $0x50] sm:$0xff]  }
   0x9   :  { %v1579_v23 = vld [vmem:[%s1918_s0 + $0xc8] sm:$0xff]   ;;  %v1581_v25 = vld [vmem:[%s1918_s0 + $0xd0] sm:$0xff]   ;;  %v1582_v26 = vld [vmem:[%s1918_s0 + $0x58] sm:$0xff]  }
   0xa   :  { %v1583_v27 = vld [vmem:[%s1918_s0 + $0xd8] sm:$0xff]   ;;  %v1584_v28 = vld [vmem:[%s1918_s0 + $0x60] sm:$0xff]   ;;  %v1586_v30 = vld [vmem:[%s1918_s0 + $0x68] sm:$0xff]  }
   0xb   :  { %1481 = vmatpush3.bf16.msra.mxu0 %v1558_v2  ;;  %1554 = vmatpush3.bf16.msra.mxu1 %v1558_v2  ;;  %v1585_v29 = vld [vmem:[%s1918_s0 + $0xe0] sm:$0xff]   ;;  %v1587_v31 = vld [vmem:[%s1918_s0 + $0xe8] sm:$0xff]   ;;  %v1588_v32 = vld [vmem:[%s1918_s0 + $0x70] sm:$0xff]  }
   0xc   :  { %1482 = vmatprep.subr.bf16.mxu0 %v1559_v5  ;;  %1551 = vmatprep.subr.bf16.mxu1 %v1559_v5  ;;  %v1589_v33 = vld [vmem:[%s1918_s0 + $0xf0] sm:$0xff]   ;;  %v1590_v34 = vld [vmem:[%s1918_s0 + $0x78] sm:$0xff]   ;;  %v1755_v36 = vld [vmem:[%s1919_s2] ss:$0 sm:$0xff] }
   0xd   :  { %v1591_v35 = vld [vmem:[%s1918_s0 + $0xf8] sm:$0xff]  }
   0xf   :  { %1483 = vmatpush3.bf16.msra.mxu0 %v1559_v5  ;;  %1555 = vmatpush3.bf16.msra.mxu1 %v1559_v5 }
  0x12   :  { %1485 = vmatmul.mubr.msk.bf16.vlgmr.msra.gmra.mrb[0].mxu0 %vm278_vm0, %v1562_v6  ;;  %1517 = vmatmul.mubr.msk.bf16.vlgmr.msra.gmra.mrb[0].mxu1 %vm278_vm0, %v1563_v7 }
  0x13   :  { %1488 = vmatprep.mubr.msk.bf16.mxu0 %vm278_vm0, %v1564_v8  ;;  %1520 = vmatprep.mubr.msk.bf16.mxu1 %vm278_vm0, %v1565_v9 }
  0x1a   :  { %1489 = vmatmul.mubr.msk.bf16.gmra.mrb[4].mxu0 %vm278_vm0, %v1566_v10  ;;  %1521 = vmatmul.mubr.msk.bf16.gmra.mrb[4].mxu1 %vm278_vm0, %v1567_v11 }
  0x1b   :  { %1492 = vmatprep.mubr.msk.bf16.mxu0 %vm278_vm0, %v1568_v12  ;;  %1524 = vmatprep.mubr.msk.bf16.mxu1 %vm278_vm0, %v1569_v13 }
  0x22   :  { %1493 = vmatmul.mubr.msk.bf16.gmra.mrb[8].mxu0 %vm278_vm0, %v1570_v14  ;;  %1525 = vmatmul.mubr.msk.bf16.gmra.mrb[8].mxu1 %vm278_vm0, %v1571_v15 }
  0x23   :  { %1496 = vmatprep.mubr.msk.bf16.mxu0 %vm278_vm0, %v1572_v16  ;;  %1528 = vmatprep.mubr.msk.bf16.mxu1 %vm278_vm0, %v1573_v17 }
  0x2a   :  { %1497 = vmatmul.mubr.msk.bf16.gmra.mrb[12].mxu0 %vm278_vm0, %v1574_v18  ;;  %1529 = vmatmul.mubr.msk.bf16.gmra.mrb[12].mxu1 %vm278_vm0, %v1575_v19 }
  0x2b   :  { %1500 = vmatprep.mubr.msk.bf16.mxu0 %vm278_vm0, %v1576_v20  ;;  %1532 = vmatprep.mubr.msk.bf16.mxu1 %vm278_vm0, %v1577_v21 }
  0x32   :  { %1501 = vmatmul.mubr.msk.bf16.gmra.mrb[16].mxu0 %vm278_vm0, %v1578_v22  ;;  %1533 = vmatmul.mubr.msk.bf16.gmra.mrb[16].mxu1 %vm278_vm0, %v1579_v23 }
  0x33   :  { %1504 = vmatprep.mubr.msk.bf16.mxu0 %vm278_vm0, %v1580_v24  ;;  %1536 = vmatprep.mubr.msk.bf16.mxu1 %vm278_vm0, %v1581_v25 }
  0x3a   :  { %1505 = vmatmul.mubr.msk.bf16.gmra.mrb[20].mxu0 %vm278_vm0, %v1582_v26  ;;  %1537 = vmatmul.mubr.msk.bf16.gmra.mrb[20].mxu1 %vm278_vm0, %v1583_v27 }
  0x3b   :  { %1508 = vmatprep.mubr.msk.bf16.mxu0 %vm278_vm0, %v1584_v28  ;;  %1540 = vmatprep.mubr.msk.bf16.mxu1 %vm278_vm0, %v1585_v29 }
  0x42   :  { %1509 = vmatmul.mubr.msk.bf16.gmra.mrb[24].mxu0 %vm278_vm0, %v1586_v30  ;;  %1541 = vmatmul.mubr.msk.bf16.gmra.mrb[24].mxu1 %vm278_vm0, %v1587_v31 }
  0x43   :  { %1512 = vmatprep.mubr.msk.bf16.mxu0 %vm278_vm0, %v1588_v32  ;;  %1544 = vmatprep.mubr.msk.bf16.mxu1 %vm278_vm0, %v1589_v33 }
  0x4a   :  { %1513 = vmatmul.mubr.msk.bf16.gmra.mrb[28].mxu0 %vm278_vm0, %v1590_v34  ;;  %1545 = vmatmul.mubr.msk.bf16.gmra.mrb[28].mxu1 %vm278_vm0, %v1591_v35 }
  0xe5   :  { %v1486_v37 = vpop.f32.mrb[0].mxu0  ;;  %v1518_v38 = vpop.f32.mrb[0].mxu1 }
  0xe6   :  { %v418_v39 = vadd.f32 %v1486_v37, %v1755_v36  ;;  %v546_v40 = vadd.f32 %v1518_v38, %v1755_v36  ;;  %v409_v41 = vpop.f32.mrb[1].mxu0  ;;  %v537_v42 = vpop.f32.mrb[1].mxu1 }
  0xe7   :  { %v410_v43 = vadd.f32 %v1755_v36, %v409_v41  ;;  %v538_v44 = vadd.f32 %v1755_v36, %v537_v42  ;;  %v1487_v45 = vpop.f32.mrb[2].mxu0  ;;  %v1519_v46 = vpop.f32.mrb[2].mxu1 }
  0xe8   :  { %v421_v47 = vadd.f32 %v1487_v45, %v1755_v36  ;;  %v549_v48 = vadd.f32 %v1519_v46, %v1755_v36  ;;  %v412_v49 = vpop.f32.mrb[3].mxu0  ;;  %v540_v50 = vpop.f32.mrb[3].mxu1  ;;  %v666_v53 = vmax.f32 %v418_v39, 0.0  ;;  %v698_v54 = vmax.f32 %v546_v40, 0.0 }
  0xe9   :  { %v413_v51 = vadd.f32 %v1755_v36, %v412_v49  ;;  %v541_v52 = vadd.f32 %v1755_v36, %v540_v50  ;;  %v664_v57 = vmax.f32 %v410_v43, 0.0  ;;  %v696_v58 = vmax.f32 %v538_v44, 0.0 }
  0xea   :  { %v667_v55 = vmax.f32 %v421_v47, 0.0  ;;  %v699_v56 = vmax.f32 %v549_v48, 0.0 }
  0xeb   :  { %v665_v59 = vmax.f32 %v413_v51, 0.0  ;;  %v697_v60 = vmax.f32 %v541_v52, 0.0 }
  0xec   :  { %v1257_v61 = vpack.c.bf16 %v667_v55, %v666_v53  ;;  %v1337_v62 = vpack.c.bf16 %v699_v56, %v698_v54 }
  0xed   :  { %v1252_v63 = vpack.c.bf16 %v665_v59, %v664_v57  ;;  %v1332_v0 = vpack.c.bf16 %v697_v60, %v696_v58  ;;  %v1490_v1 = vpop.f32.mrb[4].mxu0  ;;  %v1522_v2 = vpop.f32.mrb[4].mxu1 }
  0xee   :  { %1409 = vst [vmem:[%s1920_s3 + $0x8] sm:$0xff] %v1257_v61   ;;  %1425 = vst [vmem:[%s1920_s3 + $0x88] sm:$0xff] %v1337_v62   ;;  %v434_v3 = vadd.f32 %v1490_v1, %v1755_v36  ;;  %v562_v4 = vadd.f32 %v1522_v2, %v1755_v36  ;;  %v425_v5 = vpop.f32.mrb[5].mxu0  ;;  %v553_v6 = vpop.f32.mrb[5].mxu1 }
  0xef   :  { %1253 = vst [vmem:[%s1920_s3] sm:$0xff] %v1252_v63   ;;  %1424 = vst [vmem:[%s1920_s3 + $0x80] sm:$0xff] %v1332_v0   ;;  %v426_v7 = vadd.f32 %v1755_v36, %v425_v5  ;;  %v554_v8 = vadd.f32 %v1755_v36, %v553_v6  ;;  %v1491_v9 = vpop.f32.mrb[6].mxu0  ;;  %v1523_v10 = vpop.f32.mrb[6].mxu1 }
  0xf0   :  { %v437_v11 = vadd.f32 %v1491_v9, %v1755_v36  ;;  %v565_v12 = vadd.f32 %v1523_v10, %v1755_v36  ;;  %v428_v13 = vpop.f32.mrb[7].mxu0  ;;  %v556_v14 = vpop.f32.mrb[7].mxu1  ;;  %v670_v17 = vmax.f32 %v434_v3, 0.0  ;;  %v702_v18 = vmax.f32 %v562_v4, 0.0 }
  0xf1   :  { %v429_v15 = vadd.f32 %v1755_v36, %v428_v13  ;;  %v557_v16 = vadd.f32 %v1755_v36, %v556_v14  ;;  %v668_v21 = vmax.f32 %v426_v7, 0.0  ;;  %v700_v22 = vmax.f32 %v554_v8, 0.0 }
  0xf2   :  { %v671_v19 = vmax.f32 %v437_v11, 0.0  ;;  %v703_v20 = vmax.f32 %v565_v12, 0.0 }
  0xf3   :  { %v669_v23 = vmax.f32 %v429_v15, 0.0  ;;  %v701_v24 = vmax.f32 %v557_v16, 0.0 }
  0xf4   :  { %v1267_v25 = vpack.c.bf16 %v671_v19, %v670_v17  ;;  %v1347_v26 = vpack.c.bf16 %v703_v20, %v702_v18 }
  0xf5   :  { %v1262_v27 = vpack.c.bf16 %v669_v23, %v668_v21  ;;  %v1342_v28 = vpack.c.bf16 %v701_v24, %v700_v22  ;;  %v1494_v29 = vpop.f32.mrb[8].mxu0  ;;  %v1526_v30 = vpop.f32.mrb[8].mxu1 }
  0xf6   :  { %1411 = vst [vmem:[%s1920_s3 + $0x18] sm:$0xff] %v1267_v25   ;;  %1427 = vst [vmem:[%s1920_s3 + $0x98] sm:$0xff] %v1347_v26   ;;  %v450_v31 = vadd.f32 %v1494_v29, %v1755_v36  ;;  %v578_v32 = vadd.f32 %v1526_v30, %v1755_v36  ;;  %v441_v33 = vpop.f32.mrb[9].mxu0  ;;  %v569_v34 = vpop.f32.mrb[9].mxu1 }
  0xf7   :  { %1410 = vst [vmem:[%s1920_s3 + $0x10] sm:$0xff] %v1262_v27   ;;  %1426 = vst [vmem:[%s1920_s3 + $0x90] sm:$0xff] %v1342_v28   ;;  %v442_v35 = vadd.f32 %v1755_v36, %v441_v33  ;;  %v570_v37 = vadd.f32 %v1755_v36, %v569_v34  ;;  %v1495_v38 = vpop.f32.mrb[10].mxu0  ;;  %v1527_v39 = vpop.f32.mrb[10].mxu1 }
  0xf8   :  { %v453_v40 = vadd.f32 %v1495_v38, %v1755_v36  ;;  %v581_v41 = vadd.f32 %v1527_v39, %v1755_v36  ;;  %v444_v42 = vpop.f32.mrb[11].mxu0  ;;  %v572_v43 = vpop.f32.mrb[11].mxu1  ;;  %v674_v46 = vmax.f32 %v450_v31, 0.0  ;;  %v706_v47 = vmax.f32 %v578_v32, 0.0 }
  0xf9   :  { %v445_v44 = vadd.f32 %v1755_v36, %v444_v42  ;;  %v573_v45 = vadd.f32 %v1755_v36, %v572_v43  ;;  %v672_v50 = vmax.f32 %v442_v35, 0.0  ;;  %v704_v51 = vmax.f32 %v570_v37, 0.0 }
  0xfa   :  { %v675_v48 = vmax.f32 %v453_v40, 0.0  ;;  %v707_v49 = vmax.f32 %v581_v41, 0.0 }
  0xfb   :  { %v673_v52 = vmax.f32 %v445_v44, 0.0  ;;  %v705_v53 = vmax.f32 %v573_v45, 0.0 }
  0xfc   :  { %v1277_v54 = vpack.c.bf16 %v675_v48, %v674_v46  ;;  %v1357_v55 = vpack.c.bf16 %v707_v49, %v706_v47 }
  0xfd   :  { %v1272_v56 = vpack.c.bf16 %v673_v52, %v672_v50  ;;  %v1352_v57 = vpack.c.bf16 %v705_v53, %v704_v51  ;;  %v1498_v58 = vpop.f32.mrb[12].mxu0  ;;  %v1530_v59 = vpop.f32.mrb[12].mxu1 }
  0xfe   :  { %1413 = vst [vmem:[%s1920_s3 + $0x28] sm:$0xff] %v1277_v54   ;;  %1429 = vst [vmem:[%s1920_s3 + $0xa8] sm:$0xff] %v1357_v55   ;;  %v466_v60 = vadd.f32 %v1498_v58, %v1755_v36  ;;  %v594_v61 = vadd.f32 %v1530_v59, %v1755_v36  ;;  %v457_v62 = vpop.f32.mrb[13].mxu0  ;;  %v585_v63 = vpop.f32.mrb[13].mxu1 }
  0xff   :  { %1412 = vst [vmem:[%s1920_s3 + $0x20] sm:$0xff] %v1272_v56   ;;  %1428 = vst [vmem:[%s1920_s3 + $0xa0] sm:$0xff] %v1352_v57   ;;  %v458_v0 = vadd.f32 %v1755_v36, %v457_v62  ;;  %v586_v1 = vadd.f32 %v1755_v36, %v585_v63  ;;  %v1499_v2 = vpop.f32.mrb[14].mxu0  ;;  %v1531_v3 = vpop.f32.mrb[14].mxu1 }
 0x100   :  { %v469_v4 = vadd.f32 %v1499_v2, %v1755_v36  ;;  %v597_v5 = vadd.f32 %v1531_v3, %v1755_v36  ;;  %v460_v6 = vpop.f32.mrb[15].mxu0  ;;  %v588_v7 = vpop.f32.mrb[15].mxu1  ;;  %v678_v10 = vmax.f32 %v466_v60, 0.0  ;;  %v710_v11 = vmax.f32 %v594_v61, 0.0 }
 0x101   :  { %v461_v8 = vadd.f32 %v1755_v36, %v460_v6  ;;  %v589_v9 = vadd.f32 %v1755_v36, %v588_v7  ;;  %v676_v14 = vmax.f32 %v458_v0, 0.0  ;;  %v708_v15 = vmax.f32 %v586_v1, 0.0 }
 0x102   :  { %v679_v12 = vmax.f32 %v469_v4, 0.0  ;;  %v711_v13 = vmax.f32 %v597_v5, 0.0 }
 0x103   :  { %v677_v16 = vmax.f32 %v461_v8, 0.0  ;;  %v709_v17 = vmax.f32 %v589_v9, 0.0 }
 0x104   :  { %v1287_v18 = vpack.c.bf16 %v679_v12, %v678_v10  ;;  %v1367_v19 = vpack.c.bf16 %v711_v13, %v710_v11 }
 0x105   :  { %v1282_v20 = vpack.c.bf16 %v677_v16, %v676_v14  ;;  %v1362_v21 = vpack.c.bf16 %v709_v17, %v708_v15  ;;  %v1502_v22 = vpop.f32.mrb[16].mxu0  ;;  %v1534_v23 = vpop.f32.mrb[16].mxu1 }
 0x106   :  { %1415 = vst [vmem:[%s1920_s3 + $0x38] sm:$0xff] %v1287_v18   ;;  %1431 = vst [vmem:[%s1920_s3 + $0xb8] sm:$0xff] %v1367_v19   ;;  %v482_v24 = vadd.f32 %v1502_v22, %v1755_v36  ;;  %v610_v25 = vadd.f32 %v1534_v23, %v1755_v36  ;;  %v473_v26 = vpop.f32.mrb[17].mxu0  ;;  %v601_v27 = vpop.f32.mrb[17].mxu1 }
 0x107   :  { %1414 = vst [vmem:[%s1920_s3 + $0x30] sm:$0xff] %v1282_v20   ;;  %1430 = vst [vmem:[%s1920_s3 + $0xb0] sm:$0xff] %v1362_v21   ;;  %v474_v28 = vadd.f32 %v1755_v36, %v473_v26  ;;  %v602_v29 = vadd.f32 %v1755_v36, %v601_v27  ;;  %v1503_v30 = vpop.f32.mrb[18].mxu0  ;;  %v1535_v31 = vpop.f32.mrb[18].mxu1 }
 0x108   :  { %v485_v32 = vadd.f32 %v1503_v30, %v1755_v36  ;;  %v613_v33 = vadd.f32 %v1535_v31, %v1755_v36  ;;  %v476_v34 = vpop.f32.mrb[19].mxu0  ;;  %v604_v35 = vpop.f32.mrb[19].mxu1  ;;  %v682_v39 = vmax.f32 %v482_v24, 0.0  ;;  %v714_v40 = vmax.f32 %v610_v25, 0.0 }
 0x109   :  { %v477_v37 = vadd.f32 %v1755_v36, %v476_v34  ;;  %v605_v38 = vadd.f32 %v1755_v36, %v604_v35  ;;  %v680_v43 = vmax.f32 %v474_v28, 0.0  ;;  %v712_v44 = vmax.f32 %v602_v29, 0.0 }
 0x10a   :  { %v683_v41 = vmax.f32 %v485_v32, 0.0  ;;  %v715_v42 = vmax.f32 %v613_v33, 0.0 }
 0x10b   :  { %v681_v45 = vmax.f32 %v477_v37, 0.0  ;;  %v713_v46 = vmax.f32 %v605_v38, 0.0 }
 0x10c   :  { %v1297_v47 = vpack.c.bf16 %v683_v41, %v682_v39  ;;  %v1377_v48 = vpack.c.bf16 %v715_v42, %v714_v40 }
 0x10d   :  { %v1292_v49 = vpack.c.bf16 %v681_v45, %v680_v43  ;;  %v1372_v50 = vpack.c.bf16 %v713_v46, %v712_v44  ;;  %v1506_v51 = vpop.f32.mrb[20].mxu0  ;;  %v1538_v52 = vpop.f32.mrb[20].mxu1 }
 0x10e   :  { %1417 = vst [vmem:[%s1920_s3 + $0x48] sm:$0xff] %v1297_v47   ;;  %1433 = vst [vmem:[%s1920_s3 + $0xc8] sm:$0xff] %v1377_v48   ;;  %v498_v53 = vadd.f32 %v1506_v51, %v1755_v36  ;;  %v626_v54 = vadd.f32 %v1538_v52, %v1755_v36  ;;  %v489_v55 = vpop.f32.mrb[21].mxu0  ;;  %v617_v56 = vpop.f32.mrb[21].mxu1 }
 0x10f   :  { %1416 = vst [vmem:[%s1920_s3 + $0x40] sm:$0xff] %v1292_v49   ;;  %1432 = vst [vmem:[%s1920_s3 + $0xc0] sm:$0xff] %v1372_v50   ;;  %v490_v57 = vadd.f32 %v1755_v36, %v489_v55  ;;  %v618_v58 = vadd.f32 %v1755_v36, %v617_v56  ;;  %v1507_v59 = vpop.f32.mrb[22].mxu0  ;;  %v1539_v60 = vpop.f32.mrb[22].mxu1 }
 0x110   :  { %v501_v61 = vadd.f32 %v1507_v59, %v1755_v36  ;;  %v629_v62 = vadd.f32 %v1539_v60, %v1755_v36  ;;  %v492_v63 = vpop.f32.mrb[23].mxu0  ;;  %v620_v0 = vpop.f32.mrb[23].mxu1  ;;  %v686_v3 = vmax.f32 %v498_v53, 0.0  ;;  %v718_v4 = vmax.f32 %v626_v54, 0.0 }
 0x111   :  { %v493_v1 = vadd.f32 %v1755_v36, %v492_v63  ;;  %v621_v2 = vadd.f32 %v1755_v36, %v620_v0  ;;  %v684_v7 = vmax.f32 %v490_v57, 0.0  ;;  %v716_v8 = vmax.f32 %v618_v58, 0.0 }
 0x112   :  { %v687_v5 = vmax.f32 %v501_v61, 0.0  ;;  %v719_v6 = vmax.f32 %v629_v62, 0.0 }
 0x113   :  { %v685_v9 = vmax.f32 %v493_v1, 0.0  ;;  %v717_v10 = vmax.f32 %v621_v2, 0.0 }
 0x114   :  { %v1307_v11 = vpack.c.bf16 %v687_v5, %v686_v3  ;;  %v1387_v12 = vpack.c.bf16 %v719_v6, %v718_v4 }
 0x115   :  { %v1302_v13 = vpack.c.bf16 %v685_v9, %v684_v7  ;;  %v1382_v14 = vpack.c.bf16 %v717_v10, %v716_v8  ;;  %v1510_v15 = vpop.f32.mrb[24].mxu0  ;;  %v1542_v16 = vpop.f32.mrb[24].mxu1 }
 0x116   :  { %1419 = vst [vmem:[%s1920_s3 + $0x58] sm:$0xff] %v1307_v11   ;;  %1435 = vst [vmem:[%s1920_s3 + $0xd8] sm:$0xff] %v1387_v12   ;;  %v514_v17 = vadd.f32 %v1510_v15, %v1755_v36  ;;  %v642_v18 = vadd.f32 %v1542_v16, %v1755_v36  ;;  %v505_v19 = vpop.f32.mrb[25].mxu0  ;;  %v633_v20 = vpop.f32.mrb[25].mxu1 }
 0x117   :  { %1418 = vst [vmem:[%s1920_s3 + $0x50] sm:$0xff] %v1302_v13   ;;  %1434 = vst [vmem:[%s1920_s3 + $0xd0] sm:$0xff] %v1382_v14   ;;  %v506_v21 = vadd.f32 %v1755_v36, %v505_v19  ;;  %v634_v22 = vadd.f32 %v1755_v36, %v633_v20  ;;  %v1511_v23 = vpop.f32.mrb[26].mxu0  ;;  %v1543_v24 = vpop.f32.mrb[26].mxu1 }
 0x118   :  { %v517_v25 = vadd.f32 %v1511_v23, %v1755_v36  ;;  %v645_v26 = vadd.f32 %v1543_v24, %v1755_v36  ;;  %v508_v27 = vpop.f32.mrb[27].mxu0  ;;  %v636_v28 = vpop.f32.mrb[27].mxu1  ;;  %v690_v31 = vmax.f32 %v514_v17, 0.0  ;;  %v722_v32 = vmax.f32 %v642_v18, 0.0 }
 0x119   :  { %v509_v29 = vadd.f32 %v1755_v36, %v508_v27  ;;  %v637_v30 = vadd.f32 %v1755_v36, %v636_v28  ;;  %v688_v35 = vmax.f32 %v506_v21, 0.0  ;;  %v720_v37 = vmax.f32 %v634_v22, 0.0 }
 0x11a   :  { %v691_v33 = vmax.f32 %v517_v25, 0.0  ;;  %v723_v34 = vmax.f32 %v645_v26, 0.0 }
 0x11b   :  { %v689_v38 = vmax.f32 %v509_v29, 0.0  ;;  %v721_v39 = vmax.f32 %v637_v30, 0.0 }
 0x11c   :  { %v1317_v40 = vpack.c.bf16 %v691_v33, %v690_v31  ;;  %v1397_v41 = vpack.c.bf16 %v723_v34, %v722_v32 }
 0x11d   :  { %v1312_v42 = vpack.c.bf16 %v689_v38, %v688_v35  ;;  %v1392_v43 = vpack.c.bf16 %v721_v39, %v720_v37  ;;  %v1514_v44 = vpop.f32.mrb[28].mxu0  ;;  %v1546_v45 = vpop.f32.mrb[28].mxu1 }
 0x11e   :  { %1421 = vst [vmem:[%s1920_s3 + $0x68] sm:$0xff] %v1317_v40   ;;  %1437 = vst [vmem:[%s1920_s3 + $0xe8] sm:$0xff] %v1397_v41   ;;  %v530_v46 = vadd.f32 %v1514_v44, %v1755_v36  ;;  %v658_v47 = vadd.f32 %v1546_v45, %v1755_v36  ;;  %v521_v48 = vpop.f32.mrb[29].mxu0  ;;  %v649_v49 = vpop.f32.mrb[29].mxu1 }
 0x11f   :  { %1420 = vst [vmem:[%s1920_s3 + $0x60] sm:$0xff] %v1312_v42   ;;  %1436 = vst [vmem:[%s1920_s3 + $0xe0] sm:$0xff] %v1392_v43   ;;  %v522_v50 = vadd.f32 %v1755_v36, %v521_v48  ;;  %v650_v51 = vadd.f32 %v1755_v36, %v649_v49  ;;  %v1515_v52 = vpop.f32.mrb[30].mxu0  ;;  %v1547_v53 = vpop.f32.mrb[30].mxu1 }
 0x120   :  { %v533_v54 = vadd.f32 %v1515_v52, %v1755_v36  ;;  %v661_v55 = vadd.f32 %v1547_v53, %v1755_v36  ;;  %v524_v56 = vpop.f32.mrb[31].mxu0  ;;  %v652_v57 = vpop.f32.mrb[31].mxu1  ;;  %v694_v60 = vmax.f32 %v530_v46, 0.0  ;;  %v726_v61 = vmax.f32 %v658_v47, 0.0 }
 0x121   :  { %v525_v58 = vadd.f32 %v1755_v36, %v524_v56  ;;  %v653_v59 = vadd.f32 %v1755_v36, %v652_v57  ;;  %v692_v0 = vmax.f32 %v522_v50, 0.0  ;;  %v724_v1 = vmax.f32 %v650_v51, 0.0 }
 0x122   :  { %v695_v62 = vmax.f32 %v533_v54, 0.0  ;;  %v727_v63 = vmax.f32 %v661_v55, 0.0 }
 0x123   :  { %v693_v2 = vmax.f32 %v525_v58, 0.0  ;;  %v725_v3 = vmax.f32 %v653_v59, 0.0 }
 0x124   :  { %v1327_v4 = vpack.c.bf16 %v695_v62, %v694_v60  ;;  %v1407_v5 = vpack.c.bf16 %v727_v63, %v726_v61 }
 0x125   :  { %v1322_v6 = vpack.c.bf16 %v693_v2, %v692_v0  ;;  %v1402_v7 = vpack.c.bf16 %v725_v3, %v724_v1 }
 0x126   :  { %1423 = vst [vmem:[%s1920_s3 + $0x78] sm:$0xff] %v1327_v4   ;;  %1439 = vst [vmem:[%s1920_s3 + $0xf8] sm:$0xff] %v1407_v5  }
 0x127   :  { %1422 = vst [vmem:[%s1920_s3 + $0x70] sm:$0xff] %v1322_v6   ;;  %1438 = vst [vmem:[%s1920_s3 + $0xf0] sm:$0xff] %v1402_v7  }

// kernel: run.9
= control target key start
LH: loop header
LB: loop body
LE: loop exit
PB: predicated region body
PF: predicated region fallthrough
CT: control target
= control target key end

     0   :  { %s2559_s1 = inlined_call_operand.vmem [shape: bf16[128,128], index: 1, kind: input, shape index: {}]   ;;  %s2560_s0 = inlined_call_operand.vmem [shape: bf16[512,128], index: 0, kind: input, shape index: {}]   ;;  %s2561_s3 = inlined_call_operand.vmem [shape: bf16[512,128], index: 3, kind: input, shape index: {}]   ;;  %s2562_s2 = inlined_call_operand.vmem [shape: f32[1,128], index: 2, kind: input, shape index: {}]   ;;  %s2563_s4 = inlined_call_operand.vmem [shape: bf16[512,128], index: 4, kind: output, shape index: {}]  }
   0x1   :  { %v1869_v0 = vld [vmem:[%s2559_s1] sm:$0xff]   ;;  %v1870_v1 = vld [vmem:[%s2559_s1 + $0x8] sm:$0xff]   ;;  %v1871_v2 = vld [vmem:[%s2559_s1 + $0x10] sm:$0xff]  }
   0x2   :  { %1773 = vmatprep.subr.bf16.mxu0 %v1869_v0  ;;  %1853 = vmatprep.subr.bf16.mxu1 %v1869_v0  ;;  %v1872_v3 = vld [vmem:[%s2559_s1 + $0x18] sm:$0xff]   ;;  %v1877_v4 = vld [vmem:[%s2560_s0] sm:$0xff]   ;;  %v1874_v7 = vld [vmem:[%s2559_s1 + $0x28] sm:$0xff]  }
   0x3   :  { %1774 = vmatpush3.bf16.msra.mxu0 %v1869_v0  ;;  %1861 = vmatpush3.bf16.msra.mxu1 %v1869_v0  ;;  %v1878_v5 = vld [vmem:[%s2560_s0 + $0x80] sm:$0xff]   ;;  %v1875_v8 = vld [vmem:[%s2559_s1 + $0x30] sm:$0xff]   ;;  %v1876_v9 = vld [vmem:[%s2559_s1 + $0x38] sm:$0xff]  }
   0x4   :  { %1775 = vmatprep.subr.bf16.mxu0 %v1870_v1  ;;  %1854 = vmatprep.subr.bf16.mxu1 %v1870_v1  ;;  %v1873_v6 = vld [vmem:[%s2559_s1 + $0x20] sm:$0xff]   ;;  %v1879_v10 = vld [vmem:[%s2560_s0 + $0x8] sm:$0xff]   ;;  %v1881_v12 = vld [vmem:[%s2560_s0 + $0x10] sm:$0xff]  }
   0x5   :  { %1789 = vmatprep.mubr.bf16.mxu0 %v1877_v4  ;;  %1821 = vmatprep.mubr.bf16.mxu1 %v1878_v5  ;;  %v1880_v11 = vld [vmem:[%s2560_s0 + $0x88] sm:$0xff]   ;;  %v1882_v13 = vld [vmem:[%s2560_s0 + $0x90] sm:$0xff]   ;;  %v1883_v14 = vld [vmem:[%s2560_s0 + $0x18] sm:$0xff]  }
   0x6   :  { %v1884_v15 = vld [vmem:[%s2560_s0 + $0x98] sm:$0xff]   ;;  %v1885_v16 = vld [vmem:[%s2560_s0 + $0x20] sm:$0xff]   ;;  %v1887_v18 = vld [vmem:[%s2560_s0 + $0x28] sm:$0xff]  }
   0x7   :  { %1776 = vmatpush3.bf16.msra.mxu0 %v1870_v1  ;;  %1862 = vmatpush3.bf16.msra.mxu1 %v1870_v1  ;;  %v1886_v17 = vld [vmem:[%s2560_s0 + $0xa0] sm:$0xff]   ;;  %v1888_v19 = vld [vmem:[%s2560_s0 + $0xa8] sm:$0xff]   ;;  %v1889_v20 = vld [vmem:[%s2560_s0 + $0x30] sm:$0xff]  }
   0x8   :  { %1777 = vmatprep.subr.bf16.mxu0 %v1871_v2  ;;  %1855 = vmatprep.subr.bf16.mxu1 %v1871_v2  ;;  %v1890_v21 = vld [vmem:[%s2560_s0 + $0xb0] sm:$0xff]   ;;  %v1891_v22 = vld [vmem:[%s2560_s0 + $0x38] sm:$0xff]   ;;  %v1893_v24 = vld [vmem:[%s2560_s0 + $0x40] sm:$0xff]  }
   0x9   :  { %v1892_v23 = vld [vmem:[%s2560_s0 + $0xb8] sm:$0xff]   ;;  %v1894_v25 = vld [vmem:[%s2560_s0 + $0xc0] sm:$0xff]   ;;  %v1895_v26 = vld [vmem:[%s2560_s0 + $0x48] sm:$0xff]  }
   0xa   :  { %v1896_v27 = vld [vmem:[%s2560_s0 + $0xc8] sm:$0xff]   ;;  %v1897_v28 = vld [vmem:[%s2560_s0 + $0x50] sm:$0xff]   ;;  %v1899_v30 = vld [vmem:[%s2560_s0 + $0x58] sm:$0xff]  }
   0xb   :  { %1778 = vmatpush3.bf16.msra.mxu0 %v1871_v2  ;;  %1863 = vmatpush3.bf16.msra.mxu1 %v1871_v2  ;;  %v1898_v29 = vld [vmem:[%s2560_s0 + $0xd0] sm:$0xff]   ;;  %v1900_v31 = vld [vmem:[%s2560_s0 + $0xd8] sm:$0xff]   ;;  %v1901_v32 = vld [vmem:[%s2560_s0 + $0x60] sm:$0xff]  }
   0xc   :  { %1779 = vmatprep.subr.bf16.mxu0 %v1872_v3  ;;  %1856 = vmatprep.subr.bf16.mxu1 %v1872_v3  ;;  %v1902_v33 = vld [vmem:[%s2560_s0 + $0xe0] sm:$0xff]   ;;  %v1903_v34 = vld [vmem:[%s2560_s0 + $0x68] sm:$0xff]   ;;  %v1905_v36 = vld [vmem:[%s2560_s0 + $0x70] sm:$0xff]  }
   0xd   :  { %v1904_v35 = vld [vmem:[%s2560_s0 + $0xe8] sm:$0xff]   ;;  %v1906_v37 = vld [vmem:[%s2560_s0 + $0xf0] sm:$0xff]   ;;  %v1907_v38 = vld [vmem:[%s2560_s0 + $0x78] sm:$0xff]  }
   0xe   :  { %v1908_v39 = vld [vmem:[%s2560_s0 + $0xf8] sm:$0xff]   ;;  %v2057_v40 = vld [vmem:[%s2561_s3 + $0x8] sm:$0xff]   ;;  %v2067_v42 = vld [vmem:[%s2561_s3] sm:$0xff]  }
   0xf   :  { %1780 = vmatpush3.bf16.msra.mxu0 %v1872_v3  ;;  %1864 = vmatpush3.bf16.msra.mxu1 %v1872_v3  ;;  %v2062_v41 = vld [vmem:[%s2561_s3 + $0x88] sm:$0xff]   ;;  %v2072_v43 = vld [vmem:[%s2561_s3 + $0x80] sm:$0xff]   ;;  %v2077_v44 = vld [vmem:[%s2561_s3 + $0x18] sm:$0xff]   ;;  %v1389_v48 = vunpack.c.l.bf16 %v2057_v40  ;;  %v1385_v50 = vunpack.c.l.bf16 %v2067_v42  ;;  %v1390_v53 = vunpack.c.h.bf16 %v2057_v40  ;;  %v1386_v55 = vunpack.c.h.bf16 %v2067_v42 }
  0x10   :  { %1781 = vmatprep.subr.bf16.mxu0 %v1873_v6  ;;  %1857 = vmatprep.subr.bf16.mxu1 %v1873_v6  ;;  %v2082_v45 = vld [vmem:[%s2561_s3 + $0x98] sm:$0xff]   ;;  %v2087_v46 = vld [vmem:[%s2561_s3 + $0x10] sm:$0xff]   ;;  %v1453_v49 = vunpack.c.l.bf16 %v2062_v41  ;;  %v1449_v51 = vunpack.c.l.bf16 %v2072_v43  ;;  %v2101_v52 = vld [vmem:[%s2561_s3 + $0x28] sm:$0xff]   ;;  %v1454_v54 = vunpack.c.h.bf16 %v2062_v41  ;;  %v1450_v56 = vunpack.c.h.bf16 %v2072_v43 }
  0x11   :  { %v2092_v47 = vld [vmem:[%s2561_s3 + $0x90] sm:$0xff]   ;;  %v2110_v57 = vld [vmem:[%s2561_s3 + $0xa8] sm:$0xff]   ;;  %v2115_v58 = vld [vmem:[%s2561_s3 + $0x20] sm:$0xff]   ;;  %v1397_v60 = vunpack.c.l.bf16 %v2077_v44  ;;  %v1461_v61 = vunpack.c.l.bf16 %v2082_v45  ;;  %v1393_v62 = vunpack.c.l.bf16 %v2087_v46  ;;  %v1398_v1 = vunpack.c.h.bf16 %v2077_v44 }
  0x12   :  { %v2120_v59 = vld [vmem:[%s2561_s3 + $0xa0] sm:$0xff]   ;;  %v1457_v63 = vunpack.c.l.bf16 %v2092_v47  ;;  %v2129_v0 = vld [vmem:[%s2561_s3 + $0x38] sm:$0xff]   ;;  %v1462_v2 = vunpack.c.h.bf16 %v2082_v45  ;;  %v1394_v3 = vunpack.c.h.bf16 %v2087_v46  ;;  %v1458_v4 = vunpack.c.h.bf16 %v2092_v47 }
  0x13   :  { %1782 = vmatpush3.bf16.msra.mxu0 %v1873_v6  ;;  %1865 = vmatpush3.bf16.msra.mxu1 %v1873_v6  ;;  %v2138_v5 = vld [vmem:[%s2561_s3 + $0xb8] sm:$0xff]   ;;  %v2143_v6 = vld [vmem:[%s2561_s3 + $0x30] sm:$0xff]  }
  0x14   :  { %1783 = vmatprep.subr.bf16.mxu0 %v1874_v7  ;;  %1858 = vmatprep.subr.bf16.mxu1 %v1874_v7 }
  0x17   :  { %1784 = vmatpush3.bf16.msra.mxu0 %v1874_v7  ;;  %1866 = vmatpush3.bf16.msra.mxu1 %v1874_v7  ;;  %v2148_v7 = vld [vmem:[%s2561_s3 + $0xb0] sm:$0xff]  }
  0x18   :  { %1785 = vmatprep.subr.bf16.mxu0 %v1875_v8  ;;  %1859 = vmatprep.subr.bf16.mxu1 %v1875_v8 }
  0x1b   :  { %1786 = vmatpush3.bf16.msra.mxu0 %v1875_v8  ;;  %1867 = vmatpush3.bf16.msra.mxu1 %v1875_v8  ;;  %v1405_v8 = vunpack.c.l.bf16 %v2101_v52 }
  0x1c   :  { %1787 = vmatprep.subr.bf16.mxu0 %v1876_v9  ;;  %1860 = vmatprep.subr.bf16.mxu1 %v1876_v9 }
  0x1f   :  { %1788 = vmatpush3.bf16.msra.mxu0 %v1876_v9  ;;  %1868 = vmatpush3.bf16.msra.mxu1 %v1876_v9  ;;  %v1469_v9 = vunpack.c.l.bf16 %v2110_v57 }
  0x22   :  { %1790 = vmatmul.mubr.bf16.vlgmr.msra.gmra.mrb[0].mxu0 %v1879_v10  ;;  %1822 = vmatmul.mubr.bf16.vlgmr.msra.gmra.mrb[0].mxu1 %v1880_v11  ;;  %v1401_v10 = vunpack.c.l.bf16 %v2115_v58  ;;  %v1465_v11 = vunpack.c.l.bf16 %v2120_v59 }
  0x23   :  { %1793 = vmatprep.mubr.bf16.mxu0 %v1881_v12  ;;  %1825 = vmatprep.mubr.bf16.mxu1 %v1882_v13  ;;  %v2157_v12 = vld [vmem:[%s2562_s2] ss:$0 sm:$0xff]  ;;  %v1406_v13 = vunpack.c.h.bf16 %v2101_v52 }
  0x2a   :  { %1794 = vmatmul.mubr.bf16.gmra.mrb[4].mxu0 %v1883_v14  ;;  %1826 = vmatmul.mubr.bf16.gmra.mrb[4].mxu1 %v1884_v15  ;;  %v1470_v14 = vunpack.c.h.bf16 %v2110_v57  ;;  %v1402_v15 = vunpack.c.h.bf16 %v2115_v58 }
  0x2b   :  { %1797 = vmatprep.mubr.bf16.mxu0 %v1885_v16  ;;  %1829 = vmatprep.mubr.bf16.mxu1 %v1886_v17  ;;  %v1466_v16 = vunpack.c.h.bf16 %v2120_v59  ;;  %v2166_v17 = vld [vmem:[%s2561_s3 + $0x48] sm:$0xff]  }
  0x32   :  { %1798 = vmatmul.mubr.bf16.gmra.mrb[8].mxu0 %v1887_v18  ;;  %1830 = vmatmul.mubr.bf16.gmra.mrb[8].mxu1 %v1888_v19  ;;  %v2171_v18 = vld [vmem:[%s2561_s3 + $0xc8] sm:$0xff]   ;;  %v1413_v19 = vunpack.c.l.bf16 %v2129_v0 }
  0x33   :  { %1801 = vmatprep.mubr.bf16.mxu0 %v1889_v20  ;;  %1833 = vmatprep.mubr.bf16.mxu1 %v1890_v21  ;;  %v1477_v20 = vunpack.c.l.bf16 %v2138_v5 }
  0x3a   :  { %1802 = vmatmul.mubr.bf16.gmra.mrb[12].mxu0 %v1891_v22  ;;  %1834 = vmatmul.mubr.bf16.gmra.mrb[12].mxu1 %v1892_v23  ;;  %v2180_v23 = vld [vmem:[%s2561_s3 + $0x40] sm:$0xff]  }
  0x3b   :  { %1805 = vmatprep.mubr.bf16.mxu0 %v1893_v24  ;;  %1837 = vmatprep.mubr.bf16.mxu1 %v1894_v25  ;;  %v2185_v24 = vld [vmem:[%s2561_s3 + $0xc0] sm:$0xff]  }
  0x42   :  { %1806 = vmatmul.mubr.bf16.gmra.mrb[16].mxu0 %v1895_v26  ;;  %1838 = vmatmul.mubr.bf16.gmra.mrb[16].mxu1 %v1896_v27 }
  0x43   :  { %1809 = vmatprep.mubr.bf16.mxu0 %v1897_v28  ;;  %1841 = vmatprep.mubr.bf16.mxu1 %v1898_v29 }
  0x4a   :  { %1810 = vmatmul.mubr.bf16.gmra.mrb[20].mxu0 %v1899_v30  ;;  %1842 = vmatmul.mubr.bf16.gmra.mrb[20].mxu1 %v1900_v31  ;;  %v1481_v30 = vunpack.c.l.bf16 %v2185_v24 }
  0x4b   :  { %1813 = vmatprep.mubr.bf16.mxu0 %v1901_v32  ;;  %1845 = vmatprep.mubr.bf16.mxu1 %v1902_v33 }
  0x52   :  { %1814 = vmatmul.mubr.bf16.gmra.mrb[24].mxu0 %v1903_v34  ;;  %1846 = vmatmul.mubr.bf16.gmra.mrb[24].mxu1 %v1904_v35 }
  0x53   :  { %1817 = vmatprep.mubr.bf16.mxu0 %v1905_v36  ;;  %1849 = vmatprep.mubr.bf16.mxu1 %v1906_v37 }
  0x5a   :  { %1818 = vmatmul.mubr.bf16.gmra.mrb[28].mxu0 %v1907_v38  ;;  %1850 = vmatmul.mubr.bf16.gmra.mrb[28].mxu1 %v1908_v39 }
  0xf5   :  { %v1791_v25 = vpop.f32.mrb[0].mxu0  ;;  %v1823_v26 = vpop.f32.mrb[0].mxu1 }
  0xf6   :  { %v388_v31 = vadd.f32 %v1791_v25, %v2157_v12  ;;  %v516_v32 = vadd.f32 %v1823_v26, %v2157_v12  ;;  %v379_v33 = vpop.f32.mrb[1].mxu0  ;;  %v507_v34 = vpop.f32.mrb[1].mxu1 }
  0xf7   :  { %v380_v37 = vadd.f32 %v2157_v12, %v379_v33  ;;  %v508_v38 = vadd.f32 %v2157_v12, %v507_v34  ;;  %v1792_v39 = vpop.f32.mrb[2].mxu0  ;;  %v1824_v28 = vpop.f32.mrb[2].mxu1 }
  0xf8   :  { %v764_v27 = vadd.f32 %v1389_v48, %v388_v31  ;;  %v796_v25 = vadd.f32 %v1453_v49, %v516_v32  ;;  %v391_v26 = vadd.f32 %v1792_v39, %v2157_v12  ;;  %v519_v22 = vadd.f32 %v1824_v28, %v2157_v12  ;;  %v382_v21 = vpop.f32.mrb[3].mxu0  ;;  %v510_v35 = vpop.f32.mrb[3].mxu1 }
  0xf9   :  { %v762_v36 = vadd.f32 %v1385_v50, %v380_v37  ;;  %v794_v33 = vadd.f32 %v1449_v51, %v508_v38  ;;  %v383_v34 = vadd.f32 %v2157_v12, %v382_v21  ;;  %v511_v29 = vadd.f32 %v2157_v12, %v510_v35 }
  0xfa   :  { %v765_v48 = vadd.f32 %v1390_v53, %v391_v26  ;;  %v797_v49 = vadd.f32 %v1454_v54, %v519_v22  ;;  %v1422_v28 = vunpack.c.h.bf16 %v2166_v17  ;;  %v1418_v21 = vunpack.c.h.bf16 %v2180_v23 }
  0xfb   :  { %v763_v50 = vadd.f32 %v1386_v55, %v383_v34  ;;  %v795_v51 = vadd.f32 %v1450_v56, %v511_v29  ;;  %v828_v35 = vmax.f32 %v764_v27, 0.0  ;;  %v860_v40 = vmax.f32 %v796_v25, 0.0 }
  0xfc   :  { %v829_v53 = vmax.f32 %v765_v48, 0.0  ;;  %v861_v37 = vmax.f32 %v797_v49, 0.0  ;;  %v826_v41 = vmax.f32 %v762_v36, 0.0  ;;  %v858_v54 = vmax.f32 %v794_v33, 0.0  ;;  %v2226_v48 = vld [vmem:[%s2561_s3 + $0x58] sm:$0xff]  }
  0xfd   :  { %v827_v22 = vmax.f32 %v763_v50, 0.0  ;;  %v859_v38 = vmax.f32 %v795_v51, 0.0  ;;  %v1795_v39 = vpop.f32.mrb[4].mxu0  ;;  %v1827_v26 = vpop.f32.mrb[4].mxu1  ;;  %v2231_v49 = vld [vmem:[%s2561_s3 + $0xd8] sm:$0xff]  }
  0xfe   :  { %v1519_v31 = vpack.c.bf16 %v829_v53, %v828_v35  ;;  %v1599_v42 = vpack.c.bf16 %v861_v37, %v860_v40  ;;  %v404_v55 = vadd.f32 %v1795_v39, %v2157_v12  ;;  %v532_v43 = vadd.f32 %v1827_v26, %v2157_v12  ;;  %v395_v56 = vpop.f32.mrb[5].mxu0  ;;  %v523_v29 = vpop.f32.mrb[5].mxu1 }
  0xff   :  { %v1514_v34 = vpack.c.bf16 %v827_v22, %v826_v41  ;;  %v1594_v32 = vpack.c.bf16 %v859_v38, %v858_v54  ;;  %v396_v27 = vadd.f32 %v2157_v12, %v395_v56  ;;  %v524_v25 = vadd.f32 %v2157_v12, %v523_v29  ;;  %v1796_v36 = vpop.f32.mrb[6].mxu0  ;;  %v1828_v33 = vpop.f32.mrb[6].mxu1  ;;  %v2253_v41 = vld [vmem:[%s2561_s3 + $0xd0] sm:$0xff]  }
 0x100   :  { %1702 = vst [vmem:[%s2563_s4 + $0x8] sm:$0xff] %v1519_v31   ;;  %1718 = vst [vmem:[%s2563_s4 + $0x88] sm:$0xff] %v1599_v42   ;;  %v768_v50 = vadd.f32 %v1397_v60, %v404_v55  ;;  %v800_v51 = vadd.f32 %v1461_v61, %v532_v43  ;;  %v407_v35 = vadd.f32 %v1796_v36, %v2157_v12  ;;  %v398_v53 = vpop.f32.mrb[7].mxu0  ;;  %v526_v37 = vpop.f32.mrb[7].mxu1  ;;  %v2248_v31 = vld [vmem:[%s2561_s3 + $0x50] sm:$0xff]   ;;  %v1429_v26 = vunpack.c.l.bf16 %v2226_v48 }
 0x101   :  { %v535_v40 = vadd.f32 %v1828_v33, %v2157_v12  ;;  %1515 = vst [vmem:[%s2563_s4] sm:$0xff] %v1514_v34   ;;  %1717 = vst [vmem:[%s2563_s4 + $0x80] sm:$0xff] %v1594_v32   ;;  %v766_v60 = vadd.f32 %v1393_v62, %v396_v27  ;;  %v798_v61 = vadd.f32 %v1457_v63, %v524_v25  ;;  %v1493_v32 = vunpack.c.l.bf16 %v2231_v49 }
 0x102   :  { %v399_v54 = vadd.f32 %v2157_v12, %v398_v53  ;;  %v527_v22 = vadd.f32 %v2157_v12, %v526_v37  ;;  %v769_v38 = vadd.f32 %v1398_v1, %v407_v35  ;;  %v1425_v42 = vunpack.c.l.bf16 %v2248_v31 }
 0x103   :  { %v801_v39 = vadd.f32 %v1462_v2, %v535_v40  ;;  %v1489_v55 = vunpack.c.l.bf16 %v2253_v41  ;;  %v832_v43 = vmax.f32 %v768_v50, 0.0  ;;  %v864_v44 = vmax.f32 %v800_v51, 0.0 }
 0x104   :  { %v767_v62 = vadd.f32 %v1394_v3, %v399_v54  ;;  %v799_v63 = vadd.f32 %v1458_v4, %v527_v22  ;;  %v833_v1 = vmax.f32 %v769_v38, 0.0  ;;  %v830_v45 = vmax.f32 %v766_v60, 0.0 }
 0x105   :  { %v865_v56 = vmax.f32 %v801_v39, 0.0  ;;  %v862_v2 = vmax.f32 %v798_v61, 0.0  ;;  %v1799_v27 = vpop.f32.mrb[8].mxu0  ;;  %v1831_v25 = vpop.f32.mrb[8].mxu1 }
 0x106   :  { %v831_v29 = vmax.f32 %v767_v62, 0.0  ;;  %v863_v34 = vmax.f32 %v799_v63, 0.0  ;;  %v1529_v36 = vpack.c.bf16 %v833_v1, %v832_v43  ;;  %v420_v3 = vadd.f32 %v1799_v27, %v2157_v12  ;;  %v411_v4 = vpop.f32.mrb[9].mxu0  ;;  %v539_v33 = vpop.f32.mrb[9].mxu1 }
 0x107   :  { %v1609_v46 = vpack.c.bf16 %v865_v56, %v864_v44  ;;  %v548_v47 = vadd.f32 %v1831_v25, %v2157_v12  ;;  %v412_v50 = vadd.f32 %v2157_v12, %v411_v4  ;;  %v540_v51 = vadd.f32 %v2157_v12, %v539_v33  ;;  %v1800_v53 = vpop.f32.mrb[10].mxu0  ;;  %v1832_v37 = vpop.f32.mrb[10].mxu1 }
 0x108   :  { %v1524_v35 = vpack.c.bf16 %v831_v29, %v830_v45  ;;  %v1604_v40 = vpack.c.bf16 %v863_v34, %v862_v2  ;;  %1704 = vst [vmem:[%s2563_s4 + $0x18] sm:$0xff] %v1529_v36   ;;  %v772_v60 = vadd.f32 %v1405_v8, %v420_v3  ;;  %v423_v54 = vadd.f32 %v1800_v53, %v2157_v12  ;;  %v414_v38 = vpop.f32.mrb[11].mxu0  ;;  %v542_v39 = vpop.f32.mrb[11].mxu1  ;;  %v2326_v53 = vld [vmem:[%s2561_s3 + $0x68] sm:$0xff]  }
 0x109   :  { %1720 = vst [vmem:[%s2563_s4 + $0x98] sm:$0xff] %v1609_v46   ;;  %v804_v61 = vadd.f32 %v1469_v9, %v548_v47  ;;  %v551_v22 = vadd.f32 %v1832_v37, %v2157_v12  ;;  %v770_v8 = vadd.f32 %v1401_v10, %v412_v50  ;;  %v802_v9 = vadd.f32 %v1465_v11, %v540_v51  ;;  %v2331_v37 = vld [vmem:[%s2561_s3 + $0xe8] sm:$0xff]  }
 0x10a   :  { %1703 = vst [vmem:[%s2563_s4 + $0x10] sm:$0xff] %v1524_v35   ;;  %1719 = vst [vmem:[%s2563_s4 + $0x90] sm:$0xff] %v1604_v40   ;;  %v415_v62 = vadd.f32 %v2157_v12, %v414_v38  ;;  %v543_v63 = vadd.f32 %v2157_v12, %v542_v39  ;;  %v773_v43 = vadd.f32 %v1406_v13, %v423_v54  ;;  %v1430_v1 = vunpack.c.h.bf16 %v2226_v48 }
 0x10b   :  { %v805_v44 = vadd.f32 %v1470_v14, %v551_v22  ;;  %v1494_v56 = vunpack.c.h.bf16 %v2231_v49  ;;  %v1426_v45 = vunpack.c.h.bf16 %v2248_v31  ;;  %v1490_v2 = vunpack.c.h.bf16 %v2253_v41 }
 0x10c   :  { %v771_v10 = vadd.f32 %v1402_v15, %v415_v62  ;;  %v803_v11 = vadd.f32 %v1466_v16, %v543_v63  ;;  %v836_v29 = vmax.f32 %v772_v60, 0.0  ;;  %v868_v52 = vmax.f32 %v804_v61, 0.0 }
 0x10d   :  { %v837_v13 = vmax.f32 %v773_v43, 0.0  ;;  %v869_v34 = vmax.f32 %v805_v44, 0.0  ;;  %v834_v57 = vmax.f32 %v770_v8, 0.0  ;;  %v866_v14 = vmax.f32 %v802_v9, 0.0  ;;  %v1803_v36 = vpop.f32.mrb[12].mxu0  ;;  %v1835_v46 = vpop.f32.mrb[12].mxu1 }
 0x10e   :  { %v835_v27 = vmax.f32 %v771_v10, 0.0  ;;  %v867_v25 = vmax.f32 %v803_v11, 0.0  ;;  %v436_v15 = vadd.f32 %v1803_v36, %v2157_v12  ;;  %v564_v59 = vadd.f32 %v1835_v46, %v2157_v12  ;;  %v427_v16 = vpop.f32.mrb[13].mxu0  ;;  %v555_v47 = vpop.f32.mrb[13].mxu1  ;;  %v2348_v8 = vld [vmem:[%s2561_s3 + $0x60] sm:$0xff]  }
 0x10f   :  { %v1539_v3 = vpack.c.bf16 %v837_v13, %v836_v29  ;;  %v1619_v58 = vpack.c.bf16 %v869_v34, %v868_v52  ;;  %v428_v35 = vadd.f32 %v2157_v12, %v427_v16  ;;  %v556_v40 = vadd.f32 %v2157_v12, %v555_v47  ;;  %v1804_v50 = vpop.f32.mrb[14].mxu0  ;;  %v1836_v51 = vpop.f32.mrb[14].mxu1  ;;  %v2353_v9 = vld [vmem:[%s2561_s3 + $0xe0] sm:$0xff]  }
 0x110   :  { %v1534_v4 = vpack.c.bf16 %v835_v27, %v834_v57  ;;  %v1614_v33 = vpack.c.bf16 %v867_v25, %v866_v14  ;;  %v776_v60 = vadd.f32 %v1413_v19, %v436_v15  ;;  %v808_v61 = vadd.f32 %v1477_v20, %v564_v59  ;;  %v430_v38 = vpop.f32.mrb[15].mxu0  ;;  %v558_v39 = vpop.f32.mrb[15].mxu1 }
 0x111   :  { %1706 = vst [vmem:[%s2563_s4 + $0x28] sm:$0xff] %v1539_v3   ;;  %1722 = vst [vmem:[%s2563_s4 + $0xa8] sm:$0xff] %v1619_v58   ;;  %v439_v54 = vadd.f32 %v1804_v50, %v2157_v12  ;;  %v567_v22 = vadd.f32 %v1836_v51, %v2157_v12  ;;  %v2564_v19 = vunpack.c.l.bf16 %v2143_v6  ;;  %v2565_v62 = vunpack.c.l.bf16 %v2148_v7 }
 0x112   :  { %1705 = vst [vmem:[%s2563_s4 + $0x20] sm:$0xff] %v1534_v4   ;;  %1721 = vst [vmem:[%s2563_s4 + $0xa0] sm:$0xff] %v1614_v33   ;;  %v431_v43 = vadd.f32 %v2157_v12, %v430_v38  ;;  %v559_v44 = vadd.f32 %v2157_v12, %v558_v39  ;;  %v2566_v10 = vunpack.c.h.bf16 %v2129_v0  ;;  %v2567_v29 = vunpack.c.h.bf16 %v2138_v5 }
 0x113   :  { %v774_v20 = vadd.f32 %v2564_v19, %v428_v35  ;;  %v806_v63 = vadd.f32 %v2565_v62, %v556_v40  ;;  %v1437_v13 = vunpack.c.l.bf16 %v2326_v53  ;;  %v1501_v34 = vunpack.c.l.bf16 %v2331_v37 }
 0x114   :  { %v777_v11 = vadd.f32 %v2566_v10, %v439_v54  ;;  %v809_v52 = vadd.f32 %v2567_v29, %v567_v22  ;;  %v2568_v57 = vunpack.c.h.bf16 %v2143_v6  ;;  %v2569_v27 = vunpack.c.h.bf16 %v2148_v7 }
 0x115   :  { %v1433_v36 = vunpack.c.l.bf16 %v2348_v8  ;;  %v1497_v46 = vunpack.c.l.bf16 %v2353_v9  ;;  %v840_v3 = vmax.f32 %v776_v60, 0.0  ;;  %v872_v0 = vmax.f32 %v808_v61, 0.0  ;;  %v1807_v4 = vpop.f32.mrb[16].mxu0  ;;  %v1839_v33 = vpop.f32.mrb[16].mxu1 }
 0x116   :  { %v775_v14 = vadd.f32 %v2568_v57, %v431_v43  ;;  %v807_v25 = vadd.f32 %v2569_v27, %v559_v44  ;;  %v841_v58 = vmax.f32 %v777_v11, 0.0  ;;  %v873_v15 = vmax.f32 %v809_v52, 0.0  ;;  %v443_v50 = vpop.f32.mrb[17].mxu0  ;;  %v571_v51 = vpop.f32.mrb[17].mxu1 }
 0x117   :  { %v838_v5 = vmax.f32 %v774_v20, 0.0  ;;  %v870_v59 = vmax.f32 %v806_v63, 0.0  ;;  %v452_v40 = vadd.f32 %v1807_v4, %v2157_v12  ;;  %v580_v7 = vadd.f32 %v1839_v33, %v2157_v12  ;;  %v1808_v38 = vpop.f32.mrb[18].mxu0  ;;  %v1840_v39 = vpop.f32.mrb[18].mxu1 }
 0x118   :  { %v839_v16 = vmax.f32 %v775_v14, 0.0  ;;  %v871_v47 = vmax.f32 %v807_v25, 0.0  ;;  %v1549_v35 = vpack.c.bf16 %v841_v58, %v840_v3  ;;  %v1629_v6 = vpack.c.bf16 %v873_v15, %v872_v0  ;;  %v446_v10 = vpop.f32.mrb[19].mxu0  ;;  %v574_v11 = vpop.f32.mrb[19].mxu1 }
 0x119   :  { %v444_v60 = vadd.f32 %v2157_v12, %v443_v50  ;;  %v572_v61 = vadd.f32 %v2157_v12, %v571_v51  ;;  %v2570_v19 = vunpack.c.l.bf16 %v2166_v17  ;;  %v2571_v62 = vunpack.c.l.bf16 %v2171_v18 }
 0x11a   :  { %v1544_v54 = vpack.c.bf16 %v839_v16, %v838_v5  ;;  %v1624_v22 = vpack.c.bf16 %v871_v47, %v870_v59  ;;  %1708 = vst [vmem:[%s2563_s4 + $0x38] sm:$0xff] %v1549_v35   ;;  %1724 = vst [vmem:[%s2563_s4 + $0xb8] sm:$0xff] %v1629_v6   ;;  %v455_v43 = vadd.f32 %v1808_v38, %v2157_v12  ;;  %v2572_v29 = vunpack.c.l.bf16 %v2180_v23 }
 0x11b   :  { %v780_v20 = vadd.f32 %v2570_v19, %v452_v40  ;;  %v812_v63 = vadd.f32 %v2571_v62, %v580_v7  ;;  %v583_v44 = vadd.f32 %v1840_v39, %v2157_v12  ;;  %v810_v57 = vadd.f32 %v1481_v30, %v572_v61  ;;  %v2426_v62 = vld [vmem:[%s2561_s3 + $0x78] sm:$0xff]  }
 0x11c   :  { %1707 = vst [vmem:[%s2563_s4 + $0x30] sm:$0xff] %v1544_v54   ;;  %1723 = vst [vmem:[%s2563_s4 + $0xb0] sm:$0xff] %v1624_v22   ;;  %v778_v52 = vadd.f32 %v2572_v29, %v444_v60  ;;  %v447_v14 = vadd.f32 %v2157_v12, %v446_v10  ;;  %v575_v27 = vadd.f32 %v2157_v12, %v574_v11  ;;  %v2573_v3 = vunpack.c.h.bf16 %v2171_v18 }
 0x11d   :  { %v781_v25 = vadd.f32 %v1422_v28, %v455_v43  ;;  %v1438_v58 = vunpack.c.h.bf16 %v2326_v53  ;;  %v1502_v15 = vunpack.c.h.bf16 %v2331_v37  ;;  %v2574_v59 = vunpack.c.h.bf16 %v2185_v24  ;;  %v1811_v7 = vpop.f32.mrb[20].mxu0  ;;  %v1843_v50 = vpop.f32.mrb[20].mxu1 }
 0x11e   :  { %v813_v0 = vadd.f32 %v2573_v3, %v583_v44  ;;  %v779_v5 = vadd.f32 %v1418_v21, %v447_v14  ;;  %v1434_v16 = vunpack.c.h.bf16 %v2348_v8  ;;  %v1498_v47 = vunpack.c.h.bf16 %v2353_v9  ;;  %v459_v54 = vpop.f32.mrb[21].mxu0  ;;  %v587_v22 = vpop.f32.mrb[21].mxu1  ;;  %v2453_v14 = vld [vmem:[%s2561_s3 + $0xf0] sm:$0xff]  }
 0x11f   :  { %v811_v30 = vadd.f32 %v2574_v59, %v575_v27  ;;  %v844_v4 = vmax.f32 %v780_v20, 0.0  ;;  %v876_v17 = vmax.f32 %v812_v63, 0.0  ;;  %v845_v28 = vmax.f32 %v781_v25, 0.0  ;;  %v1812_v19 = vpop.f32.mrb[22].mxu0  ;;  %v1844_v20 = vpop.f32.mrb[22].mxu1  ;;  %v2431_v63 = vld [vmem:[%s2561_s3 + $0xf8] sm:$0xff]  }
 0x120   :  { %v877_v33 = vmax.f32 %v813_v0, 0.0  ;;  %v842_v18 = vmax.f32 %v778_v52, 0.0  ;;  %v874_v35 = vmax.f32 %v810_v57, 0.0  ;;  %v843_v6 = vmax.f32 %v779_v5, 0.0  ;;  %v462_v29 = vpop.f32.mrb[23].mxu0  ;;  %v590_v52 = vpop.f32.mrb[23].mxu1 }
 0x121   :  { %v875_v40 = vmax.f32 %v811_v30, 0.0  ;;  %v1559_v51 = vpack.c.bf16 %v845_v28, %v844_v4  ;;  %v468_v21 = vadd.f32 %v1811_v7, %v2157_v12  ;;  %v596_v24 = vadd.f32 %v1843_v50, %v2157_v12  ;;  %v2448_v57 = vld [vmem:[%s2561_s3 + $0x70] sm:$0xff]  }
 0x122   :  { %v1639_v23 = vpack.c.bf16 %v877_v33, %v876_v17  ;;  %v1554_v60 = vpack.c.bf16 %v843_v6, %v842_v18  ;;  %v460_v38 = vadd.f32 %v2157_v12, %v459_v54  ;;  %v588_v39 = vadd.f32 %v2157_v12, %v587_v22 }
 0x123   :  { %v1634_v61 = vpack.c.bf16 %v875_v40, %v874_v35  ;;  %1710 = vst [vmem:[%s2563_s4 + $0x48] sm:$0xff] %v1559_v51   ;;  %v784_v43 = vadd.f32 %v1429_v26, %v468_v21  ;;  %v816_v44 = vadd.f32 %v1493_v32, %v596_v24  ;;  %v471_v10 = vadd.f32 %v1812_v19, %v2157_v12 }
 0x124   :  { %1726 = vst [vmem:[%s2563_s4 + $0xc8] sm:$0xff] %v1639_v23   ;;  %v599_v11 = vadd.f32 %v1844_v20, %v2157_v12  ;;  %1709 = vst [vmem:[%s2563_s4 + $0x40] sm:$0xff] %v1554_v60   ;;  %v782_v26 = vadd.f32 %v1425_v42, %v460_v38  ;;  %v814_v32 = vadd.f32 %v1489_v55, %v588_v39  ;;  %v1445_v5 = vunpack.c.l.bf16 %v2426_v62 }
 0x125   :  { %1725 = vst [vmem:[%s2563_s4 + $0xc0] sm:$0xff] %v1634_v61   ;;  %v463_v27 = vadd.f32 %v2157_v12, %v462_v29  ;;  %v591_v25 = vadd.f32 %v2157_v12, %v590_v52  ;;  %v785_v3 = vadd.f32 %v1430_v1, %v471_v10  ;;  %v1509_v59 = vunpack.c.l.bf16 %v2431_v63  ;;  %v1815_v35 = vpop.f32.mrb[24].mxu0  ;;  %v1847_v6 = vpop.f32.mrb[24].mxu1 }
 0x126   :  { %v817_v0 = vadd.f32 %v1494_v56, %v599_v11  ;;  %v1441_v30 = vunpack.c.l.bf16 %v2448_v57  ;;  %v1505_v4 = vunpack.c.l.bf16 %v2453_v14  ;;  %v848_v17 = vmax.f32 %v784_v43, 0.0  ;;  %v603_v7 = vpop.f32.mrb[25].mxu1 }
 0x127   :  { %v783_v42 = vadd.f32 %v1426_v45, %v463_v27  ;;  %v815_v55 = vadd.f32 %v1490_v2, %v591_v25  ;;  %v880_v48 = vmax.f32 %v816_v44, 0.0  ;;  %v849_v1 = vmax.f32 %v785_v3, 0.0  ;;  %v475_v2 = vpop.f32.mrb[25].mxu0  ;;  %v1848_v54 = vpop.f32.mrb[26].mxu1 }
 0x128   :  { %v881_v28 = vmax.f32 %v817_v0, 0.0  ;;  %v846_v49 = vmax.f32 %v782_v26, 0.0  ;;  %v878_v56 = vmax.f32 %v814_v32, 0.0  ;;  %v484_v45 = vadd.f32 %v1815_v35, %v2157_v12  ;;  %v1816_v24 = vpop.f32.mrb[26].mxu0  ;;  %v606_v19 = vpop.f32.mrb[27].mxu1 }
 0x129   :  { %v847_v33 = vmax.f32 %v783_v42, 0.0  ;;  %v879_v18 = vmax.f32 %v815_v55, 0.0  ;;  %v1569_v40 = vpack.c.bf16 %v849_v1, %v848_v17  ;;  %v612_v41 = vadd.f32 %v1847_v6, %v2157_v12  ;;  %v478_v39 = vpop.f32.mrb[27].mxu0 }
 0x12a   :  { %v1649_v31 = vpack.c.bf16 %v881_v28, %v880_v48  ;;  %v476_v23 = vadd.f32 %v2157_v12, %v475_v2  ;;  %v604_v21 = vadd.f32 %v2157_v12, %v603_v7  ;;  %v788_v22 = vadd.f32 %v1437_v13, %v484_v45 }
 0x12b   :  { %v1564_v50 = vpack.c.bf16 %v847_v33, %v846_v49  ;;  %v1644_v51 = vpack.c.bf16 %v879_v18, %v878_v56  ;;  %1712 = vst [vmem:[%s2563_s4 + $0x58] sm:$0xff] %v1569_v40   ;;  %v820_v60 = vadd.f32 %v1501_v34, %v612_v41  ;;  %v487_v61 = vadd.f32 %v1816_v24, %v2157_v12 }
 0x12c   :  { %1728 = vst [vmem:[%s2563_s4 + $0xd8] sm:$0xff] %v1649_v31   ;;  %v615_v38 = vadd.f32 %v1848_v54, %v2157_v12  ;;  %v786_v13 = vadd.f32 %v1433_v36, %v476_v23  ;;  %v818_v34 = vadd.f32 %v1497_v46, %v604_v21  ;;  %v479_v20 = vadd.f32 %v2157_v12, %v478_v39 }
 0x12d   :  { %1711 = vst [vmem:[%s2563_s4 + $0x50] sm:$0xff] %v1564_v50   ;;  %1727 = vst [vmem:[%s2563_s4 + $0xd0] sm:$0xff] %v1644_v51   ;;  %v607_v43 = vadd.f32 %v2157_v12, %v606_v19  ;;  %v789_v44 = vadd.f32 %v1438_v58, %v487_v61  ;;  %v1446_v11 = vunpack.c.h.bf16 %v2426_v62  ;;  %v1510_v29 = vunpack.c.h.bf16 %v2431_v63  ;;  %v1819_v0 = vpop.f32.mrb[28].mxu0  ;;  %v1851_v42 = vpop.f32.mrb[28].mxu1 }
 0x12e   :  { %v821_v10 = vadd.f32 %v1502_v15, %v615_v38  ;;  %v787_v36 = vadd.f32 %v1434_v16, %v479_v20  ;;  %v1442_v52 = vunpack.c.h.bf16 %v2448_v57  ;;  %v1506_v26 = vunpack.c.h.bf16 %v2453_v14  ;;  %v619_v17 = vpop.f32.mrb[29].mxu1 }
 0x12f   :  { %v819_v46 = vadd.f32 %v1498_v47, %v607_v43  ;;  %v852_v32 = vmax.f32 %v788_v22, 0.0  ;;  %v884_v53 = vmax.f32 %v820_v60, 0.0  ;;  %v853_v58 = vmax.f32 %v789_v44, 0.0  ;;  %v491_v47 = vpop.f32.mrb[29].mxu0  ;;  %v1852_v33 = vpop.f32.mrb[30].mxu1 }
 0x130   :  { %v885_v27 = vmax.f32 %v821_v10, 0.0  ;;  %v850_v37 = vmax.f32 %v786_v13, 0.0  ;;  %v882_v15 = vmax.f32 %v818_v34, 0.0  ;;  %v851_v25 = vmax.f32 %v787_v36, 0.0  ;;  %v1820_v56 = vpop.f32.mrb[30].mxu0  ;;  %v622_v45 = vpop.f32.mrb[31].mxu1 }
 0x131   :  { %v883_v3 = vmax.f32 %v819_v46, 0.0  ;;  %v1579_v55 = vpack.c.bf16 %v853_v58, %v852_v32  ;;  %v500_v16 = vadd.f32 %v1819_v0, %v2157_v12  ;;  %v628_v9 = vadd.f32 %v1851_v42, %v2157_v12  ;;  %v494_v31 = vpop.f32.mrb[31].mxu0 }
 0x132   :  { %v1659_v8 = vpack.c.bf16 %v885_v27, %v884_v53  ;;  %v1574_v48 = vpack.c.bf16 %v851_v25, %v850_v37  ;;  %v492_v28 = vadd.f32 %v2157_v12, %v491_v47  ;;  %v620_v49 = vadd.f32 %v2157_v12, %v619_v17 }
 0x133   :  { %v1654_v1 = vpack.c.bf16 %v883_v3, %v882_v15  ;;  %1714 = vst [vmem:[%s2563_s4 + $0x68] sm:$0xff] %v1579_v55   ;;  %v792_v18 = vadd.f32 %v1445_v5, %v500_v16  ;;  %v824_v35 = vadd.f32 %v1509_v59, %v628_v9  ;;  %v503_v6 = vadd.f32 %v1820_v56, %v2157_v12 }
 0x134   :  { %1730 = vst [vmem:[%s2563_s4 + $0xe8] sm:$0xff] %v1659_v8   ;;  %v631_v40 = vadd.f32 %v1852_v33, %v2157_v12  ;;  %1713 = vst [vmem:[%s2563_s4 + $0x60] sm:$0xff] %v1574_v48   ;;  %v790_v62 = vadd.f32 %v1441_v30, %v492_v28  ;;  %v822_v63 = vadd.f32 %v1505_v4, %v620_v49 }
 0x135   :  { %1729 = vst [vmem:[%s2563_s4 + $0xe0] sm:$0xff] %v1654_v1   ;;  %v495_v5 = vadd.f32 %v2157_v12, %v494_v31  ;;  %v623_v59 = vadd.f32 %v2157_v12, %v622_v45  ;;  %v793_v41 = vadd.f32 %v1446_v11, %v503_v6  ;;  %v856_v51 = vmax.f32 %v792_v18, 0.0 }
 0x136   :  { %v825_v2 = vadd.f32 %v1510_v29, %v631_v40  ;;  %v888_v23 = vmax.f32 %v824_v35, 0.0  ;;  %v854_v54 = vmax.f32 %v790_v62, 0.0  ;;  %v886_v22 = vmax.f32 %v822_v63, 0.0 }
 0x137   :  { %v791_v7 = vadd.f32 %v1442_v52, %v495_v5  ;;  %v823_v50 = vadd.f32 %v1506_v26, %v623_v59  ;;  %v857_v21 = vmax.f32 %v793_v41, 0.0 }
 0x138   :  { %v889_v24 = vmax.f32 %v825_v2, 0.0 }
 0x139   :  { %v855_v60 = vmax.f32 %v791_v7, 0.0  ;;  %v887_v57 = vmax.f32 %v823_v50, 0.0  ;;  %v1589_v30 = vpack.c.bf16 %v857_v21, %v856_v51 }
 0x13a   :  { %v1669_v61 = vpack.c.bf16 %v889_v24, %v888_v23 }
 0x13b   :  { %v1584_v14 = vpack.c.bf16 %v855_v60, %v854_v54  ;;  %v1664_v4 = vpack.c.bf16 %v887_v57, %v886_v22  ;;  %1716 = vst [vmem:[%s2563_s4 + $0x78] sm:$0xff] %v1589_v30  }
 0x13c   :  { %1732 = vst [vmem:[%s2563_s4 + $0xf8] sm:$0xff] %v1669_v61  }
 0x13d   :  { %1715 = vst [vmem:[%s2563_s4 + $0x70] sm:$0xff] %v1584_v14   ;;  %1731 = vst [vmem:[%s2563_s4 + $0xf0] sm:$0xff] %v1664_v4  }

// kernel: run.12
= control target key start
LH: loop header
LB: loop body
LE: loop exit
PB: predicated region body
PF: predicated region fallthrough
CT: control target
= control target key end

     0   :  { %vm110_vm0 = vcmask 523264   ;;  %s563_s1 = inlined_call_operand.vmem [shape: bf16[64,128], index: 1, kind: input, shape index: {}]   ;;  %s564_s0 = inlined_call_operand.vmem [shape: bf16[128,64], index: 0, kind: input, shape index: {}]   ;;  %s565_s2 = inlined_call_operand.vmem [shape: f32[1,128], index: 2, kind: input, shape index: {}]   ;;  %s566_s3 = inlined_call_operand.vmem [shape: bf16[128,128], index: 3, kind: output, shape index: {}]  }
   0x1   :  { %v460_v0 = vld [vmem:[%s563_s1] sm:$0xff]   ;;  %v461_v1 = vld [vmem:[%s563_s1 + $0x8] sm:$0xff]   ;;  %v462_v2 = vld [vmem:[%s563_s1 + $0x10] sm:$0xff]  }
   0x2   :  { %428 = vmatprep.subr.bf16.mxu0 %v460_v0  ;;  %452 = vmatprep.subr.bf16.mxu1 %v460_v0  ;;  %v464_v3 = vld [vmem:[%s564_s0] sm:$0xff]   ;;  %v463_v5 = vld [vmem:[%s563_s1 + $0x18] sm:$0xff]   ;;  %v466_v6 = vld [vmem:[%s564_s0 + $0x8] sm:$0xff]  }
   0x3   :  { %429 = vmatpush3.bf16.msra.mxu0 %v460_v0  ;;  %456 = vmatpush3.bf16.msra.mxu1 %v460_v0  ;;  %v465_v4 = vld [vmem:[%s564_s0 + $0x20] sm:$0xff]   ;;  %v467_v7 = vld [vmem:[%s564_s0 + $0x28] sm:$0xff]   ;;  %v468_v8 = vld [vmem:[%s564_s0 + $0x10] sm:$0xff]  }
   0x4   :  { %430 = vmatprep.subr.bf16.mxu0 %v461_v1  ;;  %453 = vmatprep.subr.bf16.mxu1 %v461_v1  ;;  %v469_v9 = vld [vmem:[%s564_s0 + $0x30] sm:$0xff]   ;;  %v470_v10 = vld [vmem:[%s564_s0 + $0x18] sm:$0xff]   ;;  %v316_v13 = vld [vmem:[%s565_s2] ss:$0 sm:$0xff] }
   0x5   :  { %436 = vmatprep.mubr.msk.bf16.mxu0 %vm110_vm0, %v464_v3  ;;  %444 = vmatprep.mubr.msk.bf16.mxu1 %vm110_vm0, %v465_v4  ;;  %v471_v11 = vld [vmem:[%s564_s0 + $0x38] sm:$0xff]  }
   0x7   :  { %431 = vmatpush3.bf16.msra.mxu0 %v461_v1  ;;  %457 = vmatpush3.bf16.msra.mxu1 %v461_v1 }
   0x8   :  { %432 = vmatprep.subr.bf16.mxu0 %v462_v2  ;;  %454 = vmatprep.subr.bf16.mxu1 %v462_v2 }
   0xb   :  { %433 = vmatpush3.bf16.msra.mxu0 %v462_v2  ;;  %458 = vmatpush3.bf16.msra.mxu1 %v462_v2 }
   0xc   :  { %434 = vmatprep.subr.bf16.mxu0 %v463_v5  ;;  %455 = vmatprep.subr.bf16.mxu1 %v463_v5 }
   0xf   :  { %435 = vmatpush3.bf16.msra.mxu0 %v463_v5  ;;  %459 = vmatpush3.bf16.msra.mxu1 %v463_v5 }
  0x12   :  { %437 = vmatmul.mubr.msk.bf16.vlgmr.msra.gmra.mrb[0].mxu0 %vm110_vm0, %v466_v6  ;;  %445 = vmatmul.mubr.msk.bf16.vlgmr.msra.gmra.mrb[0].mxu1 %vm110_vm0, %v467_v7 }
  0x13   :  { %440 = vmatprep.mubr.msk.bf16.mxu0 %vm110_vm0, %v468_v8  ;;  %448 = vmatprep.mubr.msk.bf16.mxu1 %vm110_vm0, %v469_v9 }
  0x1a   :  { %441 = vmatmul.mubr.msk.bf16.gmra.mrb[4].mxu0 %vm110_vm0, %v470_v10  ;;  %449 = vmatmul.mubr.msk.bf16.gmra.mrb[4].mxu1 %vm110_vm0, %v471_v11 }
  0xe5   :  { %v438_v12 = vpop.f32.mrb[0].mxu0  ;;  %v446_v14 = vpop.f32.mrb[0].mxu1 }
  0xe6   :  { %v169_v15 = vpop.f32.mrb[1].mxu0  ;;  %v201_v16 = vpop.f32.mrb[1].mxu1  ;;  %v178_v19 = vadd.f32 %v438_v12, %v316_v13  ;;  %v210_v20 = vadd.f32 %v446_v14, %v316_v13 }
  0xe7   :  { %v439_v17 = vpop.f32.mrb[2].mxu0  ;;  %v447_v18 = vpop.f32.mrb[2].mxu1  ;;  %v170_v25 = vadd.f32 %v316_v13, %v169_v15  ;;  %v202_v26 = vadd.f32 %v316_v13, %v201_v16 }
  0xe8   :  { %v181_v21 = vadd.f32 %v439_v17, %v316_v13  ;;  %v213_v22 = vadd.f32 %v447_v18, %v316_v13  ;;  %v172_v23 = vpop.f32.mrb[3].mxu0  ;;  %v204_v24 = vpop.f32.mrb[3].mxu1 }
  0xe9   :  { %v173_v27 = vadd.f32 %v316_v13, %v172_v23  ;;  %v205_v28 = vadd.f32 %v316_v13, %v204_v24 }
  0xea   :  { %v377_v29 = vpack.c.bf16 %v181_v21, %v178_v19  ;;  %v397_v30 = vpack.c.bf16 %v213_v22, %v210_v20 }
  0xeb   :  { %v372_v31 = vpack.c.bf16 %v173_v27, %v170_v25  ;;  %v392_v32 = vpack.c.bf16 %v205_v28, %v202_v26 }
  0xec   :  { %409 = vst [vmem:[%s566_s3 + $0x8] sm:$0xff] %v377_v29   ;;  %413 = vst [vmem:[%s566_s3 + $0x28] sm:$0xff] %v397_v30  }
  0xed   :  { %373 = vst [vmem:[%s566_s3] sm:$0xff] %v372_v31   ;;  %412 = vst [vmem:[%s566_s3 + $0x20] sm:$0xff] %v392_v32   ;;  %v442_v33 = vpop.f32.mrb[4].mxu0  ;;  %v450_v34 = vpop.f32.mrb[4].mxu1 }
  0xee   :  { %v185_v35 = vpop.f32.mrb[5].mxu0  ;;  %v217_v36 = vpop.f32.mrb[5].mxu1  ;;  %v194_v39 = vadd.f32 %v442_v33, %v316_v13  ;;  %v226_v40 = vadd.f32 %v450_v34, %v316_v13 }
  0xef   :  { %v443_v37 = vpop.f32.mrb[6].mxu0  ;;  %v451_v38 = vpop.f32.mrb[6].mxu1  ;;  %v186_v45 = vadd.f32 %v316_v13, %v185_v35  ;;  %v218_v46 = vadd.f32 %v316_v13, %v217_v36 }
  0xf0   :  { %v197_v41 = vadd.f32 %v443_v37, %v316_v13  ;;  %v229_v42 = vadd.f32 %v451_v38, %v316_v13  ;;  %v188_v43 = vpop.f32.mrb[7].mxu0  ;;  %v220_v44 = vpop.f32.mrb[7].mxu1 }
  0xf1   :  { %v189_v47 = vadd.f32 %v316_v13, %v188_v43  ;;  %v221_v48 = vadd.f32 %v316_v13, %v220_v44 }
  0xf2   :  { %v387_v49 = vpack.c.bf16 %v197_v41, %v194_v39  ;;  %v407_v50 = vpack.c.bf16 %v229_v42, %v226_v40 }
  0xf3   :  { %v382_v51 = vpack.c.bf16 %v189_v47, %v186_v45  ;;  %v402_v52 = vpack.c.bf16 %v221_v48, %v218_v46 }
  0xf4   :  { %411 = vst [vmem:[%s566_s3 + $0x18] sm:$0xff] %v387_v49   ;;  %415 = vst [vmem:[%s566_s3 + $0x38] sm:$0xff] %v407_v50  }
  0xf5   :  { %410 = vst [vmem:[%s566_s3 + $0x10] sm:$0xff] %v382_v51   ;;  %414 = vst [vmem:[%s566_s3 + $0x30] sm:$0xff] %v402_v52  }

// kernel: run.8
= control target key start
LH: loop header
LB: loop body
LE: loop exit
PB: predicated region body
PF: predicated region fallthrough
CT: control target
= control target key end

     0   :  { %s4681_s12 = smov 0   ;;  %s4683_s13 = smov 0   ;;  %s5554_s0 = inlined_call_operand.vmem [shape: bf16[2,18,16,384], index: 0, kind: input, shape index: {}]   ;;  %s5555_s1 = inlined_call_operand.vmem [shape: bf16[3,384,128], index: 1, kind: input, shape index: {}]   ;;  %s5556_s2 = inlined_call_operand.vmem [shape: f32[1,128], index: 2, kind: input, shape index: {}]   ;;  %s5557_s3 = inlined_call_operand.vmem [shape: bf16[2,256,128], index: 3, kind: output, shape index: {}]  }
   0x1   :  { %s4685_s14 = smov 0  }
   0x2 LB: > { %s25_s15 = sadd.s32 1, %s4655_s13  ;;  %p3103_p0 = scmp.ge.s32.totalorder %s4659_s14, 1  ;;  %s4659_s14 = sphi %s4685_s14, %s13_s14   ;;  %s4655_s13 = sphi %s4683_s13, %s5563_s13   ;;  %s4651_s12 = sphi %s4681_s12, %s5562_s12  }
   0x3   : > { %p27_p1 = scmp.ge.s32.totalorder %s25_s15, 2  ;;  %p168_p2 = scmp.lt.s32.totalorder %s4659_s14, 3 }
   0x5   : > { %s5565_s15 = smov (%p27_p1, %s25_s15), 0  ;;  %p169_p3 = pnand %p3103_p0, %p168_p2 }
   0x7   : > { %172 = sbr.rel (%p169_p3) target bundleno = 556 (0x22c), region = 32 }
   0xe   : > { %v4463_v0 = vld [vmem:[%s5555_s1 + $0x100] sm:$0xff]   ;;  %v4466_v3 = vld [vmem:[%s5555_s1 + $0x108] sm:$0xff]   ;;  %v4469_v6 = vld [vmem:[%s5555_s1 + $0x110] sm:$0xff]   ;;  %p202_p4 = scmp.lt.s32.totalorder %s4651_s12, 1 }
   0xf   : > { %v4707_v1 = vld [vmem:[%s5555_s1 + $0x140] sm:$0xff]   ;;  %3710 = vmatprep.subr.bf16.mxu0 %v4463_v0  ;;  %v4720_v4 = vld [vmem:[%s5555_s1 + $0x148] sm:$0xff]   ;;  %v4732_v7 = vld [vmem:[%s5555_s1 + $0x150] sm:$0xff]  }
  0x10   : > { %v4465_v2 = vld [vmem:[%s5555_s1 + $0xc0] sm:$0xff]   ;;  %4262 = vmatprep.subr.bf16.mxu1 %v4707_v1  ;;  %v4468_v5 = vld [vmem:[%s5555_s1 + $0xc8] sm:$0xff]   ;;  %v4471_v8 = vld [vmem:[%s5555_s1 + $0xd0] sm:$0xff]   ;;  %s5567_s12 = smov (!%p202_p4, %s4651_s12), 1 }
  0x11   : > { %3711 = vmatpush3.bf16.msra.mxu0 %v4465_v2  ;;  %4270 = vmatpush3.bf16.msra.mxu1 %v4707_v1  ;;  %v4472_v9 = vld [vmem:[%s5555_s1 + $0x118] sm:$0xff]   ;;  %v4475_v12 = vld [vmem:[%s5555_s1 + $0x120] sm:$0xff]   ;;  %v4478_v15 = vld [vmem:[%s5555_s1 + $0x128] sm:$0xff]   ;;  %s4438_s27 = smul.u32 432, %s5567_s12  ;;  %s3582_s4 = sshll.u32 %s5567_s12, 7 }
  0x12   : > { %3712 = vmatprep.subr.bf16.mxu0 %v4466_v3  ;;  %4263 = vmatprep.subr.bf16.mxu1 %v4720_v4  ;;  %v4745_v10 = vld [vmem:[%s5555_s1 + $0x158] sm:$0xff]   ;;  %v4759_v13 = vld [vmem:[%s5555_s1 + $0x160] sm:$0xff]   ;;  %v4775_v16 = vld [vmem:[%s5555_s1 + $0x168] sm:$0xff]   ;;  %s5459_s7 = scalar_lea.vmem %s5557_s3, %s3582_s4 }
  0x13   : > { %v4474_v11 = vld [vmem:[%s5555_s1 + $0xd8] sm:$0xff]   ;;  %v4477_v14 = vld [vmem:[%s5555_s1 + $0xe0] sm:$0xff]   ;;  %v4480_v17 = vld [vmem:[%s5555_s1 + $0xe8] sm:$0xff]   ;;  %s4797_s11 = scalar_lea.vmem %s5554_s0, %s4438_s27 }
  0x14   : > { %v4481_v18 = vld [vmem:[%s5555_s1 + $0x130] sm:$0xff]   ;;  %v4484_v21 = vld [vmem:[%s5555_s1 + $0x138] sm:$0xff]   ;;  %v4490_v24 = vld [vmem:[%s4797_s11 + $0xe0] ss:$12 sps:$4 sm:$0xff]  }
  0x15   : > { %3713 = vmatpush3.bf16.msra.mxu0 %v4468_v5  ;;  %4271 = vmatpush3.bf16.msra.mxu1 %v4720_v4  ;;  %v4789_v19 = vld [vmem:[%s5555_s1 + $0x170] sm:$0xff]   ;;  %v4806_v22 = vld [vmem:[%s5555_s1 + $0x178] sm:$0xff]   ;;  %v4492_v26 = vld [vmem:[%s5555_s1 + $0x40] sm:$0xff]  }
  0x16   : > { %3714 = vmatprep.subr.bf16.mxu0 %v4469_v6  ;;  %4264 = vmatprep.subr.bf16.mxu1 %v4732_v7  ;;  %v4483_v20 = vld [vmem:[%s5555_s1 + $0xf0] sm:$0xff]   ;;  %v4810_v23 = vld [vmem:[%s4797_s11 + $0x1c] ss:$12 sps:$4 sm:$0xff]   ;;  %v4823_v27 = vld [vmem:[%s4797_s11 + $0x18] ss:$12 sps:$4 sm:$0xff]  }
  0x17   : > { %881 = vmatprep.mubr.bf16.mxu0 %v4810_v23  ;;  %v4486_v25 = vld [vmem:[%s5555_s1 + $0xf8] sm:$0xff]   ;;  %4150 = vmatprep.mubr.bf16.mxu1 %v4490_v24  ;;  %v4493_v29 = vld [vmem:[%s5555_s1] sm:$0xff]   ;;  %v4494_v30 = vld [vmem:[%s5555_s1 + $0x48] sm:$0xff]  }
  0x18   : > { %v4491_v28 = vld [vmem:[%s4797_s11 + $0xf8] ss:$12 sps:$4 sm:$0xff]   ;;  %v4835_v31 = vld [vmem:[%s4797_s11 + $0x34] ss:$12 sps:$4 sm:$0xff]   ;;  %v4498_v32 = vld [vmem:[%s4797_s11 + $0x110] ss:$12 sps:$4 sm:$0xff]  }
  0x19   : > { %3715 = vmatpush3.bf16.msra.mxu0 %v4471_v8  ;;  %4272 = vmatpush3.bf16.msra.mxu1 %v4732_v7  ;;  %v4495_v33 = vld [vmem:[%s5555_s1 + $0x8] sm:$0xff]   ;;  %v4845_v34 = vld [vmem:[%s4797_s11 + $0x30] ss:$12 sps:$4 sm:$0xff]   ;;  %v4509_v43 = vld [vmem:[%s4797_s11 + $0x158] ss:$12 sps:$4 sm:$0xff]  }
  0x1a   : > { %3716 = vmatprep.subr.bf16.mxu0 %v4472_v9  ;;  %4265 = vmatprep.subr.bf16.mxu1 %v4745_v10  ;;  %v4501_v35 = vld [vmem:[%s5555_s1 + $0x50] sm:$0xff]   ;;  %v4503_v38 = vld [vmem:[%s5555_s1 + $0x58] sm:$0xff]   ;;  %v4507_v40 = vld [vmem:[%s4797_s11 + $0x140] ss:$12 sps:$4 sm:$0xff]  }
  0x1b   : > { %v4500_v36 = vld [vmem:[%s4797_s11 + $0x128] ss:$12 sps:$4 sm:$0xff]   ;;  %v4859_v39 = vld [vmem:[%s4797_s11 + $0x4c] ss:$12 sps:$4 sm:$0xff]   ;;  %v4510_v44 = vld [vmem:[%s5555_s1 + $0x60] sm:$0xff]  }
  0x1c   : > { %v4502_v37 = vld [vmem:[%s5555_s1 + $0x10] sm:$0xff]   ;;  %v4504_v41 = vld [vmem:[%s5555_s1 + $0x18] sm:$0xff]   ;;  %v4511_v45 = vld [vmem:[%s5555_s1 + $0x20] sm:$0xff]  }
  0x1d   : > { %3717 = vmatpush3.bf16.msra.mxu0 %v4474_v11  ;;  %4273 = vmatpush3.bf16.msra.mxu1 %v4745_v10  ;;  %v4870_v42 = vld [vmem:[%s4797_s11 + $0x48] ss:$12 sps:$4 sm:$0xff]   ;;  %v4885_v47 = vld [vmem:[%s4797_s11 + $0x64] ss:$12 sps:$4 sm:$0xff]   ;;  %v4898_v51 = vld [vmem:[%s4797_s11 + $0x60] ss:$12 sps:$4 sm:$0xff]  }
  0x1e   : > { %3718 = vmatprep.subr.bf16.mxu0 %v4475_v12  ;;  %4266 = vmatprep.subr.bf16.mxu1 %v4759_v13  ;;  %v4512_v46 = vld [vmem:[%s5555_s1 + $0x68] sm:$0xff]   ;;  %v4516_v48 = vld [vmem:[%s4797_s11 + $0x170] ss:$12 sps:$4 sm:$0xff]   ;;  %v4529_v58 = vld [vmem:[%s5555_s1 + $0x80] sm:$0xff]  }
  0x1f   : > { %v4513_v49 = vld [vmem:[%s5555_s1 + $0x28] sm:$0xff]   ;;  %v4519_v50 = vld [vmem:[%s5555_s1 + $0x70] sm:$0xff]   ;;  %v4521_v54 = vld [vmem:[%s5555_s1 + $0x78] sm:$0xff]  }
  0x20   : > { %v4518_v52 = vld [vmem:[%s4797_s11 + $0x188] ss:$12 sps:$4 sm:$0xff]   ;;  %v4527_v56 = vld [vmem:[%s4797_s11 + $0x4] ss:$12 sps:$4 sm:$0xff]   ;;  %v4522_v57 = vld [vmem:[%s5555_s1 + $0x38] sm:$0xff]  }
  0x21   : > { %3719 = vmatpush3.bf16.msra.mxu0 %v4477_v14  ;;  %4274 = vmatpush3.bf16.msra.mxu1 %v4759_v13  ;;  %v4520_v53 = vld [vmem:[%s5555_s1 + $0x30] sm:$0xff]   ;;  %v4910_v55 = vld [vmem:[%s4797_s11 + $0x7c] ss:$12 sps:$4 sm:$0xff]   ;;  %v4525_v59 = vld [vmem:[%s4797_s11] ss:$12 sps:$4 sm:$0xff]  }
  0x22   : > { %3720 = vmatprep.subr.bf16.mxu0 %v4478_v15  ;;  %4267 = vmatprep.subr.bf16.mxu1 %v4775_v16  ;;  %v4925_v60 = vld [vmem:[%s4797_s11 + $0x78] ss:$12 sps:$4 sm:$0xff]   ;;  %v4929_v61 = vld [vmem:[%s4797_s11 + $0x94] ss:$12 sps:$4 sm:$0xff]   ;;  %v4536_v62 = vld [vmem:[%s5555_s1 + $0x88] sm:$0xff]  }
  0x23   : > { %v4543_v63 = vld [vmem:[%s5555_s1 + $0x90] sm:$0xff]   ;;  %v4550_v2 = vld [vmem:[%s5555_s1 + $0x98] sm:$0xff]   ;;  %v4570_v5 = vld [vmem:[%s5555_s1 + $0x1c0] sm:$0xff]  }
  0x24   : > { %v4943_v0 = vld [vmem:[%s4797_s11 + $0x90] ss:$12 sps:$4 sm:$0xff]   ;;  %v4957_v3 = vld [vmem:[%s4797_s11 + $0xa8] ss:$12 sps:$4 sm:$0xff]   ;;  %v4979_v9 = vld [vmem:[%s4797_s11 + $0xc0] ss:$12 sps:$4 sm:$0xff]  }
  0x25   : > { %3721 = vmatpush3.bf16.msra.mxu0 %v4480_v17  ;;  %4275 = vmatpush3.bf16.msra.mxu1 %v4775_v16  ;;  %v4966_v6 = vld [vmem:[%s4797_s11 + $0xc4] ss:$12 sps:$4 sm:$0xff]   ;;  %v4585_v11 = vld [vmem:[%s5555_s1 + $0xb8] sm:$0xff]   ;;  %v5018_v17 = vld [vmem:[%s4797_s11 + $0x108] ss:$12 sps:$4 sm:$0xff]  }
  0x26   : > { %3722 = vmatprep.subr.bf16.mxu0 %v4481_v18  ;;  %4268 = vmatprep.subr.bf16.mxu1 %v4789_v19  ;;  %v4572_v8 = vld [vmem:[%s5555_s1 + $0xb0] sm:$0xff]   ;;  %v4992_v12 = vld [vmem:[%s4797_s11 + $0xd8] ss:$12 sps:$4 sm:$0xff]  }
  0x27   : > { %v5002_v14 = vld [vmem:[%s4797_s11 + $0xf0] ss:$12 sps:$4 sm:$0xff]   ;;  %v5005_v15 = vld [vmem:[%s4797_s11 + $0x10c] ss:$12 sps:$4 sm:$0xff]  }
  0x28   : > { %v5021_v18 = vld [vmem:[%s4797_s11 + $0x124] ss:$12 sps:$4 sm:$0xff]   ;;  %v5051_v24 = vld [vmem:[%s4797_s11 + $0x16c] ss:$12 sps:$4 sm:$0xff]  }
  0x29   : > { %3723 = vmatpush3.bf16.msra.mxu0 %v4483_v20  ;;  %4276 = vmatpush3.bf16.msra.mxu1 %v4789_v19  ;;  %v5031_v20 = vld [vmem:[%s4797_s11 + $0x13c] ss:$12 sps:$4 sm:$0xff]  }
  0x2a   : > { %3724 = vmatprep.subr.bf16.mxu0 %v4484_v21  ;;  %4269 = vmatprep.subr.bf16.mxu1 %v4806_v22  ;;  %v5038_v21 = vld [vmem:[%s4797_s11 + $0x138] ss:$12 sps:$4 sm:$0xff]  }
  0x2d   : > { %3725 = vmatpush3.bf16.msra.mxu0 %v4486_v25  ;;  %4277 = vmatpush3.bf16.msra.mxu1 %v4806_v22  ;;  %v5058_v25 = vld [vmem:[%s4797_s11 + $0x168] ss:$12 sps:$4 sm:$0xff]  }
  0x2e   : > { %4118 = vmatprep.subr.bf16.mxu0 %v4707_v1  ;;  %3846 = vmatprep.subr.bf16.mxu1 %v4492_v26  ;;  %v5061_v26 = vld [vmem:[%s4797_s11 + $0x184] ss:$12 sps:$4 sm:$0xff]  }
  0x30   : > { %882 = vmatmul.mubr.bf16.vlgmr.msra.gmra.mrb[0].mxu0 %v4823_v27  ;;  %4151 = vmatmul.mubr.bf16.vlgmr.msra.gmra.mrb[0].mxu1 %v4491_v28  ;;  %v4568_v28 = vld [vmem:[%s4797_s11 + $0x20] ss:$12 sps:$4 sm:$0xff]  }
  0x31   : > { %4119 = vmatpush3.bf16.msra.mxu0 %v4707_v1  ;;  %3847 = vmatpush3.bf16.msra.mxu1 %v4493_v29  ;;  %v4947_v1 = vld [vmem:[%s4797_s11 + $0xac] ss:$12 sps:$4 sm:$0xff]  }
  0x32   : > { %3848 = vmatprep.subr.bf16.mxu1 %v4494_v30  ;;  %889 = vmatprep.mubr.bf16.mxu0 %v4835_v31  ;;  %v4569_v29 = vld [vmem:[%s4797_s11 + $0x38] ss:$12 sps:$4 sm:$0xff]  }
  0x33   : > { %4154 = vmatprep.mubr.bf16.mxu1 %v4498_v32  ;;  %4120 = vmatprep.subr.bf16.mxu0 %v4720_v4  ;;  %v4571_v30 = vld [vmem:[%s5555_s1 + $0x180] sm:$0xff]   ;;  %v4575_v32 = vld [vmem:[%s4797_s11 + $0x50] ss:$12 sps:$4 sm:$0xff]  }
  0x35   : > { %3849 = vmatpush3.bf16.msra.mxu1 %v4495_v33  ;;  %4121 = vmatpush3.bf16.msra.mxu0 %v4720_v4  ;;  %v4557_v4 = vld [vmem:[%s5555_s1 + $0xa0] sm:$0xff]   ;;  %v4573_v33 = vld [vmem:[%s5555_s1 + $0x1c8] sm:$0xff]  }
  0x36   : > { %3850 = vmatprep.subr.bf16.mxu1 %v4501_v35  ;;  %4122 = vmatprep.subr.bf16.mxu0 %v4732_v7  ;;  %v4574_v35 = vld [vmem:[%s5555_s1 + $0x188] sm:$0xff]  }
  0x38   : > { %890 = vmatmul.mubr.bf16.gmra.mrb[4].mxu0 %v4845_v34  ;;  %4155 = vmatmul.mubr.bf16.gmra.mrb[4].mxu1 %v4500_v36  ;;  %v4577_v36 = vld [vmem:[%s5555_s1 + $0x1d0] sm:$0xff]  }
  0x39   : > { %3851 = vmatpush3.bf16.msra.mxu1 %v4502_v37  ;;  %897 = vmatprep.mubr.bf16.mxu0 %v4859_v39  ;;  %v4576_v37 = vld [vmem:[%s4797_s11 + $0x68] ss:$12 sps:$4 sm:$0xff]  }
  0x3a   : > { %3852 = vmatprep.subr.bf16.mxu1 %v4503_v38  ;;  %4158 = vmatprep.mubr.bf16.mxu1 %v4507_v40  ;;  %v4578_v38 = vld [vmem:[%s5555_s1 + $0x190] sm:$0xff]   ;;  %v4581_v40 = vld [vmem:[%s4797_s11 + $0x80] ss:$12 sps:$4 sm:$0xff]  }
  0x3b   : > { %4123 = vmatpush3.bf16.msra.mxu0 %v4732_v7  ;;  %v4564_v7 = vld [vmem:[%s5555_s1 + $0xa8] sm:$0xff]  }
  0x3c   : > { %4124 = vmatprep.subr.bf16.mxu0 %v4745_v10 }
  0x3d   : > { %3853 = vmatpush3.bf16.msra.mxu1 %v4504_v41  ;;  %v4579_v41 = vld [vmem:[%s5555_s1 + $0x1d8] sm:$0xff]  }
  0x3e   : > { %3854 = vmatprep.subr.bf16.mxu1 %v4510_v44  ;;  %v4583_v44 = vld [vmem:[%s5555_s1 + $0x1e0] sm:$0xff]  }
  0x3f   : > { %4125 = vmatpush3.bf16.msra.mxu0 %v4745_v10  ;;  %v4982_v10 = vld [vmem:[%s4797_s11 + $0xdc] ss:$12 sps:$4 sm:$0xff]  }
  0x40   : > { %898 = vmatmul.mubr.bf16.gmra.mrb[8].mxu0 %v4870_v42  ;;  %4159 = vmatmul.mubr.bf16.gmra.mrb[8].mxu1 %v4509_v43  ;;  %v4580_v43 = vld [vmem:[%s5555_s1 + $0x198] sm:$0xff]  }
  0x41   : > { %3855 = vmatpush3.bf16.msra.mxu1 %v4511_v45  ;;  %905 = vmatprep.mubr.bf16.mxu0 %v4885_v47  ;;  %v4582_v45 = vld [vmem:[%s4797_s11 + $0x98] ss:$12 sps:$4 sm:$0xff]  }
  0x42   : > { %3856 = vmatprep.subr.bf16.mxu1 %v4512_v46  ;;  %4162 = vmatprep.mubr.bf16.mxu1 %v4516_v48  ;;  %v4584_v46 = vld [vmem:[%s5555_s1 + $0x1a0] sm:$0xff]   ;;  %v4588_v48 = vld [vmem:[%s4797_s11 + $0xb0] ss:$12 sps:$4 sm:$0xff]  }
  0x43   : > { %4126 = vmatprep.subr.bf16.mxu0 %v4759_v13 }
  0x44   : > { %4127 = vmatpush3.bf16.msra.mxu0 %v4759_v13  ;;  %v4995_v13 = vld [vmem:[%s4797_s11 + $0xf4] ss:$12 sps:$4 sm:$0xff]  }
  0x45   : > { %3857 = vmatpush3.bf16.msra.mxu1 %v4513_v49  ;;  %4128 = vmatprep.subr.bf16.mxu0 %v4775_v16  ;;  %v4586_v49 = vld [vmem:[%s5555_s1 + $0x1e8] sm:$0xff]  }
  0x46   : > { %3858 = vmatprep.subr.bf16.mxu1 %v4519_v50  ;;  %v4587_v50 = vld [vmem:[%s5555_s1 + $0x1a8] sm:$0xff]  }
  0x48   : > { %906 = vmatmul.mubr.bf16.gmra.mrb[12].mxu0 %v4898_v51  ;;  %4163 = vmatmul.mubr.bf16.gmra.mrb[12].mxu1 %v4518_v52  ;;  %v4590_v52 = vld [vmem:[%s5555_s1 + $0x1f0] sm:$0xff]  }
  0x49   : > { %3859 = vmatpush3.bf16.msra.mxu1 %v4520_v53  ;;  %913 = vmatprep.mubr.bf16.mxu0 %v4910_v55  ;;  %v4589_v53 = vld [vmem:[%s4797_s11 + $0xc8] ss:$12 sps:$4 sm:$0xff]  }
  0x4a   : > { %3860 = vmatprep.subr.bf16.mxu1 %v4521_v54  ;;  %1603 = vmatprep.mubr.bf16.mxu1 %v4527_v56  ;;  %v4591_v54 = vld [vmem:[%s5555_s1 + $0x1b0] sm:$0xff]  }
  0x4b   : > { %4129 = vmatpush3.bf16.msra.mxu0 %v4775_v16  ;;  %v5010_v16 = vld [vmem:[%s5555_s1 + $0x200] sm:$0xff]   ;;  %v4594_v56 = vld [vmem:[%s4797_s11 + $0x8] ss:$12 sps:$4 sm:$0xff]  }
  0x4c   : > { %4130 = vmatprep.subr.bf16.mxu0 %v4789_v19 }
  0x4d   : > { %3861 = vmatpush3.bf16.msra.mxu1 %v4522_v57  ;;  %v4592_v57 = vld [vmem:[%s5555_s1 + $0x1f8] sm:$0xff]  }
  0x4e   : > { %4166 = vmatprep.subr.bf16.mxu1 %v4529_v58 }
  0x4f   : > { %4131 = vmatpush3.bf16.msra.mxu0 %v4789_v19  ;;  %v5028_v19 = vld [vmem:[%s4797_s11 + $0x120] ss:$12 sps:$4 sm:$0xff]  }
  0x50   : > { %914 = vmatmul.mubr.bf16.gmra.mrb[16].mxu0 %v4925_v60  ;;  %1604 = vmatmul.mubr.bf16.vlgmr.msra.gmra.mrb[16].mxu1 %v4525_v59  ;;  %v4595_v59 = vld [vmem:[%s4797_s11 + $0x20] ss:$12 sps:$4 sm:$0xff]  }
  0x51   : > { %4167 = vmatpush3.bf16.msra.mxu1 %v4529_v58  ;;  %921 = vmatprep.mubr.bf16.mxu0 %v4929_v61  ;;  %v4593_v58 = vld [vmem:[%s5555_s1 + $0x1b8] sm:$0xff]  }
  0x52   : > { %1611 = vmatprep.mubr.bf16.mxu1 %v4810_v23  ;;  %4168 = vmatprep.subr.bf16.mxu1 %v4536_v62  ;;  %v5048_v23 = vld [vmem:[%s4797_s11 + $0x150] ss:$12 sps:$4 sm:$0xff]  }
  0x53   : > { %4132 = vmatprep.subr.bf16.mxu0 %v4806_v22 }
  0x54   : > { %4133 = vmatpush3.bf16.msra.mxu0 %v4806_v22  ;;  %v5041_v22 = vld [vmem:[%s4797_s11 + $0x154] ss:$12 sps:$4 sm:$0xff]  }
  0x55   : > { %4169 = vmatpush3.bf16.msra.mxu1 %v4536_v62  ;;  %3982 = vmatprep.subr.bf16.mxu0 %v4570_v5  ;;  %v4597_v62 = vld [vmem:[%s4797_s11 + $0x38] ss:$12 sps:$4 sm:$0xff]   ;;  %v4601_v5 = vld [vmem:[%s4797_s11 + $0x80] ss:$12 sps:$4 sm:$0xff]  }
  0x56   : > { %4170 = vmatprep.subr.bf16.mxu1 %v4543_v63 }
  0x58   : > { %922 = vmatmul.mubr.bf16.gmra.mrb[20].mxu0 %v4943_v0  ;;  %1612 = vmatmul.mubr.bf16.gmra.mrb[20].mxu1 %v4823_v27  ;;  %v5068_v27 = vld [vmem:[%s4797_s11 + $0x180] ss:$12 sps:$4 sm:$0xff]  }
  0x59   : > { %929 = vmatprep.mubr.bf16.mxu0 %v4947_v1  ;;  %1619 = vmatprep.mubr.bf16.mxu1 %v4835_v31 }
  0x5a   : > { %4171 = vmatpush3.bf16.msra.mxu1 %v4543_v63  ;;  %v4599_v63 = vld [vmem:[%s5555_s1 + $0x208] sm:$0xff]  }
  0x5b   : > { %4172 = vmatprep.subr.bf16.mxu1 %v4550_v2 }
  0x5e   : > { %4173 = vmatpush3.bf16.msra.mxu1 %v4550_v2  ;;  %v4598_v2 = vld [vmem:[%s4797_s11 + $0x50] ss:$12 sps:$4 sm:$0xff]  }
  0x5f   : > { %4174 = vmatprep.subr.bf16.mxu1 %v4557_v4 }
  0x60   : > { %930 = vmatmul.mubr.bf16.gmra.mrb[24].mxu0 %v4957_v3  ;;  %1620 = vmatmul.mubr.bf16.gmra.mrb[24].mxu1 %v4845_v34 }
  0x61   : > { %937 = vmatprep.mubr.bf16.mxu0 %v4966_v6  ;;  %1627 = vmatprep.mubr.bf16.mxu1 %v4859_v39 }
  0x62   : > { %4175 = vmatpush3.bf16.msra.mxu1 %v4557_v4  ;;  %v4600_v4 = vld [vmem:[%s4797_s11 + $0x68] ss:$12 sps:$4 sm:$0xff]  }
  0x63   : > { %4176 = vmatprep.subr.bf16.mxu1 %v4564_v7 }
  0x66   : > { %4177 = vmatpush3.bf16.msra.mxu1 %v4564_v7  ;;  %v4603_v7 = vld [vmem:[%s4797_s11 + $0x98] ss:$12 sps:$4 sm:$0xff]  }
  0x67   : > { %4178 = vmatprep.subr.bf16.mxu1 %v4572_v8 }
  0x68   : > { %938 = vmatmul.mubr.bf16.gmra.mrb[28].mxu0 %v4979_v9  ;;  %1628 = vmatmul.mubr.bf16.gmra.mrb[28].mxu1 %v4870_v42 }
  0x69   : > { %945 = vmatprep.mubr.bf16.mxu0 %v4982_v10  ;;  %1635 = vmatprep.mubr.bf16.mxu1 %v4885_v47 }
  0x6a   : > { %4179 = vmatpush3.bf16.msra.mxu1 %v4572_v8  ;;  %v4611_v8 = vld [vmem:[%s5555_s1 + $0x228] sm:$0xff]  }
  0x6b   : > { %4180 = vmatprep.subr.bf16.mxu1 %v4585_v11 }
  0x6e   : > { %4181 = vmatpush3.bf16.msra.mxu1 %v4585_v11  ;;  %v4606_v11 = vld [vmem:[%s4797_s11 + $0xc8] ss:$12 sps:$4 sm:$0xff]  }
  0x6f   : > { %4214 = vmatprep.subr.bf16.mxu1 %v5010_v16 }
  0x70   : > { %946 = vmatmul.mubr.bf16.gmra.mrb[32].mxu0 %v4992_v12  ;;  %1636 = vmatmul.mubr.bf16.gmra.mrb[32].mxu1 %v4898_v51 }
  0x71   : > { %953 = vmatprep.mubr.bf16.mxu0 %v4995_v13  ;;  %1643 = vmatprep.mubr.bf16.mxu1 %v4910_v55 }
  0x78   : > { %954 = vmatmul.mubr.bf16.gmra.mrb[36].mxu0 %v5002_v14  ;;  %1644 = vmatmul.mubr.bf16.gmra.mrb[36].mxu1 %v4925_v60 }
  0x79   : > { %961 = vmatprep.mubr.bf16.mxu0 %v5005_v15  ;;  %1651 = vmatprep.mubr.bf16.mxu1 %v4929_v61 }
  0x80   : > { %962 = vmatmul.mubr.bf16.gmra.mrb[40].mxu0 %v5018_v17  ;;  %1652 = vmatmul.mubr.bf16.gmra.mrb[40].mxu1 %v4943_v0 }
  0x81   : > { %969 = vmatprep.mubr.bf16.mxu0 %v5021_v18  ;;  %1659 = vmatprep.mubr.bf16.mxu1 %v4947_v1 }
  0x88   : > { %970 = vmatmul.mubr.bf16.gmra.mrb[44].mxu0 %v5028_v19  ;;  %1660 = vmatmul.mubr.bf16.gmra.mrb[44].mxu1 %v4957_v3 }
  0x89   : > { %977 = vmatprep.mubr.bf16.mxu0 %v5031_v20  ;;  %1667 = vmatprep.mubr.bf16.mxu1 %v4966_v6 }
  0x90   : > { %978 = vmatmul.mubr.bf16.gmra.mrb[48].mxu0 %v5038_v21  ;;  %1668 = vmatmul.mubr.bf16.gmra.mrb[48].mxu1 %v4979_v9 }
  0x91   : > { %985 = vmatprep.mubr.bf16.mxu0 %v5041_v22  ;;  %1675 = vmatprep.mubr.bf16.mxu1 %v4982_v10 }
  0x98   : > { %986 = vmatmul.mubr.bf16.gmra.mrb[52].mxu0 %v5048_v23  ;;  %1676 = vmatmul.mubr.bf16.gmra.mrb[52].mxu1 %v4992_v12 }
  0x99   : > { %993 = vmatprep.mubr.bf16.mxu0 %v5051_v24  ;;  %1683 = vmatprep.mubr.bf16.mxu1 %v4995_v13 }
  0xa0   : > { %994 = vmatmul.mubr.bf16.gmra.mrb[56].mxu0 %v5058_v25  ;;  %1684 = vmatmul.mubr.bf16.gmra.mrb[56].mxu1 %v5002_v14 }
  0xa1   : > { %1001 = vmatprep.mubr.bf16.mxu0 %v5061_v26  ;;  %1691 = vmatprep.mubr.bf16.mxu1 %v5005_v15 }
  0xa8   : > { %1002 = vmatmul.mubr.bf16.gmra.mrb[60].mxu0 %v5068_v27  ;;  %1692 = vmatmul.mubr.bf16.gmra.mrb[60].mxu1 %v5018_v17 }
  0xa9   : > { %4134 = vmatprep.mubr.bf16.mxu0 %v4568_v28  ;;  %1699 = vmatprep.mubr.bf16.mxu1 %v5021_v18  ;;  %v4610_v28 = vld [vmem:[%s4797_s11 + $0x110] ss:$12 sps:$4 sm:$0xff]  }
  0xb0   : > { %4135 = vmatmul.mubr.bf16.vlgmr.msra.gmra.mrb[64].mxu0 %v4569_v29  ;;  %1700 = vmatmul.mubr.bf16.gmra.mrb[64].mxu1 %v5028_v19  ;;  %v4612_v29 = vld [vmem:[%s4797_s11 + $0x128] ss:$12 sps:$4 sm:$0xff]  }
  0xb1   : > { %3983 = vmatpush3.bf16.msra.mxu0 %v4571_v30  ;;  %4138 = vmatprep.mubr.bf16.mxu0 %v4575_v32  ;;  %v4616_v30 = vld [vmem:[%s4797_s11 + $0x170] ss:$12 sps:$4 sm:$0xff]  }
  0xb2   : > { %3984 = vmatprep.subr.bf16.mxu0 %v4573_v33  ;;  %1707 = vmatprep.mubr.bf16.mxu1 %v5031_v20 }
  0xb5   : > { %3985 = vmatpush3.bf16.msra.mxu0 %v4574_v35 }
  0xb6   : > { %3986 = vmatprep.subr.bf16.mxu0 %v4577_v36 }
  0xb8   : > { %4139 = vmatmul.mubr.bf16.gmra.mrb[68].mxu0 %v4576_v37  ;;  %1708 = vmatmul.mubr.bf16.gmra.mrb[68].mxu1 %v5038_v21 }
  0xb9   : > { %3987 = vmatpush3.bf16.msra.mxu0 %v4578_v38  ;;  %4142 = vmatprep.mubr.bf16.mxu0 %v4581_v40  ;;  %v4620_v40 = vld [vmem:[%s4797_s11 + $0x68] ss:$12 sps:$4 sm:$0xff]  }
  0xba   : > { %3988 = vmatprep.subr.bf16.mxu0 %v4579_v41  ;;  %1715 = vmatprep.mubr.bf16.mxu1 %v5041_v22 }
  0xbd   : > { %3989 = vmatpush3.bf16.msra.mxu0 %v4580_v43 }
  0xbe   : > { %3990 = vmatprep.subr.bf16.mxu0 %v4583_v44  ;;  %v4621_v44 = vld [vmem:[%s4797_s11 + $0x80] ss:$12 sps:$4 sm:$0xff]  }
  0xc0   : > { %4143 = vmatmul.mubr.bf16.gmra.mrb[72].mxu0 %v4582_v45  ;;  %1716 = vmatmul.mubr.bf16.gmra.mrb[72].mxu1 %v5048_v23 }
  0xc1   : > { %3991 = vmatpush3.bf16.msra.mxu0 %v4584_v46  ;;  %4146 = vmatprep.mubr.bf16.mxu0 %v4588_v48  ;;  %v4622_v48 = vld [vmem:[%s4797_s11 + $0x98] ss:$12 sps:$4 sm:$0xff]  }
  0xc2   : > { %3992 = vmatprep.subr.bf16.mxu0 %v4586_v49  ;;  %1723 = vmatprep.mubr.bf16.mxu1 %v5051_v24 }
  0xc5   : > { %3993 = vmatpush3.bf16.msra.mxu0 %v4587_v50 }
  0xc6   : > { %3994 = vmatprep.subr.bf16.mxu0 %v4590_v52  ;;  %v4623_v52 = vld [vmem:[%s4797_s11 + $0xb0] ss:$12 sps:$4 sm:$0xff]  }
  0xc8   : > { %4147 = vmatmul.mubr.bf16.gmra.mrb[76].mxu0 %v4589_v53  ;;  %1724 = vmatmul.mubr.bf16.gmra.mrb[76].mxu1 %v5058_v25 }
  0xc9   : > { %3995 = vmatpush3.bf16.msra.mxu0 %v4591_v54  ;;  %4182 = vmatprep.mubr.bf16.mxu1 %v4594_v56  ;;  %v4624_v56 = vld [vmem:[%s4797_s11 + $0xc8] ss:$12 sps:$4 sm:$0xff]  }
  0xca   : > { %3996 = vmatprep.subr.bf16.mxu0 %v4592_v57  ;;  %2439 = vmatprep.mubr.bf16.mxu0 %v4835_v31  ;;  %v4602_v31 = vld [vmem:[%s5555_s1 + $0x210] sm:$0xff]  }
  0xcd   : > { %3997 = vmatpush3.bf16.msra.mxu0 %v4593_v58 }
  0xd0   : > { %4183 = vmatmul.mubr.bf16.vlgmr.msra.gmra.mrb[80].mxu1 %v4595_v59  ;;  %2440 = vmatmul.mubr.bf16.vlgmr.msra.gmra.mrb[80].mxu0 %v4845_v34  ;;  %v4605_v34 = vld [vmem:[%s5555_s1 + $0x218] sm:$0xff]  }
  0xd1   : > { %4215 = vmatpush3.bf16.msra.mxu1 %v5010_v16  ;;  %4186 = vmatprep.mubr.bf16.mxu1 %v4597_v62  ;;  %v4609_v16 = vld [vmem:[%s4797_s11 + $0xf8] ss:$12 sps:$4 sm:$0xff]  }
  0xd2   : > { %2447 = vmatprep.mubr.bf16.mxu0 %v4859_v39  ;;  %4216 = vmatprep.subr.bf16.mxu1 %v4599_v63  ;;  %v4608_v39 = vld [vmem:[%s5555_s1 + $0x220] sm:$0xff]  }
  0xd5   : > { %4217 = vmatpush3.bf16.msra.mxu1 %v4599_v63  ;;  %v4625_v63 = vld [vmem:[%s4797_s11 + $0xe0] ss:$12 sps:$4 sm:$0xff]  }
  0xd6   : > { %4218 = vmatprep.subr.bf16.mxu1 %v4602_v31 }
  0xd8   : > { %4187 = vmatmul.mubr.bf16.gmra.mrb[84].mxu1 %v4598_v2  ;;  %2448 = vmatmul.mubr.bf16.gmra.mrb[84].mxu0 %v4870_v42  ;;  %v4614_v42 = vld [vmem:[%s5555_s1 + $0x230] sm:$0xff]  }
  0xd9   : > { %4190 = vmatprep.mubr.bf16.mxu1 %v4600_v4  ;;  %2455 = vmatprep.mubr.bf16.mxu0 %v4885_v47  ;;  %v4604_v47 = vld [vmem:[%s4797_s11 + $0xb0] ss:$12 sps:$4 sm:$0xff]  }
  0xda   : > { %4219 = vmatpush3.bf16.msra.mxu1 %v4602_v31 }
  0xdb   : > { %4220 = vmatprep.subr.bf16.mxu1 %v4605_v34 }
  0xde   : > { %4221 = vmatpush3.bf16.msra.mxu1 %v4605_v34 }
  0xdf   : > { %4222 = vmatprep.subr.bf16.mxu1 %v4608_v39 }
  0xe0   : > { %4191 = vmatmul.mubr.bf16.gmra.mrb[88].mxu1 %v4601_v5  ;;  %2456 = vmatmul.mubr.bf16.gmra.mrb[88].mxu0 %v4898_v51  ;;  %v4617_v51 = vld [vmem:[%s5555_s1 + $0x238] sm:$0xff]  }
  0xe1   : > { %4194 = vmatprep.mubr.bf16.mxu1 %v4603_v7  ;;  %2463 = vmatprep.mubr.bf16.mxu0 %v4910_v55  ;;  %v4607_v55 = vld [vmem:[%s4797_s11 + $0xe0] ss:$12 sps:$4 sm:$0xff]  }
  0xe2   : > { %4223 = vmatpush3.bf16.msra.mxu1 %v4608_v39  ;;  %v4626_v39 = vld [vmem:[%s4797_s11 + $0xf8] ss:$12 sps:$4 sm:$0xff]  }
  0xe3   : > { %4224 = vmatprep.subr.bf16.mxu1 %v4611_v8 }
  0xe6   : > { %4225 = vmatpush3.bf16.msra.mxu1 %v4611_v8 }
  0xe7   : > { %4226 = vmatprep.subr.bf16.mxu1 %v4614_v42 }
  0xe8   : > { %4195 = vmatmul.mubr.bf16.gmra.mrb[92].mxu1 %v4604_v47  ;;  %2464 = vmatmul.mubr.bf16.gmra.mrb[92].mxu0 %v4925_v60  ;;  %v4613_v60 = vld [vmem:[%s4797_s11 + $0x140] ss:$12 sps:$4 sm:$0xff]  }
  0xe9   : > { %4198 = vmatprep.mubr.bf16.mxu1 %v4606_v11  ;;  %2471 = vmatprep.mubr.bf16.mxu0 %v4929_v61  ;;  %v4615_v61 = vld [vmem:[%s4797_s11 + $0x158] ss:$12 sps:$4 sm:$0xff]  }
  0xea   : > { %4227 = vmatpush3.bf16.msra.mxu1 %v4614_v42 }
  0xeb   : > { %4228 = vmatprep.subr.bf16.mxu1 %v4617_v51 }
  0xee   : > { %4229 = vmatpush3.bf16.msra.mxu1 %v4617_v51  ;;  %v4627_v51 = vld [vmem:[%s4797_s11 + $0x110] ss:$12 sps:$4 sm:$0xff]  }
  0xf0   : > { %4199 = vmatmul.mubr.bf16.gmra.mrb[0].mxu1 %v4607_v55  ;;  %2472 = vmatmul.mubr.bf16.gmra.mrb[96].mxu0 %v4943_v0 }
  0xf1   : > { %4202 = vmatprep.mubr.bf16.mxu1 %v4609_v16  ;;  %2479 = vmatprep.mubr.bf16.mxu0 %v4947_v1 }
  0xf8   : > { %4203 = vmatmul.mubr.bf16.gmra.mrb[4].mxu1 %v4610_v28  ;;  %2480 = vmatmul.mubr.bf16.gmra.mrb[100].mxu0 %v4957_v3  ;;  %v4618_v3 = vld [vmem:[%s4797_s11 + $0x38] ss:$12 sps:$4 sm:$0xff]  }
  0xf9   : > { %4206 = vmatprep.mubr.bf16.mxu1 %v4612_v29  ;;  %2487 = vmatprep.mubr.bf16.mxu0 %v4966_v6 }
 0x100   : > { %4207 = vmatmul.mubr.bf16.gmra.mrb[8].mxu1 %v4613_v60  ;;  %2488 = vmatmul.mubr.bf16.gmra.mrb[104].mxu0 %v4979_v9  ;;  %v4628_v60 = vld [vmem:[%s4797_s11 + $0x128] ss:$12 sps:$4 sm:$0xff]  }
 0x101   : > { %4210 = vmatprep.mubr.bf16.mxu1 %v4615_v61  ;;  %2495 = vmatprep.mubr.bf16.mxu0 %v4982_v10  ;;  %v4619_v10 = vld [vmem:[%s4797_s11 + $0x50] ss:$12 sps:$4 sm:$0xff]  }
 0x103   : > { %v3726_v0 = vpop.f32.mrb[0].mxu0 }
 0x104   : > { %v3727_v1 = vpop.f32.mrb[1].mxu0 }
 0x105   : > { %v5186_v32 = vadd.f32 %v3727_v1, %v3726_v0  ;;  %v3729_v33 = vpop.f32.mrb[2].mxu0 }
 0x106   : > { %v3730_v35 = vpop.f32.mrb[3].mxu0 }
 0x107   : > { %v5189_v36 = vadd.f32 %v3730_v35, %v3729_v33  ;;  %v4629_v35 = vld [vmem:[%s4797_s11 + $0x140] ss:$12 sps:$4 sm:$0xff]  }
 0x108   : > { %4211 = vmatmul.mubr.bf16.gmra.mrb[12].mxu1 %v4616_v30  ;;  %2496 = vmatmul.mubr.bf16.gmra.mrb[108].mxu0 %v4992_v12 }
 0x109   : > { %2503 = vmatprep.mubr.bf16.mxu0 %v4995_v13  ;;  %4230 = vmatprep.mubr.bf16.mxu1 %v4618_v3 }
 0x10b   : > { %v3732_v6 = vpop.f32.mrb[4].mxu0 }
 0x10c   : > { %v3733_v9 = vpop.f32.mrb[5].mxu0 }
 0x10d   : > { %v5194_v37 = vadd.f32 %v3733_v9, %v3732_v6  ;;  %v3735_v38 = vpop.f32.mrb[6].mxu0 }
 0x10e   : > { %v3736_v41 = vpop.f32.mrb[7].mxu0 }
 0x10f   : > { %v5197_v43 = vadd.f32 %v3736_v41, %v3735_v38 }
 0x110   : > { %2504 = vmatmul.mubr.bf16.gmra.mrb[112].mxu0 %v5002_v14  ;;  %4231 = vmatmul.mubr.bf16.vlgmr.msra.gmra.mrb[80].mxu1 %v4619_v10 }
 0x111   : > { %2511 = vmatprep.mubr.bf16.mxu0 %v5005_v15  ;;  %4234 = vmatprep.mubr.bf16.mxu1 %v4620_v40  ;;  %v4630_v40 = vld [vmem:[%s4797_s11 + $0x158] ss:$12 sps:$4 sm:$0xff]  }
 0x113   : > { %v3738_v12 = vpop.f32.mrb[8].mxu0 }
 0x114   : > { %v3739_v13 = vpop.f32.mrb[9].mxu0 }
 0x115   : > { %v5202_v45 = vadd.f32 %v3739_v13, %v3738_v12  ;;  %v3741_v46 = vpop.f32.mrb[10].mxu0 }
 0x116   : > { %v3742_v49 = vpop.f32.mrb[11].mxu0 }
 0x117   : > { %v5205_v50 = vadd.f32 %v3742_v49, %v3741_v46  ;;  %v4631_v49 = vld [vmem:[%s4797_s11 + $0x170] ss:$12 sps:$4 sm:$0xff]  }
 0x118   : > { %2512 = vmatmul.mubr.bf16.gmra.mrb[116].mxu0 %v5018_v17  ;;  %4235 = vmatmul.mubr.bf16.gmra.mrb[84].mxu1 %v4621_v44 }
 0x119   : > { %2519 = vmatprep.mubr.bf16.mxu0 %v5021_v18  ;;  %4238 = vmatprep.mubr.bf16.mxu1 %v4622_v48 }
 0x11b   : > { %v3744_v14 = vpop.f32.mrb[12].mxu0 }
 0x11c   : > { %v3745_v15 = vpop.f32.mrb[13].mxu0 }
 0x11d   : > { %v5210_v53 = vadd.f32 %v3745_v15, %v3744_v14  ;;  %v3747_v54 = vpop.f32.mrb[14].mxu0 }
 0x11e   : > { %v3748_v57 = vpop.f32.mrb[15].mxu0 }
 0x11f   : > { %v5213_v58 = vadd.f32 %v3748_v57, %v3747_v54  ;;  %v4634_v57 = vld [vmem:[%s4797_s11 + $0x188] ss:$12 sps:$4 sm:$0xff]  }
 0x120   : > { %2520 = vmatmul.mubr.bf16.gmra.mrb[120].mxu0 %v5028_v19  ;;  %4239 = vmatmul.mubr.bf16.gmra.mrb[88].mxu1 %v4623_v52 }
 0x121   : > { %2527 = vmatprep.mubr.bf16.mxu0 %v5031_v20  ;;  %4242 = vmatprep.mubr.bf16.mxu1 %v4624_v56  ;;  %v4632_v56 = vld [vmem:[%s4797_s11 + $0x19c] ss:$12 sps:$4 sm:$0xff]  }
 0x123   : > { %v3750_v17 = vpop.f32.mrb[16].mxu0  ;;  %v3862_v18 = vpop.f32.mrb[16].mxu1 }
 0x124   : > { %v3751_v59 = vpop.f32.mrb[17].mxu0  ;;  %v3863_v62 = vpop.f32.mrb[17].mxu1 }
 0x125   : > { %v5218_v31 = vadd.f32 %v3751_v59, %v3750_v17  ;;  %v3753_v2 = vpop.f32.mrb[18].mxu0  ;;  %v5220_v4 = vadd.f32 %v3863_v62, %v3862_v18  ;;  %v3865_v34 = vpop.f32.mrb[18].mxu1 }
 0x126   : > { %v3754_v5 = vpop.f32.mrb[19].mxu0  ;;  %v3866_v7 = vpop.f32.mrb[19].mxu1 }
 0x127   : > { %v5223_v19 = vadd.f32 %v3754_v5, %v3753_v2  ;;  %v5225_v20 = vadd.f32 %v3866_v7, %v3865_v34  ;;  %v4635_v34 = vld [vmem:[%s4797_s11 + $0x198] ss:$12 sps:$4 sm:$0xff]  }
 0x128   : > { %2528 = vmatmul.mubr.bf16.gmra.mrb[124].mxu0 %v5038_v21  ;;  %4243 = vmatmul.mubr.bf16.gmra.mrb[92].mxu1 %v4625_v63 }
 0x129   : > { %2535 = vmatprep.mubr.bf16.mxu0 %v5041_v22  ;;  %4246 = vmatprep.mubr.bf16.mxu1 %v4626_v39  ;;  %v4636_v39 = vld [vmem:[%s4797_s11 + $0x1a0] ss:$12 sps:$4 sm:$0xff]  }
 0x12b   : > { %v3756_v8 = vpop.f32.mrb[20].mxu0  ;;  %v3868_v42 = vpop.f32.mrb[20].mxu1 }
 0x12c   : > { %v3757_v47 = vpop.f32.mrb[21].mxu0  ;;  %v3869_v11 = vpop.f32.mrb[21].mxu1 }
 0x12d   : > { %v5230_v55 = vadd.f32 %v3757_v47, %v3756_v8  ;;  %v3759_v16 = vpop.f32.mrb[22].mxu0  ;;  %v5232_v28 = vadd.f32 %v3869_v11, %v3868_v42  ;;  %v3871_v29 = vpop.f32.mrb[22].mxu1 }
 0x12e   : > { %v3760_v61 = vpop.f32.mrb[23].mxu0  ;;  %v3872_v0 = vpop.f32.mrb[23].mxu1 }
 0x12f   : > { %v5235_v21 = vadd.f32 %v3760_v61, %v3759_v16  ;;  %v5237_v22 = vadd.f32 %v3872_v0, %v3871_v29 }
 0x130   : > { %2536 = vmatmul.mubr.bf16.gmra.mrb[128].mxu0 %v5048_v23  ;;  %4247 = vmatmul.mubr.bf16.gmra.mrb[0].mxu1 %v4627_v51 }
 0x131   : > { %2543 = vmatprep.mubr.bf16.mxu0 %v5051_v24  ;;  %4250 = vmatprep.mubr.bf16.mxu1 %v4628_v60 }
 0x133   : > { %v3762_v1 = vpop.f32.mrb[24].mxu0  ;;  %v3874_v30 = vpop.f32.mrb[24].mxu1 }
 0x134   : > { %v3763_v33 = vpop.f32.mrb[25].mxu0  ;;  %v3875_v3 = vpop.f32.mrb[25].mxu1 }
 0x135   : > { %v5242_v6 = vadd.f32 %v3763_v33, %v3762_v1  ;;  %v3765_v9 = vpop.f32.mrb[26].mxu0  ;;  %v5244_v10 = vadd.f32 %v3875_v3, %v3874_v30  ;;  %v3877_v38 = vpop.f32.mrb[26].mxu1 }
 0x136   : > { %v3766_v41 = vpop.f32.mrb[27].mxu0  ;;  %v3878_v12 = vpop.f32.mrb[27].mxu1 }
 0x137   : > { %v5247_v23 = vadd.f32 %v3766_v41, %v3765_v9  ;;  %v5249_v24 = vadd.f32 %v3878_v12, %v3877_v38 }
 0x138   : > { %2544 = vmatmul.mubr.bf16.gmra.mrb[132].mxu0 %v5058_v25  ;;  %4251 = vmatmul.mubr.bf16.gmra.mrb[4].mxu1 %v4629_v35 }
 0x139   : > { %2551 = vmatprep.mubr.bf16.mxu0 %v5061_v26  ;;  %4254 = vmatprep.mubr.bf16.mxu1 %v4630_v40 }
 0x13b   : > { %v3768_v13 = vpop.f32.mrb[28].mxu0  ;;  %v3880_v44 = vpop.f32.mrb[28].mxu1 }
 0x13c   : > { %v3769_v46 = vpop.f32.mrb[29].mxu0  ;;  %v3881_v48 = vpop.f32.mrb[29].mxu1 }
 0x13d   : > { %v5254_v14 = vadd.f32 %v3769_v46, %v3768_v13  ;;  %v3771_v15 = vpop.f32.mrb[30].mxu0  ;;  %v5256_v52 = vadd.f32 %v3881_v48, %v3880_v44  ;;  %v3883_v54 = vpop.f32.mrb[30].mxu1 }
 0x13e   : > { %v3772_v25 = vpop.f32.mrb[31].mxu0  ;;  %v3884_v17 = vpop.f32.mrb[31].mxu1 }
 0x13f   : > { %v5260_v18 = vadd.f32 %v3772_v25, %v3771_v15  ;;  %v5262_v26 = vadd.f32 %v3884_v17, %v3883_v54 }
 0x140   : > { %2552 = vmatmul.mubr.bf16.gmra.mrb[136].mxu0 %v5068_v27  ;;  %4255 = vmatmul.mubr.bf16.gmra.mrb[8].mxu1 %v4631_v49 }
 0x141   : > { %2559 = vmatprep.mubr.bf16.mxu0 %v4632_v56  ;;  %4258 = vmatprep.mubr.bf16.mxu1 %v4634_v57 }
 0x143   : > { %v3774_v59 = vpop.f32.mrb[32].mxu0  ;;  %v3886_v62 = vpop.f32.mrb[32].mxu1 }
 0x144   : > { %v3775_v63 = vpop.f32.mrb[33].mxu0  ;;  %v3887_v2 = vpop.f32.mrb[33].mxu1 }
 0x145   : > { %v3776_v5 = vadd.f32 %v3775_v63, %v3774_v59  ;;  %v3777_v7 = vpop.f32.mrb[34].mxu0  ;;  %v5267_v8 = vadd.f32 %v3887_v2, %v3886_v62  ;;  %v3889_v42 = vpop.f32.mrb[34].mxu1 }
 0x146   : > { %v3778_v47 = vpop.f32.mrb[35].mxu0  ;;  %v3890_v11 = vpop.f32.mrb[35].mxu1 }
 0x147   : > { %v3779_v51 = vadd.f32 %v3778_v47, %v3777_v7  ;;  %v5269_v16 = vadd.f32 %v3890_v11, %v3889_v42 }
 0x148   : > { %2560 = vmatmul.mubr.bf16.gmra.mrb[140].mxu0 %v4635_v34  ;;  %4259 = vmatmul.mubr.bf16.gmra.mrb[12].mxu1 %v4636_v39 }
 0x14b   : > { %v3780_v27 = vpop.f32.mrb[36].mxu0  ;;  %v3892_v29 = vpop.f32.mrb[36].mxu1 }
 0x14c   : > { %v3781_v60 = vpop.f32.mrb[37].mxu0  ;;  %v3893_v61 = vpop.f32.mrb[37].mxu1 }
 0x14d   : > { %v3782_v0 = vadd.f32 %v3781_v60, %v3780_v27  ;;  %v3783_v1 = vpop.f32.mrb[38].mxu0  ;;  %v5271_v30 = vadd.f32 %v3893_v61, %v3892_v29  ;;  %v3895_v33 = vpop.f32.mrb[38].mxu1 }
 0x14e   : > { %v3784_v3 = vpop.f32.mrb[39].mxu0  ;;  %v3896_v35 = vpop.f32.mrb[39].mxu1 }
 0x14f   : > { %v3785_v9 = vadd.f32 %v3784_v3, %v3783_v1  ;;  %v5273_v38 = vadd.f32 %v3896_v35, %v3895_v33 }
 0x153   : > { %v3786_v40 = vpop.f32.mrb[40].mxu0  ;;  %v3898_v41 = vpop.f32.mrb[40].mxu1 }
 0x154   : > { %v3787_v12 = vpop.f32.mrb[41].mxu0  ;;  %v3899_v13 = vpop.f32.mrb[41].mxu1 }
 0x155   : > { %v3788_v44 = vadd.f32 %v3787_v12, %v3786_v40  ;;  %v3789_v46 = vpop.f32.mrb[42].mxu0  ;;  %v5275_v48 = vadd.f32 %v3899_v13, %v3898_v41  ;;  %v3901_v49 = vpop.f32.mrb[42].mxu1 }
 0x156   : > { %v3790_v15 = vpop.f32.mrb[43].mxu0  ;;  %v3902_v54 = vpop.f32.mrb[43].mxu1 }
 0x157   : > { %v3791_v56 = vadd.f32 %v3790_v15, %v3789_v46  ;;  %v5277_v57 = vadd.f32 %v3902_v54, %v3901_v49 }
 0x15b   : > { %v3792_v25 = vpop.f32.mrb[44].mxu0  ;;  %v3904_v17 = vpop.f32.mrb[44].mxu1 }
 0x15c   : > { %v3793_v59 = vpop.f32.mrb[45].mxu0  ;;  %v3905_v62 = vpop.f32.mrb[45].mxu1 }
 0x15d   : > { %v3794_v63 = vadd.f32 %v3793_v59, %v3792_v25  ;;  %v3795_v2 = vpop.f32.mrb[46].mxu0  ;;  %v5279_v34 = vadd.f32 %v3905_v62, %v3904_v17  ;;  %v3907_v39 = vpop.f32.mrb[46].mxu1 }
 0x15e   : > { %v3796_v7 = vpop.f32.mrb[47].mxu0  ;;  %v3908_v42 = vpop.f32.mrb[47].mxu1 }
 0x15f   : > { %v3797_v47 = vadd.f32 %v3796_v7, %v3795_v2  ;;  %v5281_v11 = vadd.f32 %v3908_v42, %v3907_v39 }
 0x163   : > { %v3798_v27 = vpop.f32.mrb[48].mxu0  ;;  %v3910_v29 = vpop.f32.mrb[48].mxu1 }
 0x164   : > { %v3799_v60 = vpop.f32.mrb[49].mxu0  ;;  %v3911_v61 = vpop.f32.mrb[49].mxu1 }
 0x165   : > { %v5283_v1 = vadd.f32 %v3799_v60, %v3798_v27  ;;  %v3912_v33 = vadd.f32 %v3911_v61, %v3910_v29  ;;  %v3801_v3 = vpop.f32.mrb[50].mxu0  ;;  %v3913_v35 = vpop.f32.mrb[50].mxu1 }
 0x166   : > { %v3802_v40 = vpop.f32.mrb[51].mxu0  ;;  %v3914_v41 = vpop.f32.mrb[51].mxu1 }
 0x167   : > { %v5285_v12 = vadd.f32 %v3912_v33, %v3776_v5  ;;  %v5287_v13 = vadd.f32 %v3802_v40, %v3801_v3  ;;  %v3915_v46 = vadd.f32 %v3914_v41, %v3913_v35 }
 0x169   : > { %v5289_v49 = vadd.f32 %v3915_v46, %v3779_v51 }
 0x16b   : > { %v3804_v15 = vpop.f32.mrb[52].mxu0  ;;  %v3916_v54 = vpop.f32.mrb[52].mxu1 }
 0x16c   : > { %v3805_v25 = vpop.f32.mrb[53].mxu0  ;;  %v3917_v17 = vpop.f32.mrb[53].mxu1 }
 0x16d   : > { %v5291_v59 = vadd.f32 %v3805_v25, %v3804_v15  ;;  %v3918_v62 = vadd.f32 %v3917_v17, %v3916_v54  ;;  %v3807_v2 = vpop.f32.mrb[54].mxu0  ;;  %v3919_v39 = vpop.f32.mrb[54].mxu1 }
 0x16e   : > { %v3808_v7 = vpop.f32.mrb[55].mxu0  ;;  %v3920_v42 = vpop.f32.mrb[55].mxu1 }
 0x16f   : > { %v5293_v27 = vadd.f32 %v3918_v62, %v3782_v0  ;;  %v5295_v5 = vadd.f32 %v3808_v7, %v3807_v2  ;;  %v3921_v29 = vadd.f32 %v3920_v42, %v3919_v39 }
 0x171   : > { %v5297_v60 = vadd.f32 %v3921_v29, %v3785_v9 }
 0x173   : > { %5558 = vst [vmem:[#allocation2_spill] sm:$0xff] %v5297_v60  ;;  %v3810_v51 = vpop.f32.mrb[56].mxu0  ;;  %v3922_v61 = vpop.f32.mrb[56].mxu1 }
 0x174   : > { %v3811_v33 = vpop.f32.mrb[57].mxu0  ;;  %v3923_v3 = vpop.f32.mrb[57].mxu1 }
 0x175   : > { %v5299_v35 = vadd.f32 %v3811_v33, %v3810_v51  ;;  %v3924_v40 = vadd.f32 %v3923_v3, %v3922_v61  ;;  %v3813_v41 = vpop.f32.mrb[58].mxu0  ;;  %v3925_v46 = vpop.f32.mrb[58].mxu1 }
 0x176   : > { %v3814_v15 = vpop.f32.mrb[59].mxu0  ;;  %v3926_v54 = vpop.f32.mrb[59].mxu1 }
 0x177   : > { %v5301_v25 = vadd.f32 %v3924_v40, %v3788_v44  ;;  %v5303_v0 = vadd.f32 %v3814_v15, %v3813_v41  ;;  %v3927_v17 = vadd.f32 %v3926_v54, %v3925_v46 }
 0x179   : > { %v5305_v62 = vadd.f32 %v3927_v17, %v3791_v56 }
 0x17b   : > { %5559 = vst [vmem:[#allocation3_spill] sm:$0xff] %v5305_v62  ;;  %v3816_v9 = vpop.f32.mrb[60].mxu0  ;;  %v3928_v2 = vpop.f32.mrb[60].mxu1 }
 0x17c   : > { %v3817_v39 = vpop.f32.mrb[61].mxu0  ;;  %v3929_v7 = vpop.f32.mrb[61].mxu1 }
 0x17d   : > { %v5307_v42 = vadd.f32 %v3817_v39, %v3816_v9  ;;  %v3930_v29 = vadd.f32 %v3929_v7, %v3928_v2  ;;  %v3819_v51 = vpop.f32.mrb[62].mxu0  ;;  %v3931_v61 = vpop.f32.mrb[62].mxu1 }
 0x17e   : > { %v3820_v33 = vpop.f32.mrb[63].mxu0  ;;  %v3932_v3 = vpop.f32.mrb[63].mxu1 }
 0x17f   : > { %v5309_v60 = vadd.f32 %v3930_v29, %v3794_v63  ;;  %v5311_v44 = vadd.f32 %v3820_v33, %v3819_v51  ;;  %v3933_v40 = vadd.f32 %v3932_v3, %v3931_v61 }
 0x181   : > { %v5313_v41 = vadd.f32 %v3933_v40, %v3797_v47 }
 0x183   : > { %v4136_v56 = vpop.f32.mrb[64].mxu0  ;;  %v3934_v46 = vpop.f32.mrb[64].mxu1 }
 0x184   : > { %v1053_v15 = vadd.f32 %v4136_v56, %v5194_v37  ;;  %v1044_v54 = vpop.f32.mrb[65].mxu0  ;;  %v3935_v17 = vpop.f32.mrb[65].mxu1 }
 0x185   : > { %v1045_v9 = vadd.f32 %v5186_v32, %v1044_v54  ;;  %v3936_v2 = vadd.f32 %v3935_v17, %v3934_v46  ;;  %v4137_v39 = vpop.f32.mrb[66].mxu0  ;;  %v3937_v7 = vpop.f32.mrb[66].mxu1 }
 0x186   : > { %v5318_v62 = vadd.f32 %v5232_v28, %v1053_v15  ;;  %v1056_v63 = vadd.f32 %v4137_v39, %v5197_v43  ;;  %v1047_v29 = vpop.f32.mrb[67].mxu0  ;;  %v3938_v51 = vpop.f32.mrb[67].mxu1 }
 0x187   : > { %v5322_v47 = vadd.f32 %v5220_v4, %v1045_v9  ;;  %v5325_v61 = vadd.f32 %v3936_v2, %v5283_v1  ;;  %v1048_v37 = vadd.f32 %v5189_v36, %v1047_v29  ;;  %v3939_v33 = vadd.f32 %v3938_v51, %v3937_v7 }
 0x188   : > { %v5329_v32 = vadd.f32 %v5237_v22, %v1056_v63 }
 0x189   : > { %v5332_v3 = vadd.f32 %v5225_v20, %v1048_v37  ;;  %v5335_v28 = vadd.f32 %v3939_v33, %v5287_v13 }
 0x18b   : > { %v4140_v43 = vpop.f32.mrb[68].mxu0  ;;  %v3940_v40 = vpop.f32.mrb[68].mxu1 }
 0x18c   : > { %v1069_v4 = vadd.f32 %v4140_v43, %v5210_v53  ;;  %v1060_v56 = vpop.f32.mrb[69].mxu0  ;;  %v3941_v46 = vpop.f32.mrb[69].mxu1 }
 0x18d   : > { %v1061_v1 = vadd.f32 %v5202_v45, %v1060_v56  ;;  %v3942_v15 = vadd.f32 %v3941_v46, %v3940_v40  ;;  %v4141_v36 = vpop.f32.mrb[70].mxu0  ;;  %v3943_v54 = vpop.f32.mrb[70].mxu1 }
 0x18e   : > { %v5340_v22 = vadd.f32 %v5256_v52, %v1069_v4  ;;  %v1072_v20 = vadd.f32 %v4141_v36, %v5213_v58  ;;  %v1063_v17 = vpop.f32.mrb[71].mxu0  ;;  %v3944_v9 = vpop.f32.mrb[71].mxu1 }
 0x18f   : > { %v5344_v13 = vadd.f32 %v5244_v10, %v1061_v1  ;;  %v5347_v2 = vadd.f32 %v3942_v15, %v5291_v59  ;;  %v1064_v53 = vadd.f32 %v5205_v50, %v1063_v17  ;;  %v3945_v39 = vadd.f32 %v3944_v9, %v3943_v54 }
 0x190   : > { %v5351_v45 = vadd.f32 %v5262_v26, %v1072_v20 }
 0x191   : > { %v5354_v7 = vadd.f32 %v5249_v24, %v1064_v53  ;;  %v5357_v52 = vadd.f32 %v3945_v39, %v5295_v5 }
 0x193   : > { %v4144_v58 = vpop.f32.mrb[72].mxu0  ;;  %v3946_v63 = vpop.f32.mrb[72].mxu1 }
 0x194   : > { %v1085_v10 = vadd.f32 %v4144_v58, %v5230_v55  ;;  %v1076_v29 = vpop.f32.mrb[73].mxu0  ;;  %v3947_v51 = vpop.f32.mrb[73].mxu1 }
 0x195   : > { %v1077_v59 = vadd.f32 %v5218_v31, %v1076_v29  ;;  %v3948_v37 = vadd.f32 %v3947_v51, %v3946_v63  ;;  %v4145_v50 = vpop.f32.mrb[74].mxu0  ;;  %v3949_v33 = vpop.f32.mrb[74].mxu1 }
 0x196   : > { %v5362_v26 = vadd.f32 %v5271_v30, %v1085_v10  ;;  %v1088_v24 = vadd.f32 %v4145_v50, %v5235_v21  ;;  %v1079_v43 = vpop.f32.mrb[75].mxu0  ;;  %v3950_v40 = vpop.f32.mrb[75].mxu1 }
 0x197   : > { %v5366_v5 = vadd.f32 %v5267_v8, %v1077_v59  ;;  %v5369_v4 = vadd.f32 %v3948_v37, %v5299_v35  ;;  %v1080_v55 = vadd.f32 %v5223_v19, %v1079_v43  ;;  %v3951_v56 = vadd.f32 %v3950_v40, %v3949_v33 }
 0x198   : > { %v5373_v31 = vadd.f32 %v5273_v38, %v1088_v24 }
 0x199   : > { %v1641_v46 = vadd.f32 %v5269_v16, %v1080_v55  ;;  %v5377_v30 = vadd.f32 %v3951_v56, %v5303_v0 }
 0x19b   : > { %v4148_v21 = vpop.f32.mrb[76].mxu0  ;;  %v3952_v1 = vpop.f32.mrb[76].mxu1 }
 0x19c   : > { %v1101_v15 = vadd.f32 %v4148_v21, %v5254_v14  ;;  %v1092_v8 = vpop.f32.mrb[77].mxu0  ;;  %v3953_v36 = vpop.f32.mrb[77].mxu1 }
 0x19d   : > { %v1093_v35 = vadd.f32 %v5242_v6, %v1092_v8  ;;  %v3954_v54 = vadd.f32 %v3953_v36, %v3952_v1  ;;  %v4149_v20 = vpop.f32.mrb[78].mxu0  ;;  %v3955_v19 = vpop.f32.mrb[78].mxu1 }
 0x19e   : > { %v5382_v17 = vadd.f32 %v5279_v34, %v1101_v15  ;;  %v1104_v38 = vadd.f32 %v4149_v20, %v5260_v18  ;;  %v1095_v16 = vpop.f32.mrb[79].mxu0  ;;  %v3956_v9 = vpop.f32.mrb[79].mxu1 }
 0x19f   : > { %v1654_v0 = vadd.f32 %v5275_v48, %v1093_v35  ;;  %v5387_v53 = vadd.f32 %v3954_v54, %v5307_v42  ;;  %v1096_v14 = vadd.f32 %v5247_v23, %v1095_v16  ;;  %v3957_v39 = vadd.f32 %v3956_v9, %v3955_v19 }
 0x1a0   : > { %v5391_v6 = vadd.f32 %v5281_v11, %v1104_v38 }
 0x1a1   : > { %v1657_v58 = vadd.f32 %v5277_v57, %v1096_v14  ;;  %v5395_v34 = vadd.f32 %v3957_v39, %v5311_v44 }
 0x1a3   : > { %v3998_v63 = vpop.f32.mrb[80].mxu0 }
 0x1a4   : > { %v3999_v18 = vpop.f32.mrb[81].mxu0 }
 0x1a5   : > { %v4000_v10 = vadd.f32 %v3999_v18, %v3998_v63  ;;  %v4001_v29 = vpop.f32.mrb[82].mxu0 }
 0x1a6   : > { %v4002_v51 = vpop.f32.mrb[83].mxu0 }
 0x1a7   : > { %v4003_v48 = vadd.f32 %v4002_v51, %v4001_v29  ;;  %v5398_v42 = vadd.f32 %v4000_v10, %v5322_v47 }
 0x1a9   : > { %v5401_v23 = vadd.f32 %v4003_v48, %v5332_v3 }
 0x1ab   : > { %v4004_v59 = vpop.f32.mrb[84].mxu0 }
 0x1ac   : > { %v4005_v11 = vpop.f32.mrb[85].mxu0 }
 0x1ad   : > { %v4006_v37 = vadd.f32 %v4005_v11, %v4004_v59  ;;  %v4007_v50 = vpop.f32.mrb[86].mxu0 }
 0x1ae   : > { %v4008_v57 = vpop.f32.mrb[87].mxu0 }
 0x1af   : > { %v4009_v33 = vadd.f32 %v4008_v57, %v4007_v50  ;;  %v4280_v44 = vadd.f32 %v4006_v37, %v5318_v62 }
 0x1b1   : > { %v4288_v24 = vadd.f32 %v4009_v33, %v5329_v32 }
 0x1b3   : > { %v4010_v43 = vpop.f32.mrb[88].mxu0 }
 0x1b4   : > { %v4011_v40 = vpop.f32.mrb[89].mxu0 }
 0x1b5   : > { %v4012_v55 = vadd.f32 %v4011_v40, %v4010_v43  ;;  %v4013_v56 = vpop.f32.mrb[90].mxu0 }
 0x1b6   : > { %v4014_v21 = vpop.f32.mrb[91].mxu0 }
 0x1b7   : > { %v4015_v47 = vadd.f32 %v4014_v21, %v4013_v56  ;;  %v5406_v1 = vadd.f32 %v4012_v55, %v5344_v13 }
 0x1b9   : > { %v5409_v3 = vadd.f32 %v4015_v47, %v5354_v7 }
 0x1bb   : > { %v4016_v15 = vpop.f32.mrb[92].mxu0 }
 0x1bc   : > { %v4017_v8 = vpop.f32.mrb[93].mxu0 }
 0x1bd   : > { %v4018_v36 = vadd.f32 %v4017_v8, %v4016_v15  ;;  %v4019_v35 = vpop.f32.mrb[94].mxu0 }
 0x1be   : > { %v4020_v54 = vpop.f32.mrb[95].mxu0 }
 0x1bf   : > { %v4021_v62 = vadd.f32 %v4020_v54, %v4019_v35  ;;  %v5412_v32 = vadd.f32 %v4018_v36, %v5340_v22 }
 0x1c1   : > { %v5415_v20 = vadd.f32 %v4021_v62, %v5351_v45 }
 0x1c3   : > { %v4022_v19 = vpop.f32.mrb[96].mxu0 }
 0x1c4   : > { %v4023_v38 = vpop.f32.mrb[97].mxu0 }
 0x1c5   : > { %v4024_v16 = vadd.f32 %v4023_v38, %v4022_v19  ;;  %v4025_v13 = vpop.f32.mrb[98].mxu0 }
 0x1c6   : > { %v4026_v9 = vpop.f32.mrb[99].mxu0 }
 0x1c7   : > { %v4027_v14 = vadd.f32 %v4026_v9, %v4025_v13  ;;  %v5418_v7 = vadd.f32 %v4024_v16, %v5366_v5 }
 0x1c9   : > { %v5420_v39 = vadd.f32 %v4027_v14, %v1641_v46 }
 0x1cb   : > { %v4028_v63 = vpop.f32.mrb[100].mxu0 }
 0x1cc   : > { %v4029_v18 = vpop.f32.mrb[101].mxu0 }
 0x1cd   : > { %v4030_v10 = vadd.f32 %v4029_v18, %v4028_v63  ;;  %v4031_v29 = vpop.f32.mrb[102].mxu0 }
 0x1ce   : > { %v4032_v22 = vpop.f32.mrb[103].mxu0 }
 0x1cf   : > { %v4033_v51 = vadd.f32 %v4032_v22, %v4031_v29  ;;  %v5423_v45 = vadd.f32 %v4030_v10, %v5362_v26 }
 0x1d1   : > { %v5426_v48 = vadd.f32 %v4033_v51, %v5373_v31 }
 0x1d3   : > { %v4034_v59 = vpop.f32.mrb[104].mxu0 }
 0x1d4   : > { %v4035_v11 = vpop.f32.mrb[105].mxu0 }
 0x1d5   : > { %v4036_v37 = vadd.f32 %v4035_v11, %v4034_v59  ;;  %v4037_v50 = vpop.f32.mrb[106].mxu0 }
 0x1d6   : > { %v4038_v5 = vpop.f32.mrb[107].mxu0 }
 0x1d7   : > { %v4039_v57 = vadd.f32 %v4038_v5, %v4037_v50  ;;  %v5428_v46 = vadd.f32 %v4036_v37, %v1654_v0  ;;  %v5441_v0 = vld [vmem:[%s5556_s2] ss:$0 sm:$0xff] }
 0x1d9   : > { %v5430_v33 = vadd.f32 %v4039_v57, %v1657_v58 }
 0x1db   : > { %v4040_v43 = vpop.f32.mrb[108].mxu0 }
 0x1dc   : > { %v4041_v40 = vpop.f32.mrb[109].mxu0 }
 0x1dd   : > { %v4042_v55 = vadd.f32 %v4041_v40, %v4040_v43  ;;  %v4043_v56 = vpop.f32.mrb[110].mxu0 }
 0x1de   : > { %v4044_v21 = vpop.f32.mrb[111].mxu0 }
 0x1df   : > { %v4045_v26 = vadd.f32 %v4044_v21, %v4043_v56  ;;  %v5433_v47 = vadd.f32 %v4042_v55, %v5382_v17 }
 0x1e1   : > { %v5436_v31 = vadd.f32 %v4045_v26, %v5391_v6 }
 0x1e3   : > { %v4046_v15 = vpop.f32.mrb[112].mxu0  ;;  %v4232_v8 = vpop.f32.mrb[80].mxu1 }
 0x1e4   : > { %v4281_v58 = vadd.f32 %v4280_v44, %v4232_v8  ;;  %v4047_v36 = vpop.f32.mrb[113].mxu0  ;;  %v2602_v35 = vpop.f32.mrb[81].mxu1 }
 0x1e5   : > { %v4048_v54 = vadd.f32 %v4047_v36, %v4046_v15  ;;  %v4285_v62 = vadd.f32 %v5398_v42, %v2602_v35  ;;  %v4049_v19 = vpop.f32.mrb[114].mxu0  ;;  %v4233_v17 = vpop.f32.mrb[82].mxu1  ;;  %v5560_v35 = vld [vmem:[#allocation2_spill] sm:$0xff] }
 0x1e6   : > { %v2770_v38 = vadd.f32 %v4281_v58, %v5441_v0  ;;  %v4289_v6 = vadd.f32 %v4288_v24, %v4233_v17  ;;  %v4050_v16 = vpop.f32.mrb[115].mxu0  ;;  %v2605_v13 = vpop.f32.mrb[83].mxu1 }
 0x1e7   : > { %v2768_v9 = vadd.f32 %v4285_v62, %v5441_v0  ;;  %v4051_v14 = vadd.f32 %v4050_v16, %v4049_v19  ;;  %v4293_v63 = vadd.f32 %v5401_v23, %v2605_v13  ;;  %v5448_v18 = vadd.f32 %v5285_v12, %v4048_v54 }
 0x1e8   : > { %v2771_v44 = vadd.f32 %v4289_v6, %v5441_v0  ;;  %v2802_v29 = vmax.f32 %v2770_v38, 0.0 }
 0x1e9   : > { %v2769_v42 = vadd.f32 %v4293_v63, %v5441_v0  ;;  %v5454_v10 = vadd.f32 %v5289_v49, %v4051_v14  ;;  %v2800_v22 = vmax.f32 %v2768_v9, 0.0 }
 0x1ea   : > { %v2803_v24 = vmax.f32 %v2771_v44, 0.0 }
 0x1eb   : > { %v2801_v23 = vmax.f32 %v2769_v42, 0.0  ;;  %v4052_v12 = vpop.f32.mrb[116].mxu0  ;;  %v4236_v51 = vpop.f32.mrb[84].mxu1 }
 0x1ec   : > { %v3623_v59 = vpack.c.bf16 %v2803_v24, %v2802_v29  ;;  %v4297_v11 = vadd.f32 %v5412_v32, %v4236_v51  ;;  %v4053_v37 = vpop.f32.mrb[117].mxu0  ;;  %v2618_v50 = vpop.f32.mrb[85].mxu1 }
 0x1ed   : > { %v3618_v49 = vpack.c.bf16 %v2801_v23, %v2800_v22  ;;  %v4054_v5 = vadd.f32 %v4053_v37, %v4052_v12  ;;  %v4301_v57 = vadd.f32 %v5406_v1, %v2618_v50  ;;  %v4055_v43 = vpop.f32.mrb[118].mxu0  ;;  %v4237_v40 = vpop.f32.mrb[86].mxu1  ;;  %v5561_v37 = vld [vmem:[#allocation3_spill] sm:$0xff] }
 0x1ee   : > { %3695 = vst [vmem:[%s5459_s7 + $0x8] sm:$0xff] %v3623_v59   ;;  %v2774_v55 = vadd.f32 %v4297_v11, %v5441_v0  ;;  %v4305_v56 = vadd.f32 %v5415_v20, %v4237_v40  ;;  %v4056_v21 = vpop.f32.mrb[119].mxu0  ;;  %v2621_v26 = vpop.f32.mrb[87].mxu1 }
 0x1ef   : > { %3619 = vst [vmem:[%s5459_s7] sm:$0xff] %v3618_v49   ;;  %v2772_v15 = vadd.f32 %v4301_v57, %v5441_v0  ;;  %v4057_v8 = vadd.f32 %v4056_v21, %v4055_v43  ;;  %v4309_v32 = vadd.f32 %v5409_v3, %v2621_v26  ;;  %v5470_v58 = vadd.f32 %v5293_v27, %v4054_v5 }
 0x1f0   : > { %v2775_v1 = vadd.f32 %v4305_v56, %v5441_v0  ;;  %v2806_v20 = vmax.f32 %v2774_v55, 0.0 }
 0x1f1   : > { %v2773_v36 = vadd.f32 %v4309_v32, %v5441_v0  ;;  %v5475_v54 = vadd.f32 %v5560_v35, %v4057_v8  ;;  %v2804_v19 = vmax.f32 %v2772_v15, 0.0 }
 0x1f2   : > { %v2807_v62 = vmax.f32 %v2775_v1, 0.0 }
 0x1f3   : > { %v2805_v17 = vmax.f32 %v2773_v36, 0.0  ;;  %v4058_v38 = vpop.f32.mrb[120].mxu0  ;;  %v4240_v6 = vpop.f32.mrb[88].mxu1 }
 0x1f4   : > { %v3633_v16 = vpack.c.bf16 %v2807_v62, %v2806_v20  ;;  %v4313_v3 = vadd.f32 %v5423_v45, %v4240_v6  ;;  %v4059_v27 = vpop.f32.mrb[121].mxu0  ;;  %v2634_v13 = vpop.f32.mrb[89].mxu1 }
 0x1f5   : > { %v3628_v9 = vpack.c.bf16 %v2805_v17, %v2804_v19  ;;  %v4060_v14 = vadd.f32 %v4059_v27, %v4058_v38  ;;  %v4317_v63 = vadd.f32 %v5418_v7, %v2634_v13  ;;  %v4061_v44 = vpop.f32.mrb[122].mxu0  ;;  %v4241_v42 = vpop.f32.mrb[90].mxu1 }
 0x1f6   : > { %3697 = vst [vmem:[%s5459_s7 + $0x18] sm:$0xff] %v3633_v16   ;;  %v2778_v29 = vadd.f32 %v4313_v3, %v5441_v0  ;;  %v4321_v24 = vadd.f32 %v5426_v48, %v4241_v42  ;;  %v4062_v22 = vpop.f32.mrb[123].mxu0  ;;  %v2637_v23 = vpop.f32.mrb[91].mxu1 }
 0x1f7   : > { %3696 = vst [vmem:[%s5459_s7 + $0x10] sm:$0xff] %v3628_v9   ;;  %v2776_v12 = vadd.f32 %v4317_v63, %v5441_v0  ;;  %v4063_v51 = vadd.f32 %v4062_v22, %v4061_v44  ;;  %v4325_v45 = vadd.f32 %v5420_v39, %v2637_v23  ;;  %v5486_v59 = vadd.f32 %v5301_v25, %v4060_v14 }
 0x1f8   : > { %v2779_v7 = vadd.f32 %v4321_v24, %v5441_v0  ;;  %v2810_v48 = vmax.f32 %v2778_v29, 0.0 }
 0x1f9   : > { %v2777_v11 = vadd.f32 %v4325_v45, %v5441_v0  ;;  %v5491_v50 = vadd.f32 %v5561_v37, %v4063_v51  ;;  %v2808_v5 = vmax.f32 %v2776_v12, 0.0 }
 0x1fa   : > { %v2811_v49 = vmax.f32 %v2779_v7, 0.0 }
 0x1fb   : > { %v2809_v57 = vmax.f32 %v2777_v11, 0.0  ;;  %v4064_v43 = vpop.f32.mrb[124].mxu0  ;;  %v4244_v40 = vpop.f32.mrb[92].mxu1 }
 0x1fc   : > { %v3643_v55 = vpack.c.bf16 %v2811_v49, %v2810_v48  ;;  %v4329_v39 = vadd.f32 %v5433_v47, %v4244_v40  ;;  %v4065_v25 = vpop.f32.mrb[125].mxu0  ;;  %v2650_v56 = vpop.f32.mrb[93].mxu1 }
 0x1fd   : > { %v3638_v21 = vpack.c.bf16 %v2809_v57, %v2808_v5  ;;  %v4066_v26 = vadd.f32 %v4065_v25, %v4064_v43  ;;  %v4333_v15 = vadd.f32 %v5428_v46, %v2650_v56  ;;  %v4067_v8 = vpop.f32.mrb[126].mxu0  ;;  %v4245_v32 = vpop.f32.mrb[94].mxu1 }
 0x1fe   : > { %3699 = vst [vmem:[%s5459_s7 + $0x28] sm:$0xff] %v3643_v55   ;;  %v2782_v1 = vadd.f32 %v4329_v39, %v5441_v0  ;;  %v4337_v36 = vadd.f32 %v5436_v31, %v4245_v32  ;;  %v4068_v35 = vpop.f32.mrb[127].mxu0  ;;  %v2653_v20 = vpop.f32.mrb[95].mxu1 }
 0x1ff   : > { %3698 = vst [vmem:[%s5459_s7 + $0x20] sm:$0xff] %v3638_v21   ;;  %v2780_v62 = vadd.f32 %v4333_v15, %v5441_v0  ;;  %v4069_v19 = vadd.f32 %v4068_v35, %v4067_v8  ;;  %v4341_v47 = vadd.f32 %v5430_v33, %v2653_v20  ;;  %v4355_v17 = vadd.f32 %v5309_v60, %v4066_v26 }
 0x200   : > { %v2783_v38 = vadd.f32 %v4337_v36, %v5441_v0  ;;  %v2814_v16 = vmax.f32 %v2782_v1, 0.0 }
 0x201   : > { %v2781_v46 = vadd.f32 %v4341_v47, %v5441_v0  ;;  %v4361_v6 = vadd.f32 %v5313_v41, %v4069_v19  ;;  %v2812_v31 = vmax.f32 %v2780_v62, 0.0 }
 0x202   : > { %v2815_v3 = vmax.f32 %v2783_v38, 0.0 }
 0x203   : > { %v2813_v27 = vmax.f32 %v2781_v46, 0.0  ;;  %v4070_v13 = vpop.f32.mrb[128].mxu0  ;;  %v4248_v9 = vpop.f32.mrb[0].mxu1 }
 0x204   : > { %v3653_v14 = vpack.c.bf16 %v2815_v3, %v2814_v16  ;;  %v4344_v63 = vadd.f32 %v5470_v58, %v4248_v9  ;;  %v4071_v33 = vpop.f32.mrb[129].mxu0  ;;  %v2666_v44 = vpop.f32.mrb[1].mxu1 }
 0x205   : > { %v3648_v60 = vpack.c.bf16 %v2813_v27, %v2812_v31  ;;  %v4072_v42 = vadd.f32 %v4071_v33, %v4070_v13  ;;  %v4347_v29 = vadd.f32 %v5448_v18, %v2666_v44  ;;  %v4073_v24 = vpop.f32.mrb[130].mxu0  ;;  %v4249_v22 = vpop.f32.mrb[2].mxu1 }
 0x206   : > { %3701 = vst [vmem:[%s5459_s7 + $0x38] sm:$0xff] %v3653_v14   ;;  %v2786_v41 = vadd.f32 %v4344_v63, %v5441_v0  ;;  %v4350_v23 = vadd.f32 %v5475_v54, %v4249_v22  ;;  %v4074_v12 = vpop.f32.mrb[131].mxu0  ;;  %v2669_v51 = vpop.f32.mrb[3].mxu1 }
 0x207   : > { %3700 = vst [vmem:[%s5459_s7 + $0x30] sm:$0xff] %v3648_v60   ;;  %v2784_v45 = vadd.f32 %v4347_v29, %v5441_v0  ;;  %v4075_v7 = vadd.f32 %v4074_v12, %v4073_v24  ;;  %v4353_v58 = vadd.f32 %v5454_v10, %v2669_v51  ;;  %v4370_v11 = vadd.f32 %v5325_v61, %v4072_v42 }
 0x208   : > { %v2787_v37 = vadd.f32 %v4350_v23, %v5441_v0  ;;  %v2818_v49 = vmax.f32 %v2786_v41, 0.0 }
 0x209   : > { %v2785_v18 = vadd.f32 %v4353_v58, %v5441_v0  ;;  %v4376_v48 = vadd.f32 %v5335_v28, %v4075_v7  ;;  %v2816_v54 = vmax.f32 %v2784_v45, 0.0 }
 0x20a   : > { %v2819_v5 = vmax.f32 %v2787_v37, 0.0 }
 0x20b   : > { %v2817_v57 = vmax.f32 %v2785_v18, 0.0  ;;  %v4076_v43 = vpop.f32.mrb[132].mxu0  ;;  %v4252_v40 = vpop.f32.mrb[4].mxu1 }
 0x20c   : > { %v3663_v55 = vpack.c.bf16 %v2819_v5, %v2818_v49  ;;  %v4356_v39 = vadd.f32 %v4355_v17, %v4252_v40  ;;  %v4077_v25 = vpop.f32.mrb[133].mxu0  ;;  %v2682_v10 = vpop.f32.mrb[5].mxu1 }
 0x20d   : > { %v3658_v56 = vpack.c.bf16 %v2817_v57, %v2816_v54  ;;  %v4078_v61 = vadd.f32 %v4077_v25, %v4076_v43  ;;  %v4359_v21 = vadd.f32 %v5486_v59, %v2682_v10  ;;  %v4079_v26 = vpop.f32.mrb[134].mxu0  ;;  %v4253_v15 = vpop.f32.mrb[6].mxu1 }
 0x20e   : > { %3703 = vst [vmem:[%s5459_s7 + $0x48] sm:$0xff] %v3663_v55   ;;  %v2790_v28 = vadd.f32 %v4356_v39, %v5441_v0  ;;  %v4362_v8 = vadd.f32 %v4361_v6, %v4253_v15  ;;  %v4080_v32 = vpop.f32.mrb[135].mxu0  ;;  %v2685_v1 = vpop.f32.mrb[7].mxu1 }
 0x20f   : > { %3702 = vst [vmem:[%s5459_s7 + $0x40] sm:$0xff] %v3658_v56   ;;  %v2788_v36 = vadd.f32 %v4359_v21, %v5441_v0  ;;  %v4081_v35 = vadd.f32 %v4080_v32, %v4079_v26  ;;  %v4365_v20 = vadd.f32 %v5491_v50, %v2685_v1  ;;  %v4367_v62 = vadd.f32 %v5347_v2, %v4078_v61 }
 0x210   : > { %v2791_v19 = vadd.f32 %v4362_v8, %v5441_v0  ;;  %v2822_v17 = vmax.f32 %v2790_v28, 0.0 }
 0x211   : > { %v2789_v59 = vadd.f32 %v4365_v20, %v5441_v0  ;;  %v4373_v47 = vadd.f32 %v5357_v52, %v4081_v35  ;;  %v2820_v46 = vmax.f32 %v2788_v36, 0.0 }
 0x212   : > { %v2823_v38 = vmax.f32 %v2791_v19, 0.0 }
 0x213   : > { %v2821_v6 = vmax.f32 %v2789_v59, 0.0  ;;  %v4082_v16 = vpop.f32.mrb[136].mxu0  ;;  %v4256_v3 = vpop.f32.mrb[8].mxu1 }
 0x214   : > { %v3673_v31 = vpack.c.bf16 %v2823_v38, %v2822_v17  ;;  %v4368_v27 = vadd.f32 %v4367_v62, %v4256_v3  ;;  %v4083_v13 = vpop.f32.mrb[137].mxu0  ;;  %v2698_v50 = vpop.f32.mrb[9].mxu1 }
 0x215   : > { %v3668_v9 = vpack.c.bf16 %v2821_v6, %v2820_v46  ;;  %v4084_v2 = vadd.f32 %v4083_v13, %v4082_v16  ;;  %v4371_v14 = vadd.f32 %v4370_v11, %v2698_v50  ;;  %v4085_v63 = vpop.f32.mrb[138].mxu0  ;;  %v4257_v33 = vpop.f32.mrb[10].mxu1 }
 0x216   : > { %3705 = vst [vmem:[%s5459_s7 + $0x58] sm:$0xff] %v3673_v31   ;;  %v2794_v52 = vadd.f32 %v4368_v27, %v5441_v0  ;;  %v4374_v44 = vadd.f32 %v4373_v47, %v4257_v33  ;;  %v4086_v60 = vpop.f32.mrb[139].mxu0  ;;  %v2701_v42 = vpop.f32.mrb[11].mxu1 }
 0x217   : > { %3704 = vst [vmem:[%s5459_s7 + $0x50] sm:$0xff] %v3668_v9   ;;  %v2792_v29 = vadd.f32 %v4371_v14, %v5441_v0  ;;  %v4087_v24 = vadd.f32 %v4086_v60, %v4085_v63  ;;  %v4377_v22 = vadd.f32 %v4376_v48, %v2701_v42  ;;  %v4382_v41 = vadd.f32 %v5369_v4, %v4084_v2 }
 0x218   : > { %v2795_v23 = vadd.f32 %v4374_v44, %v5441_v0  ;;  %v2826_v45 = vmax.f32 %v2794_v52, 0.0 }
 0x219   : > { %v2793_v12 = vadd.f32 %v4377_v22, %v5441_v0  ;;  %v4388_v51 = vadd.f32 %v5377_v30, %v4087_v24  ;;  %v2824_v58 = vmax.f32 %v2792_v29, 0.0 }
 0x21a   : > { %v2827_v7 = vmax.f32 %v2795_v23, 0.0 }
 0x21b   : > { %v2825_v11 = vmax.f32 %v2793_v12, 0.0  ;;  %v4088_v37 = vpop.f32.mrb[140].mxu0  ;;  %v4260_v18 = vpop.f32.mrb[12].mxu1 }
 0x21c   : > { %v3683_v49 = vpack.c.bf16 %v2827_v7, %v2826_v45  ;;  %v4089_v5 = vpop.f32.mrb[141].mxu0  ;;  %v2714_v54 = vpop.f32.mrb[13].mxu1 }
 0x21d   : > { %v3678_v48 = vpack.c.bf16 %v2825_v11, %v2824_v58  ;;  %v4090_v57 = vadd.f32 %v4089_v5, %v4088_v37  ;;  %v4383_v4 = vadd.f32 %v4382_v41, %v2714_v54  ;;  %v4091_v43 = vpop.f32.mrb[142].mxu0  ;;  %v4261_v40 = vpop.f32.mrb[14].mxu1 }
 0x21e   : > { %3707 = vst [vmem:[%s5459_s7 + $0x68] sm:$0xff] %v3683_v49   ;;  %v4092_v55 = vpop.f32.mrb[143].mxu0  ;;  %v2717_v39 = vpop.f32.mrb[15].mxu1 }
 0x21f   : > { %3706 = vst [vmem:[%s5459_s7 + $0x60] sm:$0xff] %v3678_v48   ;;  %v4379_v30 = vadd.f32 %v5387_v53, %v4090_v57  ;;  %v2796_v25 = vadd.f32 %v4383_v4, %v5441_v0  ;;  %v4093_v10 = vadd.f32 %v4092_v55, %v4091_v43  ;;  %v4389_v56 = vadd.f32 %v4388_v51, %v2717_v39 }
 0x221   : > { %v4380_v61 = vadd.f32 %v4379_v30, %v4260_v18  ;;  %v4385_v21 = vadd.f32 %v5395_v34, %v4093_v10  ;;  %v2797_v26 = vadd.f32 %v4389_v56, %v5441_v0  ;;  %v2828_v28 = vmax.f32 %v2796_v25, 0.0 }
 0x223   : > { %v2798_v15 = vadd.f32 %v4380_v61, %v5441_v0  ;;  %v4386_v8 = vadd.f32 %v4385_v21, %v4261_v40  ;;  %v2829_v32 = vmax.f32 %v2797_v26, 0.0 }
 0x225   : > { %v2799_v1 = vadd.f32 %v4386_v8, %v5441_v0  ;;  %v3688_v36 = vpack.c.bf16 %v2829_v32, %v2828_v28  ;;  %v2830_v35 = vmax.f32 %v2798_v15, 0.0 }
 0x227   : > { %v2831_v53 = vmax.f32 %v2799_v1, 0.0  ;;  %3708 = vst [vmem:[%s5459_s7 + $0x70] sm:$0xff] %v3688_v36  }
 0x229   : > { %v3693_v20 = vpack.c.bf16 %v2831_v53, %v2830_v35 }
 0x22b   : > { %3709 = vst [vmem:[%s5459_s7 + $0x78] sm:$0xff] %v3693_v20  }
 0x22c PF: > { %s13_s14 = sadd.s32 1, %s4659_s14   ;;  %s5562_s12 = smov %s4655_s13 }
 0x22d   : > { %p10_p5 = scmp.ge.s32.totalorder %s13_s14, 4   ;;  %s5563_s13 = smov %s5565_s15 }
 0x22f   :  { %12 = sbr.rel (!%p10_p5) target bundleno = 2 (0x2), region = 72 }

// kernel: run.13
= control target key start
LH: loop header
LB: loop body
LE: loop exit
PB: predicated region body
PF: predicated region fallthrough
CT: control target
= control target key end

     0   :  { %s802_s0 = inlined_call_operand.vmem [shape: bf16[128,128], index: 0, kind: input, shape index: {}]   ;;  %s803_s1 = inlined_call_operand.vmem [shape: bf16[128,128], index: 1, kind: input, shape index: {}]   ;;  %s804_s2 = inlined_call_operand.vmem [shape: f32[1,128], index: 2, kind: input, shape index: {}]   ;;  %s805_s3 = inlined_call_operand.vmem [shape: bf16[128,128], index: 3, kind: input, shape index: {}]   ;;  %s806_s4 = inlined_call_operand.hbm [shape: bf16[128,128], index: 4, kind: output, shape index: {}]  }
   0x1   :  { %v613_v0 = vld [vmem:[%s803_s1] sm:$0xff]   ;;  %v614_v1 = vld [vmem:[%s803_s1 + $0x8] sm:$0xff]   ;;  %v615_v2 = vld [vmem:[%s803_s1 + $0x10] sm:$0xff]  }
   0x2   :  { %562 = vmatprep.subr.bf16.mxu0 %v613_v0  ;;  %594 = vmatprep.subr.bf16.mxu1 %v613_v0  ;;  %v616_v3 = vld [vmem:[%s803_s1 + $0x18] sm:$0xff]   ;;  %v621_v4 = vld [vmem:[%s802_s0] sm:$0xff]   ;;  %v618_v7 = vld [vmem:[%s803_s1 + $0x28] sm:$0xff]  }
   0x3   :  { %563 = vmatpush3.bf16.msra.mxu0 %v613_v0  ;;  %602 = vmatpush3.bf16.msra.mxu1 %v613_v0  ;;  %v622_v5 = vld [vmem:[%s802_s0 + $0x20] sm:$0xff]  }
   0x4   :  { %564 = vmatprep.subr.bf16.mxu0 %v614_v1  ;;  %595 = vmatprep.subr.bf16.mxu1 %v614_v1  ;;  %v617_v6 = vld [vmem:[%s803_s1 + $0x20] sm:$0xff]  }
   0x5   :  { %578 = vmatprep.mubr.bf16.mxu0 %v621_v4  ;;  %586 = vmatprep.mubr.bf16.mxu1 %v622_v5 }
   0x7   :  { %565 = vmatpush3.bf16.msra.mxu0 %v614_v1  ;;  %603 = vmatpush3.bf16.msra.mxu1 %v614_v1 }
   0x8   :  { %566 = vmatprep.subr.bf16.mxu0 %v615_v2  ;;  %596 = vmatprep.subr.bf16.mxu1 %v615_v2 }
   0xb   :  { %567 = vmatpush3.bf16.msra.mxu0 %v615_v2  ;;  %604 = vmatpush3.bf16.msra.mxu1 %v615_v2 }
   0xc   :  { %568 = vmatprep.subr.bf16.mxu0 %v616_v3  ;;  %597 = vmatprep.subr.bf16.mxu1 %v616_v3 }
   0xf   :  { %569 = vmatpush3.bf16.msra.mxu0 %v616_v3  ;;  %605 = vmatpush3.bf16.msra.mxu1 %v616_v3 }
  0x10   :  { %570 = vmatprep.subr.bf16.mxu0 %v617_v6  ;;  %598 = vmatprep.subr.bf16.mxu1 %v617_v6 }
  0x11   :  { %9 = vsyncpa [#allocation3], 0  ;;  %v619_v8 = vld [vmem:[%s803_s1 + $0x30] sm:$0xff]   ;;  %v620_v9 = vld [vmem:[%s803_s1 + $0x38] sm:$0xff]  }
  0x12   :  { %v623_v10 = vld [vmem:[%s802_s0 + $0x8] sm:$0xff]   ;;  %v625_v12 = vld [vmem:[%s802_s0 + $0x10] sm:$0xff]   ;;  %v627_v14 = vld [vmem:[%s802_s0 + $0x18] sm:$0xff]  }
  0x13   :  { %571 = vmatpush3.bf16.msra.mxu0 %v617_v6  ;;  %606 = vmatpush3.bf16.msra.mxu1 %v617_v6  ;;  %v624_v11 = vld [vmem:[%s802_s0 + $0x28] sm:$0xff]   ;;  %v626_v13 = vld [vmem:[%s802_s0 + $0x30] sm:$0xff]   ;;  %v628_v15 = vld [vmem:[%s802_s0 + $0x38] sm:$0xff]  }
  0x14   :  { %572 = vmatprep.subr.bf16.mxu0 %v618_v7  ;;  %599 = vmatprep.subr.bf16.mxu1 %v618_v7  ;;  %v532_v16 = vld [vmem:[%s805_s3 + $0x8] sm:$0xff]   ;;  %v461_v18 = vld [vmem:[%s805_s3] sm:$0xff]   ;;  %v749_v21 = vld [vmem:[%s805_s3 + $0x18] sm:$0xff]  }
  0x15   :  { %v536_v17 = vld [vmem:[%s805_s3 + $0x28] sm:$0xff]   ;;  %v535_v19 = vld [vmem:[%s805_s3 + $0x20] sm:$0xff]   ;;  %v754_v22 = vld [vmem:[%s805_s3 + $0x38] sm:$0xff]   ;;  %v466_v23 = vunpack.c.l.bf16 %v532_v16  ;;  %v462_v25 = vunpack.c.l.bf16 %v461_v18  ;;  %v467_v31 = vunpack.c.h.bf16 %v532_v16  ;;  %v463_v33 = vunpack.c.h.bf16 %v461_v18 }
  0x16   :  { %v744_v20 = vld [vmem:[%s804_s2] ss:$0 sm:$0xff]  ;;  %v482_v24 = vunpack.c.l.bf16 %v536_v17  ;;  %v478_v26 = vunpack.c.l.bf16 %v535_v19  ;;  %v759_v27 = vld [vmem:[%s805_s3 + $0x10] sm:$0xff]   ;;  %v483_v32 = vunpack.c.h.bf16 %v536_v17  ;;  %v479_v34 = vunpack.c.h.bf16 %v535_v19 }
  0x17   :  { %573 = vmatpush3.bf16.msra.mxu0 %v618_v7  ;;  %607 = vmatpush3.bf16.msra.mxu1 %v618_v7  ;;  %v764_v28 = vld [vmem:[%s805_s3 + $0x30] sm:$0xff]   ;;  %v474_v39 = vunpack.c.l.bf16 %v749_v21  ;;  %v490_v40 = vunpack.c.l.bf16 %v754_v22  ;;  %v470_v45 = vunpack.c.l.bf16 %v759_v27  ;;  %v475_v59 = vunpack.c.h.bf16 %v749_v21  ;;  %s653_s3 = smov [#allocation2]  }
  0x18   :  { %574 = vmatprep.subr.bf16.mxu0 %v619_v8  ;;  %600 = vmatprep.subr.bf16.mxu1 %v619_v8  ;;  %v486_v46 = vunpack.c.l.bf16 %v764_v28  ;;  %v491_v60 = vunpack.c.h.bf16 %v754_v22  ;;  %v471_v63 = vunpack.c.h.bf16 %v759_v27  ;;  %v487_v0 = vunpack.c.h.bf16 %v764_v28  ;;  %s400_s10 = sshll.u32 %s653_s3, 4  ;;  %s401_s10 = int_to_ptr.vmem [resolvable:$true] %s400_s10 }
  0x19   :  { %s629_s11 = scalar_lea.vmem %s401_s10, 1024  ;;  %p634_p1 = scmp.lt.s32.totalorder %s401_s10, %s401_s10 }
  0x1a   :  { %p630_p0 = scmp.ne.s32.totalorder %s401_s10, %s629_s11  ;;  %p635_p2 = scmp.lt.s32.totalorder %s629_s11, %s629_s11 }
  0x1b   :  { %575 = vmatpush3.bf16.msra.mxu0 %v619_v8  ;;  %608 = vmatpush3.bf16.msra.mxu1 %v619_v8 }
  0x1c   :  { %576 = vmatprep.subr.bf16.mxu0 %v620_v9  ;;  %601 = vmatprep.subr.bf16.mxu1 %v620_v9  ;;  %p636_p3 = por %p635_p2, %p634_p1 }
  0x1e   :  { %p637_p4 = pnand %p636_p3, %p630_p0 }
  0x1f   :  { %577 = vmatpush3.bf16.msra.mxu0 %v620_v9  ;;  %609 = vmatpush3.bf16.msra.mxu1 %v620_v9 }
  0x22   :  { %579 = vmatmul.mubr.bf16.vlgmr.msra.gmra.mrb[0].mxu0 %v623_v10  ;;  %587 = vmatmul.mubr.bf16.vlgmr.msra.gmra.mrb[0].mxu1 %v624_v11 }
  0x23   :  { %582 = vmatprep.mubr.bf16.mxu0 %v625_v12  ;;  %590 = vmatprep.mubr.bf16.mxu1 %v626_v13 }
  0x2a   :  { %583 = vmatmul.mubr.bf16.gmra.mrb[4].mxu0 %v627_v14  ;;  %591 = vmatmul.mubr.bf16.gmra.mrb[4].mxu1 %v628_v15 }
  0xf5   :  { %v580_v29 = vpop.f32.mrb[0].mxu0  ;;  %v588_v30 = vpop.f32.mrb[0].mxu1 }
  0xf6   :  { %v197_v35 = vadd.f32 %v580_v29, %v744_v20  ;;  %v229_v36 = vadd.f32 %v588_v30, %v744_v20  ;;  %v188_v37 = vpop.f32.mrb[1].mxu0  ;;  %v220_v38 = vpop.f32.mrb[1].mxu1 }
  0xf7   :  { %v189_v41 = vadd.f32 %v744_v20, %v188_v37  ;;  %v221_v42 = vadd.f32 %v744_v20, %v220_v38  ;;  %v581_v43 = vpop.f32.mrb[2].mxu0  ;;  %v589_v44 = vpop.f32.mrb[2].mxu1 }
  0xf8   :  { %v285_v47 = vadd.f32 %v466_v23, %v197_v35  ;;  %v293_v48 = vadd.f32 %v482_v24, %v229_v36  ;;  %v200_v49 = vadd.f32 %v581_v43, %v744_v20  ;;  %v232_v50 = vadd.f32 %v589_v44, %v744_v20  ;;  %v191_v51 = vpop.f32.mrb[3].mxu0  ;;  %v223_v52 = vpop.f32.mrb[3].mxu1 }
  0xf9   :  { %v283_v53 = vadd.f32 %v462_v25, %v189_v41  ;;  %v291_v54 = vadd.f32 %v478_v26, %v221_v42  ;;  %v192_v55 = vadd.f32 %v744_v20, %v191_v51  ;;  %v224_v56 = vadd.f32 %v744_v20, %v223_v52 }
  0xfa   :  { %v286_v57 = vadd.f32 %v467_v31, %v200_v49  ;;  %v294_v58 = vadd.f32 %v483_v32, %v232_v50  ;;  %v301_v1 = vmax.f32 %v285_v47, 0.0  ;;  %v309_v2 = vmax.f32 %v293_v48, 0.0 }
  0xfb   :  { %v284_v61 = vadd.f32 %v463_v33, %v192_v55  ;;  %v292_v62 = vadd.f32 %v479_v34, %v224_v56  ;;  %v299_v5 = vmax.f32 %v283_v53, 0.0  ;;  %v307_v6 = vmax.f32 %v291_v54, 0.0 }
  0xfc   :  { %v302_v3 = vmax.f32 %v286_v57, 0.0  ;;  %v310_v4 = vmax.f32 %v294_v58, 0.0 }
  0xfd   :  { %v300_v7 = vmax.f32 %v284_v61, 0.0  ;;  %v308_v8 = vmax.f32 %v292_v62, 0.0  ;;  %v584_v9 = vpop.f32.mrb[4].mxu0  ;;  %v592_v10 = vpop.f32.mrb[4].mxu1 }
  0xfe   :  { %v500_v11 = vpack.c.bf16 %v302_v3, %v301_v1  ;;  %v520_v12 = vpack.c.bf16 %v310_v4, %v309_v2  ;;  %v213_v13 = vadd.f32 %v584_v9, %v744_v20  ;;  %v245_v14 = vadd.f32 %v592_v10, %v744_v20  ;;  %v204_v15 = vpop.f32.mrb[5].mxu0  ;;  %v236_v16 = vpop.f32.mrb[5].mxu1 }
  0xff   :  { %v495_v17 = vpack.c.bf16 %v300_v7, %v299_v5  ;;  %v515_v18 = vpack.c.bf16 %v308_v8, %v307_v6  ;;  %v205_v19 = vadd.f32 %v744_v20, %v204_v15  ;;  %v237_v21 = vadd.f32 %v744_v20, %v236_v16  ;;  %v585_v22 = vpop.f32.mrb[6].mxu0  ;;  %v593_v23 = vpop.f32.mrb[6].mxu1 }
 0x100   :  { %539 = vst [vmem:[#allocation2 + $0x8] sm:$0xff] %v500_v11   ;;  %543 = vst [vmem:[#allocation2 + $0x28] sm:$0xff] %v520_v12   ;;  %v289_v24 = vadd.f32 %v474_v39, %v213_v13  ;;  %v297_v25 = vadd.f32 %v490_v40, %v245_v14  ;;  %v216_v26 = vadd.f32 %v585_v22, %v744_v20  ;;  %v207_v28 = vpop.f32.mrb[7].mxu0  ;;  %v239_v29 = vpop.f32.mrb[7].mxu1 }
 0x101   :  { %v248_v27 = vadd.f32 %v593_v23, %v744_v20  ;;  %496 = vst [vmem:[#allocation2] sm:$0xff] %v495_v17   ;;  %542 = vst [vmem:[#allocation2 + $0x20] sm:$0xff] %v515_v18   ;;  %v287_v30 = vadd.f32 %v470_v45, %v205_v19  ;;  %v295_v31 = vadd.f32 %v486_v46, %v237_v21 }
 0x102   :  { %v208_v32 = vadd.f32 %v744_v20, %v207_v28  ;;  %v240_v33 = vadd.f32 %v744_v20, %v239_v29  ;;  %v290_v34 = vadd.f32 %v475_v59, %v216_v26  ;;  %v305_v38 = vmax.f32 %v289_v24, 0.0 }
 0x103   :  { %v298_v35 = vadd.f32 %v491_v60, %v248_v27  ;;  %v313_v39 = vmax.f32 %v297_v25, 0.0  ;;  %v303_v42 = vmax.f32 %v287_v30, 0.0  ;;  %v311_v43 = vmax.f32 %v295_v31, 0.0 }
 0x104   :  { %v288_v36 = vadd.f32 %v471_v63, %v208_v32  ;;  %v296_v37 = vadd.f32 %v487_v0, %v240_v33  ;;  %v306_v40 = vmax.f32 %v290_v34, 0.0 }
 0x105   :  { %v314_v41 = vmax.f32 %v298_v35, 0.0 }
 0x106   :  { %v304_v44 = vmax.f32 %v288_v36, 0.0  ;;  %v312_v47 = vmax.f32 %v296_v37, 0.0  ;;  %v510_v45 = vpack.c.bf16 %v306_v40, %v305_v38 }
 0x107   :  { %v530_v46 = vpack.c.bf16 %v314_v41, %v313_v39 }
 0x108   :  { %v505_v48 = vpack.c.bf16 %v304_v44, %v303_v42  ;;  %v525_v49 = vpack.c.bf16 %v312_v47, %v311_v43  ;;  %541 = vst [vmem:[#allocation2 + $0x18] sm:$0xff] %v510_v45  }
 0x109   :  { %545 = vst [vmem:[#allocation2 + $0x38] sm:$0xff] %v530_v46  }
 0x10a   :  { %540 = vst [vmem:[#allocation2 + $0x10] sm:$0xff] %v505_v48   ;;  %544 = vst [vmem:[#allocation2 + $0x30] sm:$0xff] %v525_v49  }
 0x10b   :  { %640 = shalt.err (!%p637_p4)
}
 0x10c   :  { %s641_s14 = scalar_lea.hbm %s806_s4, 1024 }
 0x10d   :  { %p642_p5 = scmp.ne.s32.totalorder %s806_s4, %s641_s14  ;;  %p645_p6 = scmp.lt.u32.totalorder %s641_s14, %s806_s4 }
 0x10f   :  { %p647_p7 = pnand %p645_p6, %p642_p5 }
 0x111   :  { %650 = shalt.err (!%p647_p7)
}
 0x112   :  { %s654_s18 = smov 64   ;;  %s655_s19 = smov 4  }
 0x113   :  { %406 = dma.vmem_to_hbm [thread:$0]  %s401_s10, 1024, %s806_s4, [#allocation3], %s654_s18, %s654_s18, %s655_s19  }
 0x114   :  { %651 = dma.done.wait [#allocation3], 1024  }
 0x115   :  { %652 = vsyncadd [#allocation3], 4294966272 }
 0x116   :  { %410 = vsyncpa [#allocation3], 1 }

// kernel: run.11
= control target key start
LH: loop header
LB: loop body
LE: loop exit
PB: predicated region body
PF: predicated region fallthrough
CT: control target
= control target key end

     0   :  { %s2396_s15 = smov 0   ;;  %s2398_s16 = smov 0   ;;  %s2735_s0 = inlined_call_operand.vmem [shape: bf16[2,9,8,384], index: 0, kind: input, shape index: {}]   ;;  %s2736_s1 = inlined_call_operand.vmem [shape: bf16[2,8,8,384], index: 1, kind: input, shape index: {}]   ;;  %s2737_s2 = inlined_call_operand.vmem [shape: bf16[3,384,128], index: 2, kind: input, shape index: {}]   ;;  %s2738_s3 = inlined_call_operand.vmem [shape: f32[1,128], index: 3, kind: input, shape index: {}]   ;;  %s2739_s4 = inlined_call_operand.vmem [shape: bf16[2,64,128], index: 4, kind: output, shape index: {}]  }
   0x1   :  { %s2400_s17 = smov 0  }
   0x2 LB: > { %s26_s18 = sadd.s32 1, %s2365_s16  ;;  %p1673_p0 = scmp.ge.s32.totalorder %s2369_s17, 1  ;;  %s2369_s17 = sphi %s2400_s17, %s14_s17   ;;  %s2365_s16 = sphi %s2398_s16, %s2741_s16   ;;  %s2361_s15 = sphi %s2396_s15, %s2740_s15  }
   0x3   : > { %p28_p1 = scmp.ge.s32.totalorder %s26_s18, 2  ;;  %p203_p2 = scmp.lt.s32.totalorder %s2369_s17, 3 }
   0x5   : > { %s2743_s18 = smov (%p28_p1, %s26_s18), 0  ;;  %p204_p3 = pnand %p1673_p0, %p203_p2 }
   0x6   : > { %v2235_v0 = vld [vmem:[%s2737_s2 + $0x100] sm:$0xff] (!%p204_p3)   ;;  %v2238_v3 = vld [vmem:[%s2737_s2 + $0x108] sm:$0xff] (!%p204_p3)   ;;  %v2241_v6 = vld [vmem:[%s2737_s2 + $0x110] sm:$0xff] (!%p204_p3)   ;;  %p244_p4 = scmp.lt.s32.totalorder (!%p204_p3), %s2361_s15, 1 }
   0x7   : > { %207 = sbr.rel (%p204_p3) target bundleno = 356 (0x164), region = 36  ;;  %v2236_v1 = vld [vmem:[%s2737_s2 + $0x140] sm:$0xff] (!%p204_p3)   ;;  %1941 = vmatprep.subr.bf16.mxu0 (!%p204_p3), %v2235_v0  ;;  %v2239_v4 = vld [vmem:[%s2737_s2 + $0x148] sm:$0xff] (!%p204_p3)   ;;  %v2242_v7 = vld [vmem:[%s2737_s2 + $0x150] sm:$0xff] (!%p204_p3)  }
   0x8   : > { %v2237_v2 = vld [vmem:[%s2737_s2 + $0xc0] sm:$0xff] (!%p204_p3)   ;;  %2097 = vmatprep.subr.bf16.mxu1 (!%p204_p3), %v2236_v1  ;;  %v2240_v5 = vld [vmem:[%s2737_s2 + $0xc8] sm:$0xff] (!%p204_p3)   ;;  %v2243_v8 = vld [vmem:[%s2737_s2 + $0xd0] sm:$0xff] (!%p204_p3)  }
   0x9   : > { %1942 = vmatpush3.bf16.msra.mxu0 (!%p204_p3), %v2237_v2  ;;  %2098 = vmatpush3.bf16.msra.mxu1 (!%p204_p3), %v2236_v1  ;;  %v2244_v9 = vld [vmem:[%s2737_s2 + $0x118] sm:$0xff] (!%p204_p3)   ;;  %v2247_v12 = vld [vmem:[%s2737_s2 + $0x120] sm:$0xff] (!%p204_p3)   ;;  %v2250_v15 = vld [vmem:[%s2737_s2 + $0x128] sm:$0xff] (!%p204_p3)  }
   0xa   : > { %1943 = vmatprep.subr.bf16.mxu0 (!%p204_p3), %v2238_v3  ;;  %2099 = vmatprep.subr.bf16.mxu1 (!%p204_p3), %v2239_v4  ;;  %v2245_v10 = vld [vmem:[%s2737_s2 + $0x158] sm:$0xff] (!%p204_p3)   ;;  %v2248_v13 = vld [vmem:[%s2737_s2 + $0x160] sm:$0xff] (!%p204_p3)   ;;  %v2251_v16 = vld [vmem:[%s2737_s2 + $0x168] sm:$0xff] (!%p204_p3)  }
   0xb   : > { %v2246_v11 = vld [vmem:[%s2737_s2 + $0xd8] sm:$0xff] (!%p204_p3)   ;;  %v2249_v14 = vld [vmem:[%s2737_s2 + $0xe0] sm:$0xff] (!%p204_p3)   ;;  %v2252_v17 = vld [vmem:[%s2737_s2 + $0xe8] sm:$0xff] (!%p204_p3)  }
   0xc   : > { %v2253_v18 = vld [vmem:[%s2737_s2 + $0x130] sm:$0xff] (!%p204_p3)   ;;  %v2256_v21 = vld [vmem:[%s2737_s2 + $0x138] sm:$0xff] (!%p204_p3)   ;;  %v2263_v26 = vld [vmem:[%s2737_s2 + $0x40] sm:$0xff] (!%p204_p3)  }
   0xd   : > { %1944 = vmatpush3.bf16.msra.mxu0 (!%p204_p3), %v2240_v5  ;;  %2100 = vmatpush3.bf16.msra.mxu1 (!%p204_p3), %v2239_v4  ;;  %v2254_v19 = vld [vmem:[%s2737_s2 + $0x170] sm:$0xff] (!%p204_p3)   ;;  %v2257_v22 = vld [vmem:[%s2737_s2 + $0x178] sm:$0xff] (!%p204_p3)   ;;  %v2264_v28 = vld [vmem:[%s2737_s2 + $0x80] sm:$0xff] (!%p204_p3)  }
   0xe   : > { %1945 = vmatprep.subr.bf16.mxu0 %v2241_v6  ;;  %2101 = vmatprep.subr.bf16.mxu1 %v2242_v7  ;;  %s2745_s15 = smov (!%p244_p4, %s2361_s15), 1  ;;  %v2255_v20 = vld [vmem:[%s2737_s2 + $0xf0] sm:$0xff]   ;;  %v2258_v25 = vld [vmem:[%s2737_s2 + $0xf8] sm:$0xff]   ;;  %v2266_v30 = vld [vmem:[%s2737_s2] sm:$0xff]  }
   0xf   : > { %s2210_s5 = smul.u32 96, %s2745_s15  ;;  %v2267_v31 = vld [vmem:[%s2737_s2 + $0x48] sm:$0xff]   ;;  %v2273_v35 = vld [vmem:[%s2737_s2 + $0x50] sm:$0xff]   ;;  %v2276_v39 = vld [vmem:[%s2737_s2 + $0x58] sm:$0xff]   ;;  %s1909_s22 = sshll.u32 %s2745_s15, 5 }
  0x10   : > { %v2268_v32 = vld [vmem:[%s2737_s2 + $0x88] sm:$0xff]   ;;  %v2274_v36 = vld [vmem:[%s2737_s2 + $0x90] sm:$0xff]   ;;  %v2277_v40 = vld [vmem:[%s2737_s2 + $0x98] sm:$0xff]   ;;  %s2209_s12 = smul.u32 108, %s2745_s15  ;;  %s2718_s25 = scalar_lea.vmem %s2739_s4, %s1909_s22 }
  0x11   : > { %1946 = vmatpush3.bf16.msra.mxu0 %v2243_v8  ;;  %2102 = vmatpush3.bf16.msra.mxu1 %v2242_v7  ;;  %s2487_s20 = scalar_lea.vmem %s2736_s1, %s2210_s5  ;;  %v2269_v34 = vld [vmem:[%s2737_s2 + $0x8] sm:$0xff]   ;;  %v2275_v38 = vld [vmem:[%s2737_s2 + $0x10] sm:$0xff]   ;;  %v2278_v42 = vld [vmem:[%s2737_s2 + $0x18] sm:$0xff]  }
  0x12   : > { %1947 = vmatprep.subr.bf16.mxu0 %v2244_v9  ;;  %2103 = vmatprep.subr.bf16.mxu1 %v2245_v10  ;;  %v2261_v23 = vld [vmem:[%s2487_s20 + $0x4] ss:$12 sps:$4 sm:$0xff]   ;;  %v2262_v24 = vld [vmem:[%s2487_s20 + $0x8] ss:$12 sps:$4 sm:$0xff]   ;;  %v2259_v27 = vld [vmem:[%s2487_s20] ss:$12 sps:$4 sm:$0xff]   ;;  %s2573_s28 = scalar_lea.vmem %s2735_s0, %s2209_s12 }
  0x13   : > { %639 = vmatprep.mubr.bf16.mxu0 %v2261_v23  ;;  %2113 = vmatprep.mubr.bf16.mxu1 %v2262_v24  ;;  %v2265_v29 = vld [vmem:[%s2487_s20 + $0x20] ss:$12 sps:$4 sm:$0xff]   ;;  %v2270_v33 = vld [vmem:[%s2487_s20 + $0x1c] ss:$12 sps:$4 sm:$0xff]   ;;  %v2272_v37 = vld [vmem:[%s2487_s20 + $0x18] ss:$12 sps:$4 sm:$0xff]  }
  0x14   : > { %v2279_v41 = vld [vmem:[%s2487_s20 + $0x34] ss:$12 sps:$4 sm:$0xff]   ;;  %v2281_v44 = vld [vmem:[%s2487_s20 + $0x30] ss:$12 sps:$4 sm:$0xff]   ;;  %v2285_v47 = vld [vmem:[%s2737_s2 + $0x68] sm:$0xff]  }
  0x15   : > { %1948 = vmatpush3.bf16.msra.mxu0 %v2246_v11  ;;  %2104 = vmatpush3.bf16.msra.mxu1 %v2245_v10  ;;  %v2282_v43 = vld [vmem:[%s2737_s2 + $0x60] sm:$0xff]   ;;  %v2286_v48 = vld [vmem:[%s2737_s2 + $0xa8] sm:$0xff]   ;;  %v2292_v52 = vld [vmem:[%s2737_s2 + $0x70] sm:$0xff]  }
  0x16   : > { %1949 = vmatprep.subr.bf16.mxu0 %v2247_v12  ;;  %2105 = vmatprep.subr.bf16.mxu1 %v2248_v13  ;;  %v2283_v45 = vld [vmem:[%s2737_s2 + $0xa0] sm:$0xff]   ;;  %v2288_v49 = vld [vmem:[%s2487_s20 + $0x4c] ss:$12 sps:$4 sm:$0xff]   ;;  %v2293_v53 = vld [vmem:[%s2737_s2 + $0xb0] sm:$0xff]  }
  0x17   : > { %v2284_v46 = vld [vmem:[%s2737_s2 + $0x20] sm:$0xff]   ;;  %v2287_v50 = vld [vmem:[%s2737_s2 + $0x28] sm:$0xff]   ;;  %v2294_v54 = vld [vmem:[%s2487_s20 + $0x50] ss:$12 sps:$4 sm:$0xff]  }
  0x18   : > { %v2291_v51 = vld [vmem:[%s2487_s20 + $0x38] ss:$12 sps:$4 sm:$0xff]   ;;  %v2290_v55 = vld [vmem:[%s2487_s20 + $0x48] ss:$12 sps:$4 sm:$0xff]   ;;  %v2587_v60 = vld [vmem:[%s2573_s28 + $0xc] sm:$0xff] }
  0x19   : > { %1950 = vmatpush3.bf16.msra.mxu0 %v2249_v14  ;;  %2106 = vmatpush3.bf16.msra.mxu1 %v2248_v13  ;;  %v2295_v56 = vld [vmem:[%s2737_s2 + $0x30] sm:$0xff]   ;;  %v2296_v57 = vld [vmem:[%s2737_s2 + $0x78] sm:$0xff]   ;;  %v270_v59 = vld [vmem:[%s2573_s28] sm:$0xff] }
  0x1a   : > { %1951 = vmatprep.subr.bf16.mxu0 %v2250_v15  ;;  %2107 = vmatprep.subr.bf16.mxu1 %v2251_v16  ;;  %v2297_v58 = vld [vmem:[%s2737_s2 + $0xb8] sm:$0xff]   ;;  %v1763_v61 = vcombine.high %v270_v59, %v2587_v60  ;;  %v2301_v62 = vld [vmem:[%s2573_s28 + $0x8] ss:$12 sps:$4 sm:$0xff]   ;;  %v2302_v0 = vld [vmem:[%s2737_s2 + $0x1c0] sm:$0xff]   ;;  %v1762_v3 = vcombine.low %v270_v59, %v2587_v60 }
  0x1b   : > { %v2298_v63 = vld [vmem:[%s2737_s2 + $0x38] sm:$0xff]   ;;  %v2303_v1 = vld [vmem:[%s2737_s2 + $0x200] sm:$0xff]   ;;  %v2306_v5 = vld [vmem:[%s2737_s2 + $0x1c8] sm:$0xff]  }
  0x1c   : > { %v2304_v2 = vld [vmem:[%s2573_s28 + $0x20] ss:$12 sps:$4 sm:$0xff]   ;;  %v2612_v7 = vld [vmem:[%s2573_s28 + $0x18] sm:$0xff]  ;;  %v2615_v8 = vld [vmem:[%s2573_s28 + $0x24] sm:$0xff] }
  0x1d   : > { %1952 = vmatpush3.bf16.msra.mxu0 %v2252_v17  ;;  %2108 = vmatpush3.bf16.msra.mxu1 %v2251_v16  ;;  %v2305_v4 = vld [vmem:[%s2737_s2 + $0x180] sm:$0xff]   ;;  %v2307_v6 = vld [vmem:[%s2737_s2 + $0x208] sm:$0xff]   ;;  %v1766_v10 = vcombine.high %v2612_v7, %v2615_v8  ;;  %v2311_v11 = vld [vmem:[%s2737_s2 + $0x1d0] sm:$0xff]   ;;  %v1765_v14 = vcombine.low %v2612_v7, %v2615_v8 }
  0x1e   : > { %1953 = vmatprep.subr.bf16.mxu0 %v2253_v18  ;;  %2109 = vmatprep.subr.bf16.mxu1 %v2254_v19  ;;  %v2308_v9 = vld [vmem:[%s2737_s2 + $0x188] sm:$0xff]   ;;  %v2312_v12 = vld [vmem:[%s2737_s2 + $0x210] sm:$0xff]   ;;  %v2314_v15 = vld [vmem:[%s2737_s2 + $0x1d8] sm:$0xff]  }
  0x1f   : > { %v2313_v13 = vld [vmem:[%s2737_s2 + $0x190] sm:$0xff]   ;;  %v2315_v16 = vld [vmem:[%s2737_s2 + $0x218] sm:$0xff]   ;;  %v2321_v23 = vld [vmem:[%s2737_s2 + $0x1a0] sm:$0xff]  }
  0x20   : > { %v2640_v17 = vld [vmem:[%s2573_s28 + $0x30] sm:$0xff]  ;;  %v2643_v18 = vld [vmem:[%s2573_s28 + $0x3c] sm:$0xff] }
  0x21   : > { %1954 = vmatpush3.bf16.msra.mxu0 %v2255_v20  ;;  %2110 = vmatpush3.bf16.msra.mxu1 %v2254_v19  ;;  %v1769_v19 = vcombine.high %v2640_v17, %v2643_v18  ;;  %v2316_v20 = vld [vmem:[%s2737_s2 + $0x198] sm:$0xff]   ;;  %v1768_v24 = vcombine.low %v2640_v17, %v2643_v18 }
  0x22   : > { %1955 = vmatprep.subr.bf16.mxu0 %v2256_v21  ;;  %2111 = vmatprep.subr.bf16.mxu1 %v2257_v22  ;;  %v2319_v21 = vld [vmem:[%s2737_s2 + $0x1e0] sm:$0xff]  }
  0x25   : > { %1956 = vmatpush3.bf16.msra.mxu0 %v2258_v25  ;;  %2112 = vmatpush3.bf16.msra.mxu1 %v2257_v22  ;;  %v2320_v22 = vld [vmem:[%s2737_s2 + $0x220] sm:$0xff]   ;;  %v2322_v25 = vld [vmem:[%s2737_s2 + $0x1e8] sm:$0xff]  }
  0x26   : > { %1993 = vmatprep.subr.bf16.mxu0 %v2263_v26  ;;  %2121 = vmatprep.subr.bf16.mxu1 %v2264_v28  ;;  %v2323_v26 = vld [vmem:[%s2737_s2 + $0x228] sm:$0xff]  }
  0x28   : > { %640 = vmatmul.mubr.bf16.vlgmr.msra.gmra.mrb[0].mxu0 %v2259_v27  ;;  %2114 = vmatmul.mubr.bf16.vlgmr.msra.gmra.mrb[0].mxu1 %v2265_v29  ;;  %v282_v27 = vld [vmem:[%s2573_s28 + $0x48] sm:$0xff]  ;;  %v2326_v29 = vld [vmem:[%s2573_s28 + $0x38] ss:$12 sps:$4 sm:$0xff]  }
  0x29   : > { %1994 = vmatpush3.bf16.msra.mxu0 %v2266_v30  ;;  %2122 = vmatpush3.bf16.msra.mxu1 %v2264_v28  ;;  %v284_v28 = vld [vmem:[%s2573_s28 + $0x54] sm:$0xff]  ;;  %v2328_v30 = vld [vmem:[%s2573_s28 + $0x50] ss:$12 sps:$4 sm:$0xff]  }
  0x2a   : > { %1995 = vmatprep.subr.bf16.mxu0 %v2267_v31  ;;  %2123 = vmatprep.subr.bf16.mxu1 %v2268_v32  ;;  %v1772_v31 = vcombine.high %v282_v27, %v284_v28 }
  0x2b   : > { %647 = vmatprep.mubr.bf16.mxu0 %v2270_v33  ;;  %2117 = vmatprep.mubr.bf16.mxu1 %v2291_v51  ;;  %v2329_v33 = vld [vmem:[%s2737_s2 + $0x1f0] sm:$0xff]  }
  0x2d   : > { %1996 = vmatpush3.bf16.msra.mxu0 %v2269_v34  ;;  %2124 = vmatpush3.bf16.msra.mxu1 %v2268_v32  ;;  %v2324_v32 = vld [vmem:[%s2737_s2 + $0x1a8] sm:$0xff]   ;;  %v2330_v34 = vld [vmem:[%s2737_s2 + $0x230] sm:$0xff]  }
  0x2e   : > { %1997 = vmatprep.subr.bf16.mxu0 %v2273_v35  ;;  %2125 = vmatprep.subr.bf16.mxu1 %v2274_v36  ;;  %v2331_v35 = vld [vmem:[%s2737_s2 + $0x1b0] sm:$0xff]  }
  0x30   : > { %648 = vmatmul.mubr.bf16.gmra.mrb[4].mxu0 %v2272_v37  ;;  %2118 = vmatmul.mubr.bf16.gmra.mrb[4].mxu1 %v2294_v54  ;;  %v2332_v37 = vld [vmem:[%s2737_s2 + $0x1f8] sm:$0xff]  }
  0x31   : > { %1998 = vmatpush3.bf16.msra.mxu0 %v2275_v38  ;;  %2126 = vmatpush3.bf16.msra.mxu1 %v2274_v36  ;;  %v1771_v36 = vcombine.low %v282_v27, %v284_v28  ;;  %v2337_v38 = vld [vmem:[%s2573_s28 + $0x14] ss:$12 sps:$4 sm:$0xff]  }
  0x32   : > { %1999 = vmatprep.subr.bf16.mxu0 %v2276_v39  ;;  %2127 = vmatprep.subr.bf16.mxu1 %v2277_v40  ;;  %v2333_v39 = vld [vmem:[%s2737_s2 + $0x238] sm:$0xff]  }
  0x33   : > { %655 = vmatprep.mubr.bf16.mxu0 %v2279_v41  ;;  %2137 = vmatprep.mubr.bf16.mxu1 %v2301_v62  ;;  %v2334_v41 = vld [vmem:[%s2737_s2 + $0x1b8] sm:$0xff]  }
  0x35   : > { %2000 = vmatpush3.bf16.msra.mxu0 %v2278_v42  ;;  %2128 = vmatpush3.bf16.msra.mxu1 %v2277_v40  ;;  %v1863_v40 = vcombine.high %v2587_v60, %v2612_v7  ;;  %v1862_v42 = vcombine.low %v2587_v60, %v2612_v7 }
  0x36   : > { %2001 = vmatprep.subr.bf16.mxu0 %v2282_v43  ;;  %2129 = vmatprep.subr.bf16.mxu1 %v2283_v45  ;;  %v2338_v43 = vld [vmem:[%s2573_s28 + $0x2c] ss:$12 sps:$4 sm:$0xff]  }
  0x38   : > { %656 = vmatmul.mubr.bf16.gmra.mrb[8].mxu0 %v2281_v44  ;;  %v1866_v44 = vcombine.high %v2615_v8, %v2640_v17 }
  0x39   : > { %2002 = vmatpush3.bf16.msra.mxu0 %v2284_v46  ;;  %2130 = vmatpush3.bf16.msra.mxu1 %v2283_v45  ;;  %v2340_v45 = vld [vmem:[%s2573_s28 + $0x44] ss:$12 sps:$4 sm:$0xff]   ;;  %v1865_v46 = vcombine.low %v2615_v8, %v2640_v17 }
  0x3a   : > { %2003 = vmatprep.subr.bf16.mxu0 %v2285_v47  ;;  %2131 = vmatprep.subr.bf16.mxu1 %v2286_v48  ;;  %v2342_v47 = vld [vmem:[%s2573_s28 + $0x5c] ss:$12 sps:$4 sm:$0xff]  }
  0x3b   : > { %663 = vmatprep.mubr.bf16.mxu0 %v2288_v49  ;;  %v1812_v49 = vld [vmem:[%s2573_s28 + $0x60] sm:$0xff] }
  0x3c   : > { %v1872_v51 = vcombine.high %v284_v28, %v1812_v49 }
  0x3d   : > { %2004 = vmatpush3.bf16.msra.mxu0 %v2287_v50  ;;  %2132 = vmatpush3.bf16.msra.mxu1 %v2286_v48  ;;  %v1869_v48 = vcombine.high %v2643_v18, %v282_v27  ;;  %v1868_v50 = vcombine.low %v2643_v18, %v282_v27 }
  0x3e   : > { %2005 = vmatprep.subr.bf16.mxu0 %v2292_v52  ;;  %2133 = vmatprep.subr.bf16.mxu1 %v2293_v53  ;;  %v1871_v52 = vcombine.low %v284_v28, %v1812_v49 }
  0x40   : > { %664 = vmatmul.mubr.bf16.gmra.mrb[12].mxu0 %v2290_v55 }
  0x41   : > { %2006 = vmatpush3.bf16.msra.mxu0 %v2295_v56  ;;  %2134 = vmatpush3.bf16.msra.mxu1 %v2293_v53 }
  0x42   : > { %2007 = vmatprep.subr.bf16.mxu0 %v2296_v57  ;;  %2135 = vmatprep.subr.bf16.mxu1 %v2297_v58 }
  0x43   : > { %977 = vmatprep.mubr.bf16.mxu0 %v1763_v61 }
  0x45   : > { %2008 = vmatpush3.bf16.msra.mxu0 %v2298_v63  ;;  %2136 = vmatpush3.bf16.msra.mxu1 %v2297_v58 }
  0x46   : > { %2045 = vmatprep.subr.bf16.mxu0 %v2302_v0  ;;  %2145 = vmatprep.subr.bf16.mxu1 %v2303_v1 }
  0x48   : > { %978 = vmatmul.mubr.bf16.vlgmr.msra.gmra.mrb[16].mxu0 %v1762_v3  ;;  %2138 = vmatmul.mubr.bf16.vlgmr.msra.gmra.mrb[0].mxu1 %v2304_v2 }
  0x49   : > { %2046 = vmatpush3.bf16.msra.mxu0 %v2305_v4  ;;  %2146 = vmatpush3.bf16.msra.mxu1 %v2303_v1 }
  0x4a   : > { %2047 = vmatprep.subr.bf16.mxu0 %v2306_v5  ;;  %2147 = vmatprep.subr.bf16.mxu1 %v2307_v6 }
  0x4b   : > { %985 = vmatprep.mubr.bf16.mxu0 %v1766_v10  ;;  %2141 = vmatprep.mubr.bf16.mxu1 %v2326_v29 }
  0x4d   : > { %2048 = vmatpush3.bf16.msra.mxu0 %v2308_v9  ;;  %2148 = vmatpush3.bf16.msra.mxu1 %v2307_v6 }
  0x4e   : > { %2049 = vmatprep.subr.bf16.mxu0 %v2311_v11  ;;  %2149 = vmatprep.subr.bf16.mxu1 %v2312_v12 }
  0x50   : > { %986 = vmatmul.mubr.bf16.gmra.mrb[20].mxu0 %v1765_v14  ;;  %2142 = vmatmul.mubr.bf16.gmra.mrb[4].mxu1 %v2328_v30 }
  0x51   : > { %2050 = vmatpush3.bf16.msra.mxu0 %v2313_v13  ;;  %2150 = vmatpush3.bf16.msra.mxu1 %v2312_v12 }
  0x52   : > { %2051 = vmatprep.subr.bf16.mxu0 %v2314_v15  ;;  %2151 = vmatprep.subr.bf16.mxu1 %v2315_v16 }
  0x53   : > { %993 = vmatprep.mubr.bf16.mxu0 %v1769_v19  ;;  %2161 = vmatprep.mubr.bf16.mxu1 %v2337_v38 }
  0x55   : > { %2052 = vmatpush3.bf16.msra.mxu0 %v2316_v20  ;;  %2152 = vmatpush3.bf16.msra.mxu1 %v2315_v16 }
  0x56   : > { %2053 = vmatprep.subr.bf16.mxu0 %v2319_v21  ;;  %2153 = vmatprep.subr.bf16.mxu1 %v2320_v22 }
  0x58   : > { %994 = vmatmul.mubr.bf16.gmra.mrb[24].mxu0 %v1768_v24 }
  0x59   : > { %2054 = vmatpush3.bf16.msra.mxu0 %v2321_v23  ;;  %2154 = vmatpush3.bf16.msra.mxu1 %v2320_v22 }
  0x5a   : > { %2055 = vmatprep.subr.bf16.mxu0 %v2322_v25  ;;  %2155 = vmatprep.subr.bf16.mxu1 %v2323_v26 }
  0x5b   : > { %1001 = vmatprep.mubr.bf16.mxu0 %v1772_v31 }
  0x5d   : > { %2056 = vmatpush3.bf16.msra.mxu0 %v2324_v32  ;;  %2156 = vmatpush3.bf16.msra.mxu1 %v2323_v26 }
  0x5e   : > { %2057 = vmatprep.subr.bf16.mxu0 %v2329_v33  ;;  %2157 = vmatprep.subr.bf16.mxu1 %v2330_v34 }
  0x60   : > { %1002 = vmatmul.mubr.bf16.gmra.mrb[28].mxu0 %v1771_v36 }
  0x61   : > { %2058 = vmatpush3.bf16.msra.mxu0 %v2331_v35  ;;  %2158 = vmatpush3.bf16.msra.mxu1 %v2330_v34 }
  0x62   : > { %2059 = vmatprep.subr.bf16.mxu0 %v2332_v37  ;;  %2159 = vmatprep.subr.bf16.mxu1 %v2333_v39 }
  0x63   : > { %1381 = vmatprep.mubr.bf16.mxu0 %v1863_v40 }
  0x65   : > { %2060 = vmatpush3.bf16.msra.mxu0 %v2334_v41  ;;  %2160 = vmatpush3.bf16.msra.mxu1 %v2333_v39 }
  0x68   : > { %1382 = vmatmul.mubr.bf16.vlgmr.msra.gmra.mrb[32].mxu0 %v1862_v42  ;;  %2162 = vmatmul.mubr.bf16.vlgmr.msra.gmra.mrb[0].mxu1 %v2338_v43 }
  0x69   : > { %1389 = vmatprep.mubr.bf16.mxu0 %v1866_v44  ;;  %2165 = vmatprep.mubr.bf16.mxu1 %v2340_v45 }
  0x70   : > { %1390 = vmatmul.mubr.bf16.gmra.mrb[36].mxu0 %v1865_v46  ;;  %2166 = vmatmul.mubr.bf16.gmra.mrb[4].mxu1 %v2342_v47 }
  0x71   : > { %1397 = vmatprep.mubr.bf16.mxu0 %v1869_v48 }
  0x78   : > { %1398 = vmatmul.mubr.bf16.gmra.mrb[40].mxu0 %v1868_v50 }
  0x79   : > { %1405 = vmatprep.mubr.bf16.mxu0 %v1872_v51 }
  0x80   : > { %1406 = vmatmul.mubr.bf16.gmra.mrb[44].mxu0 %v1871_v52 }
  0xfb   : > { %v1957_v53 = vpop.f32.mrb[0].mxu0 }
  0xfc   : > { %v1958_v54 = vpop.f32.mrb[1].mxu0 }
  0xfd   : > { %v1959_v55 = vadd.f32 %v1958_v54, %v1957_v53  ;;  %v1960_v56 = vpop.f32.mrb[2].mxu0 }
  0xfe   : > { %v1961_v57 = vpop.f32.mrb[3].mxu0 }
  0xff   : > { %v1962_v58 = vadd.f32 %v1961_v57, %v1960_v56  ;;  %v1898_v56 = vld [vmem:[%s2738_s3] ss:$0 sm:$0xff] }
 0x103   : > { %v1963_v59 = vpop.f32.mrb[4].mxu0 }
 0x104   : > { %v1964_v60 = vpop.f32.mrb[5].mxu0 }
 0x105   : > { %v1965_v61 = vadd.f32 %v1964_v60, %v1963_v59  ;;  %v1966_v62 = vpop.f32.mrb[6].mxu0 }
 0x106   : > { %v1967_v63 = vpop.f32.mrb[7].mxu0 }
 0x107   : > { %v1968_v0 = vadd.f32 %v1967_v63, %v1966_v62 }
 0x10b   : > { %v1969_v1 = vpop.f32.mrb[8].mxu0 }
 0x10c   : > { %v1970_v2 = vpop.f32.mrb[9].mxu0 }
 0x10d   : > { %v1971_v3 = vadd.f32 %v1970_v2, %v1969_v1  ;;  %v1972_v4 = vpop.f32.mrb[10].mxu0 }
 0x10e   : > { %v1973_v5 = vpop.f32.mrb[11].mxu0 }
 0x10f   : > { %v1974_v6 = vadd.f32 %v1973_v5, %v1972_v4 }
 0x113   : > { %v1975_v7 = vpop.f32.mrb[12].mxu0 }
 0x114   : > { %v1976_v8 = vpop.f32.mrb[13].mxu0 }
 0x115   : > { %v1977_v9 = vadd.f32 %v1976_v8, %v1975_v7  ;;  %v1978_v10 = vpop.f32.mrb[14].mxu0 }
 0x116   : > { %v1979_v11 = vpop.f32.mrb[15].mxu0 }
 0x117   : > { %v1980_v12 = vadd.f32 %v1979_v11, %v1978_v10 }
 0x11b   : > { %v2009_v13 = vpop.f32.mrb[16].mxu0 }
 0x11c   : > { %v2010_v14 = vpop.f32.mrb[17].mxu0 }
 0x11d   : > { %v2011_v15 = vadd.f32 %v2010_v14, %v2009_v13  ;;  %v2012_v16 = vpop.f32.mrb[18].mxu0 }
 0x11e   : > { %v2013_v17 = vpop.f32.mrb[19].mxu0 }
 0x11f   : > { %v2172_v18 = vadd.f32 %v2011_v15, %v1959_v55  ;;  %v2014_v19 = vadd.f32 %v2013_v17, %v2012_v16 }
 0x121   : > { %v2178_v20 = vadd.f32 %v2014_v19, %v1962_v58 }
 0x123   : > { %v2015_v21 = vpop.f32.mrb[20].mxu0 }
 0x124   : > { %v2016_v22 = vpop.f32.mrb[21].mxu0 }
 0x125   : > { %v2017_v23 = vadd.f32 %v2016_v22, %v2015_v21  ;;  %v2018_v24 = vpop.f32.mrb[22].mxu0 }
 0x126   : > { %v2019_v25 = vpop.f32.mrb[23].mxu0 }
 0x127   : > { %v2169_v26 = vadd.f32 %v2017_v23, %v1965_v61  ;;  %v2020_v27 = vadd.f32 %v2019_v25, %v2018_v24 }
 0x129   : > { %v2175_v28 = vadd.f32 %v2020_v27, %v1968_v0 }
 0x12b   : > { %v2021_v29 = vpop.f32.mrb[24].mxu0 }
 0x12c   : > { %v2022_v30 = vpop.f32.mrb[25].mxu0 }
 0x12d   : > { %v2023_v31 = vadd.f32 %v2022_v30, %v2021_v29  ;;  %v2024_v32 = vpop.f32.mrb[26].mxu0 }
 0x12e   : > { %v2025_v33 = vpop.f32.mrb[27].mxu0 }
 0x12f   : > { %v2184_v34 = vadd.f32 %v2023_v31, %v1971_v3  ;;  %v2026_v35 = vadd.f32 %v2025_v33, %v2024_v32 }
 0x131   : > { %v2190_v36 = vadd.f32 %v2026_v35, %v1974_v6 }
 0x133   : > { %v2027_v37 = vpop.f32.mrb[28].mxu0 }
 0x134   : > { %v2028_v38 = vpop.f32.mrb[29].mxu0 }
 0x135   : > { %v2029_v39 = vadd.f32 %v2028_v38, %v2027_v37  ;;  %v2030_v40 = vpop.f32.mrb[30].mxu0 }
 0x136   : > { %v2031_v41 = vpop.f32.mrb[31].mxu0 }
 0x137   : > { %v2707_v42 = vadd.f32 %v2029_v39, %v1977_v9  ;;  %v2032_v43 = vadd.f32 %v2031_v41, %v2030_v40 }
 0x139   : > { %v2709_v44 = vadd.f32 %v2032_v43, %v1980_v12 }
 0x13b   : > { %v2061_v45 = vpop.f32.mrb[32].mxu0  ;;  %v2163_v46 = vpop.f32.mrb[0].mxu1 }
 0x13c   : > { %v2062_v47 = vpop.f32.mrb[33].mxu0  ;;  %v1448_v48 = vpop.f32.mrb[1].mxu1 }
 0x13d   : > { %v2063_v49 = vadd.f32 %v2062_v47, %v2061_v45  ;;  %v2064_v50 = vpop.f32.mrb[34].mxu0  ;;  %v2164_v51 = vpop.f32.mrb[2].mxu1 }
 0x13e   : > { %v2065_v52 = vpop.f32.mrb[35].mxu0  ;;  %v1451_v53 = vpop.f32.mrb[3].mxu1 }
 0x13f   : > { %v2173_v54 = vadd.f32 %v2172_v18, %v2063_v49  ;;  %v2066_v55 = vadd.f32 %v2065_v52, %v2064_v50 }
 0x141   : > { %v2174_v57 = vadd.f32 %v2173_v54, %v1448_v48  ;;  %v2179_v58 = vadd.f32 %v2178_v20, %v2066_v55 }
 0x143   : > { %v1494_v59 = vadd.f32 %v2174_v57, %v1898_v56  ;;  %v2180_v60 = vadd.f32 %v2179_v58, %v1451_v53  ;;  %v2067_v61 = vpop.f32.mrb[36].mxu0  ;;  %v2167_v62 = vpop.f32.mrb[4].mxu1 }
 0x144   : > { %v2068_v63 = vpop.f32.mrb[37].mxu0  ;;  %v1464_v0 = vpop.f32.mrb[5].mxu1 }
 0x145   : > { %v1495_v1 = vadd.f32 %v2180_v60, %v1898_v56  ;;  %v2069_v2 = vadd.f32 %v2068_v63, %v2067_v61  ;;  %v2070_v3 = vpop.f32.mrb[38].mxu0  ;;  %v2168_v4 = vpop.f32.mrb[6].mxu1  ;;  %v1502_v7 = vmax.f32 %v1494_v59, 0.0 }
 0x146   : > { %v2071_v5 = vpop.f32.mrb[39].mxu0  ;;  %v1467_v6 = vpop.f32.mrb[7].mxu1 }
 0x147   : > { %v1503_v8 = vmax.f32 %v1495_v1, 0.0  ;;  %v2170_v9 = vadd.f32 %v2169_v26, %v2069_v2  ;;  %v2072_v10 = vadd.f32 %v2071_v5, %v2070_v3 }
 0x149   : > { %v1921_v11 = vpack.c.bf16 %v1503_v8, %v1502_v7  ;;  %v2171_v12 = vadd.f32 %v2170_v9, %v2163_v46  ;;  %v2176_v13 = vadd.f32 %v2175_v28, %v2072_v10 }
 0x14b   : > { %1922 = vst [vmem:[%s2718_s25] sm:$0xff] %v1921_v11   ;;  %v1496_v14 = vadd.f32 %v2171_v12, %v1898_v56  ;;  %v2177_v15 = vadd.f32 %v2176_v13, %v2164_v51  ;;  %v2073_v16 = vpop.f32.mrb[40].mxu0 }
 0x14c   : > { %v2074_v17 = vpop.f32.mrb[41].mxu0 }
 0x14d   : > { %v1497_v18 = vadd.f32 %v2177_v15, %v1898_v56  ;;  %v2075_v19 = vadd.f32 %v2074_v17, %v2073_v16  ;;  %v2076_v20 = vpop.f32.mrb[42].mxu0  ;;  %v1504_v22 = vmax.f32 %v1496_v14, 0.0 }
 0x14e   : > { %v2077_v21 = vpop.f32.mrb[43].mxu0 }
 0x14f   : > { %v1505_v23 = vmax.f32 %v1497_v18, 0.0  ;;  %v2185_v24 = vadd.f32 %v2184_v34, %v2075_v19  ;;  %v2078_v25 = vadd.f32 %v2077_v21, %v2076_v20 }
 0x151   : > { %v1926_v26 = vpack.c.bf16 %v1505_v23, %v1504_v22  ;;  %v2186_v27 = vadd.f32 %v2185_v24, %v1464_v0  ;;  %v2191_v29 = vadd.f32 %v2190_v36, %v2078_v25 }
 0x153   : > { %1938 = vst [vmem:[%s2718_s25 + $0x8] sm:$0xff] %v1926_v26   ;;  %v1498_v28 = vadd.f32 %v2186_v27, %v1898_v56  ;;  %v2192_v30 = vadd.f32 %v2191_v29, %v1467_v6  ;;  %v2079_v31 = vpop.f32.mrb[44].mxu0 }
 0x154   : > { %v2080_v32 = vpop.f32.mrb[45].mxu0 }
 0x155   : > { %v1499_v33 = vadd.f32 %v2192_v30, %v1898_v56  ;;  %v2081_v35 = vadd.f32 %v2080_v32, %v2079_v31  ;;  %v2082_v37 = vpop.f32.mrb[46].mxu0  ;;  %v1506_v39 = vmax.f32 %v1498_v28, 0.0 }
 0x156   : > { %v2083_v38 = vpop.f32.mrb[47].mxu0 }
 0x157   : > { %v1507_v40 = vmax.f32 %v1499_v33, 0.0  ;;  %v2182_v41 = vadd.f32 %v2707_v42, %v2081_v35  ;;  %v2084_v34 = vadd.f32 %v2083_v38, %v2082_v37 }
 0x159   : > { %v1931_v43 = vpack.c.bf16 %v1507_v40, %v1506_v39  ;;  %v2183_v45 = vadd.f32 %v2182_v41, %v2167_v62  ;;  %v2188_v36 = vadd.f32 %v2709_v44, %v2084_v34 }
 0x15b   : > { %1939 = vst [vmem:[%s2718_s25 + $0x10] sm:$0xff] %v1931_v43   ;;  %v1500_v46 = vadd.f32 %v2183_v45, %v1898_v56  ;;  %v2189_v47 = vadd.f32 %v2188_v36, %v2168_v4 }
 0x15d   : > { %v1501_v48 = vadd.f32 %v2189_v47, %v1898_v56  ;;  %v1508_v49 = vmax.f32 %v1500_v46, 0.0 }
 0x15f   : > { %v1509_v50 = vmax.f32 %v1501_v48, 0.0 }
 0x161   : > { %v1936_v51 = vpack.c.bf16 %v1509_v50, %v1508_v49 }
 0x163   : > { %1940 = vst [vmem:[%s2718_s25 + $0x18] sm:$0xff] %v1936_v51  }
 0x164 PF: > { %s14_s17 = sadd.s32 1, %s2369_s17   ;;  %s2740_s15 = smov %s2365_s16 }
 0x165   : > { %p11_p5 = scmp.ge.s32.totalorder %s14_s17, 4   ;;  %s2741_s16 = smov %s2743_s18 }
 0x167   :  { %13 = sbr.rel (!%p11_p5) target bundleno = 2 (0x2), region = 78 }

</bundles_post_ra>
